<compile_context>
chip_gen: v5e
topology: v5e:2x2
jax: 0.10.0
libtpu: 0.0.40
codegen_flags: <defaults>
</compile_context>

<pallas_src>
import numpy as np
import jax
import jax.numpy as jnp
from jax import lax
from jax.experimental import pallas as pl
from jax.experimental.pallas import tpu as pltpu


# ---------------------------------------------------------------------------
# Fused whole-network kernel (one image per grid step)
# ---------------------------------------------------------------------------
def _net_kernel(x_ref, rhs1_ref, b1_ref, rhs2_ref, b2_ref,
                w1_ref, fb1_ref, w2_ref, fb2_ref, w3_ref, fb3_ref,
                o_ref, y1p_ref):
    f32 = jnp.float32

    # ---- conv1 + bias + ReLU + 2x2 maxpool (corner-max formulation) ----------------
    # x_ref block: (1, 2, 16, 96); plane [py] holds rows of y-parity py, lanes are
    # (px, j, c) = px*48 + j*3 + c.  Corner (dy,dx) accumulates 5 row-tap matmuls.
    corners1 = []
    for dy in range(2):
        for dx in range(2):
            acc = None
            for ky in range(5):
                py = (dy + ky) % 2
                oy = (dy + ky) // 2
                lhs = x_ref[0, py, oy:oy + 14, :]                       # (14, 96)
                term = jnp.dot(lhs, rhs1_ref[dx, ky],
                               preferred_element_type=f32)              # (14, 84)
                acc = term if acc is None else acc + term
            corners1.append(acc)
    z1 = jnp.maximum(jnp.maximum(corners1[0], corners1[1]),
                     jnp.maximum(corners1[2], corners1[3]))
    # maxpool(relu(conv + b)) == relu(max_corners(conv) + b)  (monotone epilogue)
    y1 = jnp.maximum(z1 + b1_ref[...], 0.0)                             # (14, 84)
    # lanes of y1 are already in conv2's parity order: (pw%2)*42 + (pw//2)*6 + c

    # ---- split conv1 output rows by parity into VMEM scratch for conv2 -------------
    # y1p[py2, i2, :] = y1[2*i2 + py2, :]   (14 static single-row copies)
    for r in range(14):
        y1p_ref[r % 2, r // 2:r // 2 + 1, :] = y1[r:r + 1, :]

    # ---- conv2 + bias + ReLU + 2x2 maxpool ------------------------------------------
    corners2 = []
    for dy2 in range(2):
        for dx2 in range(2):
            acc = None
            for ky2 in range(5):
                par = (dy2 + ky2) % 2
                oy2 = (dy2 + ky2) // 2
                lhs = y1p_ref[par, oy2:oy2 + 5, :]                      # (5, 84)
                term = jnp.dot(lhs, rhs2_ref[dx2, ky2],
                               preferred_element_type=f32)              # (5, 80)
                acc = term if acc is None else acc + term
            corners2.append(acc)
    z2 = jnp.maximum(jnp.maximum(corners2[0], corners2[1]),
                     jnp.maximum(corners2[2], corners2[3]))
    y2 = jnp.maximum(z2 + b2_ref[...], 0.0)                             # (5, 80): (ph2, pw2*16+oc)

    # ---- fc1 -> ReLU -> fc2 -> ReLU -> fc3  (all in vregs) ---------------------------
    h = fb1_ref[...]                                                    # (1, 128)
    for p in range(5):
        h = h + jnp.dot(y2[p:p + 1, :], w1_ref[p], preferred_element_type=f32)
    h = jnp.maximum(h, 0.0)
    h = jnp.maximum(jnp.dot(h, w2_ref[...], preferred_element_type=f32) + fb2_ref[...], 0.0)
    h = jnp.dot(h, w3_ref[...], preferred_element_type=f32) + fb3_ref[...]   # (1, 128), 19 valid

    o_ref[0] = jnp.broadcast_to(h, (8, 128))


# ---------------------------------------------------------------------------
# Parameters: PyTorch-style init + one-time conversion to kernel layouts
# ---------------------------------------------------------------------------
def init_params(key):
    def u(k, shape, fan_in):
        bound = 1.0 / np.sqrt(fan_in)
        return jax.random.uniform(k, shape, jnp.float32, -bound, bound)

    ks = jax.random.split(key, 10)
    return {
        "conv1_w": u(ks[0], (6, 3, 5, 5), 3 * 5 * 5),
        "conv1_b": u(ks[1], (6,), 3 * 5 * 5),
        "conv2_w": u(ks[2], (16, 6, 5, 5), 6 * 5 * 5),
        "conv2_b": u(ks[3], (16,), 6 * 5 * 5),
        "fc1_w":   u(ks[4], (120, 400), 400),
        "fc1_b":   u(ks[5], (120,), 400),
        "fc2_w":   u(ks[6], (84, 120), 120),
        "fc2_b":   u(ks[7], (84,), 120),
        "fc3_w":   u(ks[8], (19, 84), 84),
        "fc3_b":   u(ks[9], (19,), 84),
    }


def prepare_params(params):
    """One-time host-side scatter of conv weights into block-structured matmul RHS,
    and repacking of the fc weights to match the in-kernel activation layouts."""
    w1 = np.asarray(params["conv1_w"], np.float32)      # (6, 3, 5, 5) OIHW
    b1 = np.asarray(params["conv1_b"], np.float32)
    w2 = np.asarray(params["conv2_w"], np.float32)      # (16, 6, 5, 5)
    b2 = np.asarray(params["conv2_b"], np.float32)

    # conv1 RHS[dx, ky]: (96, 84).  Input lane px*48 + j*3 + c, output lane
    # (pw%2)*42 + (pw//2)*6 + oc  (== conv2's parity-ordered input lanes).
    rhs1 = np.zeros((2, 5, 96, 84), np.float32)
    for dx in range(2):
        for ky in range(5):
            for kx in range(5):
                px, ox = (dx + kx) % 2, (dx + kx) // 2
                for pw in range(14):
                    j = pw + ox
                    ob = (pw % 2) * 42 + (pw // 2) * 6
                    for c in range(3):
                        rhs1[dx, ky, px * 48 + j * 3 + c, ob:ob + 6] += w1[:, c, ky, kx]
    b1_l = np.tile(b1, 14).reshape(1, 84)               # lane L -> b1[L % 6]

    # conv2 RHS[dx2, ky2]: (84, 80).  Input lane px2*42 + j2*6 + c, output lane pw2*16 + oc.
    rhs2 = np.zeros((2, 5, 84, 80), np.float32)
    for dx in range(2):
        for ky in range(5):
            for kx in range(5):
                px, ox = (dx + kx) % 2, (dx + kx) // 2
                for pw in range(5):
                    j = pw + ox
                    ob = pw * 16
                    for c in range(6):
                        rhs2[dx, ky, px * 42 + j * 6 + c, ob:ob + 16] += w2[:, c, ky, kx]
    b2_l = np.tile(b2, 5).reshape(1, 80)                # lane L -> b2[L % 16]

    # fc1: (120, 400) with PyTorch (c, h, w) feature order -> per-h blocks (5, 80, 128)
    # whose rows match conv2's output lanes (pw2*16 + oc).
    fw1 = np.asarray(params["fc1_w"], np.float32).reshape(120, 16, 5, 5)   # (o, c, h, w)
    fw1 = np.transpose(fw1, (2, 3, 1, 0)).reshape(5, 80, 120)              # (h, w*16+c, o)
    fc1w = np.zeros((5, 80, 128), np.float32); fc1w[:, :, :120] = fw1
    fb1 = np.zeros((1, 128), np.float32); fb1[0, :120] = np.asarray(params["fc1_b"])
    fc2w = np.zeros((128, 128), np.float32); fc2w[:120, :84] = np.asarray(params["fc2_w"]).T
    fb2 = np.zeros((1, 128), np.float32); fb2[0, :84] = np.asarray(params["fc2_b"])
    fc3w = np.zeros((128, 128), np.float32); fc3w[:84, :19] = np.asarray(params["fc3_w"]).T
    fb3 = np.zeros((1, 128), np.float32); fb3[0, :19] = np.asarray(params["fc3_b"])

    host = {"rhs1": rhs1, "b1": b1_l, "rhs2": rhs2, "b2": b2_l,
            "w1": fc1w, "fb1": fb1, "w2": fc2w, "fb2": fb2, "w3": fc3w, "fb3": fb3}
    return {k: jnp.asarray(v) for k, v in host.items()}


# ---------------------------------------------------------------------------
# Forward pass (mirrors Net.forward) — one fused pallas_call
# ---------------------------------------------------------------------------
def net_forward(prepared, x):
    x = x.astype(jnp.float32)                                  # x.float()
    N = x.shape[0]
    # Parity space-to-depth of the tiny input (single cheap XLA fusion):
    # x_prep[n, py, i, px*48 + j*3 + c] = x[n, c, 2i+py, 2j+px]
    xt = jnp.transpose(x, (0, 2, 3, 1))                        # (N, 32, 32, 3)
    xt = xt.reshape(N, 16, 2, 16, 2, 3)                        # n, i, py, j, px, c
    xt = jnp.transpose(xt, (0, 2, 1, 4, 3, 5))                 # n, py, i, px, j, c
    x_prep = xt.reshape(N, 2, 16, 96)

    out = pl.pallas_call(
        _net_kernel,
        out_shape=jax.ShapeDtypeStruct((N, 8, 128), jnp.float32),
        grid=(N,),
        in_specs=[
            pl.BlockSpec((1, 2, 16, 96), lambda n: (n, 0, 0, 0)),   # x_prep (per image)
            pl.BlockSpec((2, 5, 96, 84), lambda n: (0, 0, 0, 0)),   # conv1 scattered weights
            pl.BlockSpec((1, 84),        lambda n: (0, 0)),         # conv1 bias (lane layout)
            pl.BlockSpec((2, 5, 84, 80), lambda n: (0, 0, 0, 0)),   # conv2 scattered weights
            pl.BlockSpec((1, 80),        lambda n: (0, 0)),         # conv2 bias
            pl.BlockSpec((5, 80, 128),   lambda n: (0, 0, 0)),      # fc1 weight (per-row blocks)
            pl.BlockSpec((1, 128),       lambda n: (0, 0)),         # fc1 bias
            pl.BlockSpec((128, 128),     lambda n: (0, 0)),         # fc2 weight
            pl.BlockSpec((1, 128),       lambda n: (0, 0)),         # fc2 bias
            pl.BlockSpec((128, 128),     lambda n: (0, 0)),         # fc3 weight
            pl.BlockSpec((1, 128),       lambda n: (0, 0)),         # fc3 bias
        ],
        out_specs=pl.BlockSpec((1, 8, 128), lambda n: (n, 0, 0)),
        scratch_shapes=[pltpu.VMEM((2, 7, 84), jnp.float32)],       # parity-split conv1 output
        compiler_params=pltpu.CompilerParams(dimension_semantics=("parallel",)),
    )(x_prep, prepared["rhs1"], prepared["b1"], prepared["rhs2"], prepared["b2"],
      prepared["w1"], prepared["fb1"], prepared["w2"], prepared["fb2"],
      prepared["w3"], prepared["fb3"])

    return out[:, 0, :19]


# ---------------------------------------------------------------------------
# Pure-JAX reference (layout-critical weight scattering is checked against this)
# ---------------------------------------------------------------------------
def net_reference(params, x):
    x = x.astype(jnp.float32)
    dn = ("NCHW", "OIHW", "NCHW")
    y = lax.conv_general_dilated(x, params["conv1_w"], (1, 1), "VALID", dimension_numbers=dn)
    y = jax.nn.relu(y + params["conv1_b"][None, :, None, None])
    y = lax.reduce_window(y, -jnp.inf, lax.max, (1, 1, 2, 2), (1, 1, 2, 2), "VALID")
    y = lax.conv_general_dilated(y, params["conv2_w"], (1, 1), "VALID", dimension_numbers=dn)
    y = jax.nn.relu(y + params["conv2_b"][None, :, None, None])
    y = lax.reduce_window(y, -jnp.inf, lax.max, (1, 1, 2, 2), (1, 1, 2, 2), "VALID")
    y = y.reshape(y.shape[0], -1)                               # (N, 400), (c, h, w) order
    y = jax.nn.relu(y @ params["fc1_w"].T + params["fc1_b"])
    y = jax.nn.relu(y @ params["fc2_w"].T + params["fc2_b"])
    return y @ params["fc3_w"].T + params["fc3_b"]


if __name__ == "__main__":
    key = jax.random.PRNGKey(0)
    k_params, k_x = jax.random.split(key)
    params = init_params(k_params)
    prepared = prepare_params(params)            # all weight massaging hoisted out of the hot path

    # LeNet geometry requires 32x32 spatial input (3 channels); batch=2.
    x = jax.random.normal(k_x, (2, 3, 32, 32), dtype=jnp.float32)

    fwd = jax.jit(net_forward)
    out = jax.block_until_ready(fwd(prepared, x))
    assert out.shape == (2, 19), out.shape
    assert out.dtype == jnp.float32

    ref = jax.block_until_ready(net_reference(params, x))
    np.testing.assert_allclose(np.asarray(out), np.asarray(ref), rtol=5e-2, atol=5e-2)

    print("KERNEL_OK")
</pallas_src>

<mosaic_0001>
module attributes {stable_mosaic.version = 11 : i64} {
  func.func @_net_kernel(%arg0: i32, %arg1: memref<1x2x16x96xf32, #tpu.memory_space<vmem>>, %arg2: memref<2x5x96x84xf32, #tpu.memory_space<vmem>>, %arg3: memref<1x84xf32, #tpu.memory_space<vmem>>, %arg4: memref<2x5x84x80xf32, #tpu.memory_space<vmem>>, %arg5: memref<1x80xf32, #tpu.memory_space<vmem>>, %arg6: memref<5x80x128xf32, #tpu.memory_space<vmem>>, %arg7: memref<1x128xf32, #tpu.memory_space<vmem>>, %arg8: memref<128x128xf32, #tpu.memory_space<vmem>>, %arg9: memref<1x128xf32, #tpu.memory_space<vmem>>, %arg10: memref<128x128xf32, #tpu.memory_space<vmem>>, %arg11: memref<1x128xf32, #tpu.memory_space<vmem>>, %arg12: memref<1x8x128xf32, #tpu.memory_space<vmem>>, %arg13: memref<2x7x84xf32, #tpu.memory_space<vmem>>) attributes {dimension_semantics = [#tpu.dimension_semantics<parallel>], iteration_bounds = array<i64: 2>, scalar_prefetch = 0 : i64, scratch_operands = 1 : i64, tpu.core_type = #tpu.core_type<tc>, window_params = [{transform_indices = @transform_0, window_bounds = array<i64: 1, 2, 16, 96>}, {pipeline_mode = #tpu.pipeline_mode<synchronous>, transform_indices = @transform_1, window_bounds = array<i64: 2, 5, 96, 84>}, {pipeline_mode = #tpu.pipeline_mode<synchronous>, transform_indices = @transform_2, window_bounds = array<i64: 1, 84>}, {pipeline_mode = #tpu.pipeline_mode<synchronous>, transform_indices = @transform_3, window_bounds = array<i64: 2, 5, 84, 80>}, {pipeline_mode = #tpu.pipeline_mode<synchronous>, transform_indices = @transform_4, window_bounds = array<i64: 1, 80>}, {pipeline_mode = #tpu.pipeline_mode<synchronous>, transform_indices = @transform_5, window_bounds = array<i64: 5, 80, 128>}, {pipeline_mode = #tpu.pipeline_mode<synchronous>, transform_indices = @transform_6, window_bounds = array<i64: 1, 128>}, {pipeline_mode = #tpu.pipeline_mode<synchronous>, transform_indices = @transform_7, window_bounds = array<i64: 128, 128>}, {pipeline_mode = #tpu.pipeline_mode<synchronous>, transform_indices = @transform_8, window_bounds = array<i64: 1, 128>}, {pipeline_mode = #tpu.pipeline_mode<synchronous>, transform_indices = @transform_9, window_bounds = array<i64: 128, 128>}, {pipeline_mode = #tpu.pipeline_mode<synchronous>, transform_indices = @transform_10, window_bounds = array<i64: 1, 128>}, {transform_indices = @transform_11, window_bounds = array<i64: 1, 8, 128>}]} {
    %c0 = arith.constant 0 : index
    %c0_0 = arith.constant 0 : index
    %c0_1 = arith.constant 0 : index
    %c0_2 = arith.constant 0 : index
    %0 = vector.load %arg1[%c0, %c0_0, %c0_1, %c0_2] : memref<1x2x16x96xf32, #tpu.memory_space<vmem>>, vector<1x1x14x96xf32>
    %1 = vector.shape_cast %0 : vector<1x1x14x96xf32> to vector<14x96xf32>
    %c0_3 = arith.constant 0 : index
    %c0_4 = arith.constant 0 : index
    %c0_5 = arith.constant 0 : index
    %c0_6 = arith.constant 0 : index
    %2 = vector.load %arg2[%c0_3, %c0_4, %c0_5, %c0_6] : memref<2x5x96x84xf32, #tpu.memory_space<vmem>>, vector<1x1x96x84xf32>
    %3 = vector.shape_cast %2 : vector<1x1x96x84xf32> to vector<96x84xf32>
    %cst = arith.constant dense<0.000000e+00> : vector<14x84xf32>
    %4 = tpu.matmul %1, %3, %cst {dimension_numbers = #tpu.dot_dimension_numbers<[1], [0], [0], [1], [0, 0, 1, 1], [], []>} : vector<14x96xf32>, vector<96x84xf32>, vector<14x84xf32> -> vector<14x84xf32>
    %c0_7 = arith.constant 0 : index
    %c1 = arith.constant 1 : index
    %c0_8 = arith.constant 0 : index
    %c0_9 = arith.constant 0 : index
    %5 = vector.load %arg1[%c0_7, %c1, %c0_8, %c0_9] : memref<1x2x16x96xf32, #tpu.memory_space<vmem>>, vector<1x1x14x96xf32>
    %6 = vector.shape_cast %5 : vector<1x1x14x96xf32> to vector<14x96xf32>
    %c0_10 = arith.constant 0 : index
    %c1_11 = arith.constant 1 : index
    %c0_12 = arith.constant 0 : index
    %c0_13 = arith.constant 0 : index
    %7 = vector.load %arg2[%c0_10, %c1_11, %c0_12, %c0_13] : memref<2x5x96x84xf32, #tpu.memory_space<vmem>>, vector<1x1x96x84xf32>
    %8 = vector.shape_cast %7 : vector<1x1x96x84xf32> to vector<96x84xf32>
    %cst_14 = arith.constant dense<0.000000e+00> : vector<14x84xf32>
    %9 = tpu.matmul %6, %8, %cst_14 {dimension_numbers = #tpu.dot_dimension_numbers<[1], [0], [0], [1], [0, 0, 1, 1], [], []>} : vector<14x96xf32>, vector<96x84xf32>, vector<14x84xf32> -> vector<14x84xf32>
    %10 = arith.addf %4, %9 : vector<14x84xf32>
    %c0_15 = arith.constant 0 : index
    %c0_16 = arith.constant 0 : index
    %c1_17 = arith.constant 1 : index
    %c0_18 = arith.constant 0 : index
    %11 = vector.load %arg1[%c0_15, %c0_16, %c1_17, %c0_18] : memref<1x2x16x96xf32, #tpu.memory_space<vmem>>, vector<1x1x14x96xf32>
    %12 = vector.shape_cast %11 : vector<1x1x14x96xf32> to vector<14x96xf32>
    %c0_19 = arith.constant 0 : index
    %c2 = arith.constant 2 : index
    %c0_20 = arith.constant 0 : index
    %c0_21 = arith.constant 0 : index
    %13 = vector.load %arg2[%c0_19, %c2, %c0_20, %c0_21] : memref<2x5x96x84xf32, #tpu.memory_space<vmem>>, vector<1x1x96x84xf32>
    %14 = vector.shape_cast %13 : vector<1x1x96x84xf32> to vector<96x84xf32>
    %cst_22 = arith.constant dense<0.000000e+00> : vector<14x84xf32>
    %15 = tpu.matmul %12, %14, %cst_22 {dimension_numbers = #tpu.dot_dimension_numbers<[1], [0], [0], [1], [0, 0, 1, 1], [], []>} : vector<14x96xf32>, vector<96x84xf32>, vector<14x84xf32> -> vector<14x84xf32>
    %16 = arith.addf %10, %15 : vector<14x84xf32>
    %c0_23 = arith.constant 0 : index
    %c1_24 = arith.constant 1 : index
    %c1_25 = arith.constant 1 : index
    %c0_26 = arith.constant 0 : index
    %17 = vector.load %arg1[%c0_23, %c1_24, %c1_25, %c0_26] : memref<1x2x16x96xf32, #tpu.memory_space<vmem>>, vector<1x1x14x96xf32>
    %18 = vector.shape_cast %17 : vector<1x1x14x96xf32> to vector<14x96xf32>
    %c0_27 = arith.constant 0 : index
    %c3 = arith.constant 3 : index
    %c0_28 = arith.constant 0 : index
    %c0_29 = arith.constant 0 : index
    %19 = vector.load %arg2[%c0_27, %c3, %c0_28, %c0_29] : memref<2x5x96x84xf32, #tpu.memory_space<vmem>>, vector<1x1x96x84xf32>
    %20 = vector.shape_cast %19 : vector<1x1x96x84xf32> to vector<96x84xf32>
    %cst_30 = arith.constant dense<0.000000e+00> : vector<14x84xf32>
    %21 = tpu.matmul %18, %20, %cst_30 {dimension_numbers = #tpu.dot_dimension_numbers<[1], [0], [0], [1], [0, 0, 1, 1], [], []>} : vector<14x96xf32>, vector<96x84xf32>, vector<14x84xf32> -> vector<14x84xf32>
    %22 = arith.addf %16, %21 : vector<14x84xf32>
    %c0_31 = arith.constant 0 : index
    %c0_32 = arith.constant 0 : index
    %c2_33 = arith.constant 2 : index
    %c0_34 = arith.constant 0 : index
    %23 = vector.load %arg1[%c0_31, %c0_32, %c2_33, %c0_34] : memref<1x2x16x96xf32, #tpu.memory_space<vmem>>, vector<1x1x14x96xf32>
    %24 = vector.shape_cast %23 : vector<1x1x14x96xf32> to vector<14x96xf32>
    %c0_35 = arith.constant 0 : index
    %c4 = arith.constant 4 : index
    %c0_36 = arith.constant 0 : index
    %c0_37 = arith.constant 0 : index
    %25 = vector.load %arg2[%c0_35, %c4, %c0_36, %c0_37] : memref<2x5x96x84xf32, #tpu.memory_space<vmem>>, vector<1x1x96x84xf32>
    %26 = vector.shape_cast %25 : vector<1x1x96x84xf32> to vector<96x84xf32>
    %cst_38 = arith.constant dense<0.000000e+00> : vector<14x84xf32>
    %27 = tpu.matmul %24, %26, %cst_38 {dimension_numbers = #tpu.dot_dimension_numbers<[1], [0], [0], [1], [0, 0, 1, 1], [], []>} : vector<14x96xf32>, vector<96x84xf32>, vector<14x84xf32> -> vector<14x84xf32>
    %28 = arith.addf %22, %27 : vector<14x84xf32>
    %c0_39 = arith.constant 0 : index
    %c0_40 = arith.constant 0 : index
    %c0_41 = arith.constant 0 : index
    %c0_42 = arith.constant 0 : index
    %29 = vector.load %arg1[%c0_39, %c0_40, %c0_41, %c0_42] : memref<1x2x16x96xf32, #tpu.memory_space<vmem>>, vector<1x1x14x96xf32>
    %30 = vector.shape_cast %29 : vector<1x1x14x96xf32> to vector<14x96xf32>
    %c1_43 = arith.constant 1 : index
    %c0_44 = arith.constant 0 : index
    %c0_45 = arith.constant 0 : index
    %c0_46 = arith.constant 0 : index
    %31 = vector.load %arg2[%c1_43, %c0_44, %c0_45, %c0_46] : memref<2x5x96x84xf32, #tpu.memory_space<vmem>>, vector<1x1x96x84xf32>
    %32 = vector.shape_cast %31 : vector<1x1x96x84xf32> to vector<96x84xf32>
    %cst_47 = arith.constant dense<0.000000e+00> : vector<14x84xf32>
    %33 = tpu.matmul %30, %32, %cst_47 {dimension_numbers = #tpu.dot_dimension_numbers<[1], [0], [0], [1], [0, 0, 1, 1], [], []>} : vector<14x96xf32>, vector<96x84xf32>, vector<14x84xf32> -> vector<14x84xf32>
    %c0_48 = arith.constant 0 : index
    %c1_49 = arith.constant 1 : index
    %c0_50 = arith.constant 0 : index
    %c0_51 = arith.constant 0 : index
    %34 = vector.load %arg1[%c0_48, %c1_49, %c0_50, %c0_51] : memref<1x2x16x96xf32, #tpu.memory_space<vmem>>, vector<1x1x14x96xf32>
    %35 = vector.shape_cast %34 : vector<1x1x14x96xf32> to vector<14x96xf32>
    %c1_52 = arith.constant 1 : index
    %c1_53 = arith.constant 1 : index
    %c0_54 = arith.constant 0 : index
    %c0_55 = arith.constant 0 : index
    %36 = vector.load %arg2[%c1_52, %c1_53, %c0_54, %c0_55] : memref<2x5x96x84xf32, #tpu.memory_space<vmem>>, vector<1x1x96x84xf32>
    %37 = vector.shape_cast %36 : vector<1x1x96x84xf32> to vector<96x84xf32>
    %cst_56 = arith.constant dense<0.000000e+00> : vector<14x84xf32>
    %38 = tpu.matmul %35, %37, %cst_56 {dimension_numbers = #tpu.dot_dimension_numbers<[1], [0], [0], [1], [0, 0, 1, 1], [], []>} : vector<14x96xf32>, vector<96x84xf32>, vector<14x84xf32> -> vector<14x84xf32>
    %39 = arith.addf %33, %38 : vector<14x84xf32>
    %c0_57 = arith.constant 0 : index
    %c0_58 = arith.constant 0 : index
    %c1_59 = arith.constant 1 : index
    %c0_60 = arith.constant 0 : index
    %40 = vector.load %arg1[%c0_57, %c0_58, %c1_59, %c0_60] : memref<1x2x16x96xf32, #tpu.memory_space<vmem>>, vector<1x1x14x96xf32>
    %41 = vector.shape_cast %40 : vector<1x1x14x96xf32> to vector<14x96xf32>
    %c1_61 = arith.constant 1 : index
    %c2_62 = arith.constant 2 : index
    %c0_63 = arith.constant 0 : index
    %c0_64 = arith.constant 0 : index
    %42 = vector.load %arg2[%c1_61, %c2_62, %c0_63, %c0_64] : memref<2x5x96x84xf32, #tpu.memory_space<vmem>>, vector<1x1x96x84xf32>
    %43 = vector.shape_cast %42 : vector<1x1x96x84xf32> to vector<96x84xf32>
    %cst_65 = arith.constant dense<0.000000e+00> : vector<14x84xf32>
    %44 = tpu.matmul %41, %43, %cst_65 {dimension_numbers = #tpu.dot_dimension_numbers<[1], [0], [0], [1], [0, 0, 1, 1], [], []>} : vector<14x96xf32>, vector<96x84xf32>, vector<14x84xf32> -> vector<14x84xf32>
    %45 = arith.addf %39, %44 : vector<14x84xf32>
    %c0_66 = arith.constant 0 : index
    %c1_67 = arith.constant 1 : index
    %c1_68 = arith.constant 1 : index
    %c0_69 = arith.constant 0 : index
    %46 = vector.load %arg1[%c0_66, %c1_67, %c1_68, %c0_69] : memref<1x2x16x96xf32, #tpu.memory_space<vmem>>, vector<1x1x14x96xf32>
    %47 = vector.shape_cast %46 : vector<1x1x14x96xf32> to vector<14x96xf32>
    %c1_70 = arith.constant 1 : index
    %c3_71 = arith.constant 3 : index
    %c0_72 = arith.constant 0 : index
    %c0_73 = arith.constant 0 : index
    %48 = vector.load %arg2[%c1_70, %c3_71, %c0_72, %c0_73] : memref<2x5x96x84xf32, #tpu.memory_space<vmem>>, vector<1x1x96x84xf32>
    %49 = vector.shape_cast %48 : vector<1x1x96x84xf32> to vector<96x84xf32>
    %cst_74 = arith.constant dense<0.000000e+00> : vector<14x84xf32>
    %50 = tpu.matmul %47, %49, %cst_74 {dimension_numbers = #tpu.dot_dimension_numbers<[1], [0], [0], [1], [0, 0, 1, 1], [], []>} : vector<14x96xf32>, vector<96x84xf32>, vector<14x84xf32> -> vector<14x84xf32>
    %51 = arith.addf %45, %50 : vector<14x84xf32>
    %c0_75 = arith.constant 0 : index
    %c0_76 = arith.constant 0 : index
    %c2_77 = arith.constant 2 : index
    %c0_78 = arith.constant 0 : index
    %52 = vector.load %arg1[%c0_75, %c0_76, %c2_77, %c0_78] : memref<1x2x16x96xf32, #tpu.memory_space<vmem>>, vector<1x1x14x96xf32>
    %53 = vector.shape_cast %52 : vector<1x1x14x96xf32> to vector<14x96xf32>
    %c1_79 = arith.constant 1 : index
    %c4_80 = arith.constant 4 : index
    %c0_81 = arith.constant 0 : index
    %c0_82 = arith.constant 0 : index
    %54 = vector.load %arg2[%c1_79, %c4_80, %c0_81, %c0_82] : memref<2x5x96x84xf32, #tpu.memory_space<vmem>>, vector<1x1x96x84xf32>
    %55 = vector.shape_cast %54 : vector<1x1x96x84xf32> to vector<96x84xf32>
    %cst_83 = arith.constant dense<0.000000e+00> : vector<14x84xf32>
    %56 = tpu.matmul %53, %55, %cst_83 {dimension_numbers = #tpu.dot_dimension_numbers<[1], [0], [0], [1], [0, 0, 1, 1], [], []>} : vector<14x96xf32>, vector<96x84xf32>, vector<14x84xf32> -> vector<14x84xf32>
    %57 = arith.addf %51, %56 : vector<14x84xf32>
    %c0_84 = arith.constant 0 : index
    %c1_85 = arith.constant 1 : index
    %c0_86 = arith.constant 0 : index
    %c0_87 = arith.constant 0 : index
    %58 = vector.load %arg1[%c0_84, %c1_85, %c0_86, %c0_87] : memref<1x2x16x96xf32, #tpu.memory_space<vmem>>, vector<1x1x14x96xf32>
    %59 = vector.shape_cast %58 : vector<1x1x14x96xf32> to vector<14x96xf32>
    %c0_88 = arith.constant 0 : index
    %c0_89 = arith.constant 0 : index
    %c0_90 = arith.constant 0 : index
    %c0_91 = arith.constant 0 : index
    %60 = vector.load %arg2[%c0_88, %c0_89, %c0_90, %c0_91] : memref<2x5x96x84xf32, #tpu.memory_space<vmem>>, vector<1x1x96x84xf32>
    %61 = vector.shape_cast %60 : vector<1x1x96x84xf32> to vector<96x84xf32>
    %cst_92 = arith.constant dense<0.000000e+00> : vector<14x84xf32>
    %62 = tpu.matmul %59, %61, %cst_92 {dimension_numbers = #tpu.dot_dimension_numbers<[1], [0], [0], [1], [0, 0, 1, 1], [], []>} : vector<14x96xf32>, vector<96x84xf32>, vector<14x84xf32> -> vector<14x84xf32>
    %c0_93 = arith.constant 0 : index
    %c0_94 = arith.constant 0 : index
    %c1_95 = arith.constant 1 : index
    %c0_96 = arith.constant 0 : index
    %63 = vector.load %arg1[%c0_93, %c0_94, %c1_95, %c0_96] : memref<1x2x16x96xf32, #tpu.memory_space<vmem>>, vector<1x1x14x96xf32>
    %64 = vector.shape_cast %63 : vector<1x1x14x96xf32> to vector<14x96xf32>
    %c0_97 = arith.constant 0 : index
    %c1_98 = arith.constant 1 : index
    %c0_99 = arith.constant 0 : index
    %c0_100 = arith.constant 0 : index
    %65 = vector.load %arg2[%c0_97, %c1_98, %c0_99, %c0_100] : memref<2x5x96x84xf32, #tpu.memory_space<vmem>>, vector<1x1x96x84xf32>
    %66 = vector.shape_cast %65 : vector<1x1x96x84xf32> to vector<96x84xf32>
    %cst_101 = arith.constant dense<0.000000e+00> : vector<14x84xf32>
    %67 = tpu.matmul %64, %66, %cst_101 {dimension_numbers = #tpu.dot_dimension_numbers<[1], [0], [0], [1], [0, 0, 1, 1], [], []>} : vector<14x96xf32>, vector<96x84xf32>, vector<14x84xf32> -> vector<14x84xf32>
    %68 = arith.addf %62, %67 : vector<14x84xf32>
    %c0_102 = arith.constant 0 : index
    %c1_103 = arith.constant 1 : index
    %c1_104 = arith.constant 1 : index
    %c0_105 = arith.constant 0 : index
    %69 = vector.load %arg1[%c0_102, %c1_103, %c1_104, %c0_105] : memref<1x2x16x96xf32, #tpu.memory_space<vmem>>, vector<1x1x14x96xf32>
    %70 = vector.shape_cast %69 : vector<1x1x14x96xf32> to vector<14x96xf32>
    %c0_106 = arith.constant 0 : index
    %c2_107 = arith.constant 2 : index
    %c0_108 = arith.constant 0 : index
    %c0_109 = arith.constant 0 : index
    %71 = vector.load %arg2[%c0_106, %c2_107, %c0_108, %c0_109] : memref<2x5x96x84xf32, #tpu.memory_space<vmem>>, vector<1x1x96x84xf32>
    %72 = vector.shape_cast %71 : vector<1x1x96x84xf32> to vector<96x84xf32>
    %cst_110 = arith.constant dense<0.000000e+00> : vector<14x84xf32>
    %73 = tpu.matmul %70, %72, %cst_110 {dimension_numbers = #tpu.dot_dimension_numbers<[1], [0], [0], [1], [0, 0, 1, 1], [], []>} : vector<14x96xf32>, vector<96x84xf32>, vector<14x84xf32> -> vector<14x84xf32>
    %74 = arith.addf %68, %73 : vector<14x84xf32>
    %c0_111 = arith.constant 0 : index
    %c0_112 = arith.constant 0 : index
    %c2_113 = arith.constant 2 : index
    %c0_114 = arith.constant 0 : index
    %75 = vector.load %arg1[%c0_111, %c0_112, %c2_113, %c0_114] : memref<1x2x16x96xf32, #tpu.memory_space<vmem>>, vector<1x1x14x96xf32>
    %76 = vector.shape_cast %75 : vector<1x1x14x96xf32> to vector<14x96xf32>
    %c0_115 = arith.constant 0 : index
    %c3_116 = arith.constant 3 : index
    %c0_117 = arith.constant 0 : index
    %c0_118 = arith.constant 0 : index
    %77 = vector.load %arg2[%c0_115, %c3_116, %c0_117, %c0_118] : memref<2x5x96x84xf32, #tpu.memory_space<vmem>>, vector<1x1x96x84xf32>
    %78 = vector.shape_cast %77 : vector<1x1x96x84xf32> to vector<96x84xf32>
    %cst_119 = arith.constant dense<0.000000e+00> : vector<14x84xf32>
    %79 = tpu.matmul %76, %78, %cst_119 {dimension_numbers = #tpu.dot_dimension_numbers<[1], [0], [0], [1], [0, 0, 1, 1], [], []>} : vector<14x96xf32>, vector<96x84xf32>, vector<14x84xf32> -> vector<14x84xf32>
    %80 = arith.addf %74, %79 : vector<14x84xf32>
    %c0_120 = arith.constant 0 : index
    %c1_121 = arith.constant 1 : index
    %c2_122 = arith.constant 2 : index
    %c0_123 = arith.constant 0 : index
    %81 = vector.load %arg1[%c0_120, %c1_121, %c2_122, %c0_123] : memref<1x2x16x96xf32, #tpu.memory_space<vmem>>, vector<1x1x14x96xf32>
    %82 = vector.shape_cast %81 : vector<1x1x14x96xf32> to vector<14x96xf32>
    %c0_124 = arith.constant 0 : index
    %c4_125 = arith.constant 4 : index
    %c0_126 = arith.constant 0 : index
    %c0_127 = arith.constant 0 : index
    %83 = vector.load %arg2[%c0_124, %c4_125, %c0_126, %c0_127] : memref<2x5x96x84xf32, #tpu.memory_space<vmem>>, vector<1x1x96x84xf32>
    %84 = vector.shape_cast %83 : vector<1x1x96x84xf32> to vector<96x84xf32>
    %cst_128 = arith.constant dense<0.000000e+00> : vector<14x84xf32>
    %85 = tpu.matmul %82, %84, %cst_128 {dimension_numbers = #tpu.dot_dimension_numbers<[1], [0], [0], [1], [0, 0, 1, 1], [], []>} : vector<14x96xf32>, vector<96x84xf32>, vector<14x84xf32> -> vector<14x84xf32>
    %86 = arith.addf %80, %85 : vector<14x84xf32>
    %c0_129 = arith.constant 0 : index
    %c1_130 = arith.constant 1 : index
    %c0_131 = arith.constant 0 : index
    %c0_132 = arith.constant 0 : index
    %87 = vector.load %arg1[%c0_129, %c1_130, %c0_131, %c0_132] : memref<1x2x16x96xf32, #tpu.memory_space<vmem>>, vector<1x1x14x96xf32>
    %88 = vector.shape_cast %87 : vector<1x1x14x96xf32> to vector<14x96xf32>
    %c1_133 = arith.constant 1 : index
    %c0_134 = arith.constant 0 : index
    %c0_135 = arith.constant 0 : index
    %c0_136 = arith.constant 0 : index
    %89 = vector.load %arg2[%c1_133, %c0_134, %c0_135, %c0_136] : memref<2x5x96x84xf32, #tpu.memory_space<vmem>>, vector<1x1x96x84xf32>
    %90 = vector.shape_cast %89 : vector<1x1x96x84xf32> to vector<96x84xf32>
    %cst_137 = arith.constant dense<0.000000e+00> : vector<14x84xf32>
    %91 = tpu.matmul %88, %90, %cst_137 {dimension_numbers = #tpu.dot_dimension_numbers<[1], [0], [0], [1], [0, 0, 1, 1], [], []>} : vector<14x96xf32>, vector<96x84xf32>, vector<14x84xf32> -> vector<14x84xf32>
    %c0_138 = arith.constant 0 : index
    %c0_139 = arith.constant 0 : index
    %c1_140 = arith.constant 1 : index
    %c0_141 = arith.constant 0 : index
    %92 = vector.load %arg1[%c0_138, %c0_139, %c1_140, %c0_141] : memref<1x2x16x96xf32, #tpu.memory_space<vmem>>, vector<1x1x14x96xf32>
    %93 = vector.shape_cast %92 : vector<1x1x14x96xf32> to vector<14x96xf32>
    %c1_142 = arith.constant 1 : index
    %c1_143 = arith.constant 1 : index
    %c0_144 = arith.constant 0 : index
    %c0_145 = arith.constant 0 : index
    %94 = vector.load %arg2[%c1_142, %c1_143, %c0_144, %c0_145] : memref<2x5x96x84xf32, #tpu.memory_space<vmem>>, vector<1x1x96x84xf32>
    %95 = vector.shape_cast %94 : vector<1x1x96x84xf32> to vector<96x84xf32>
    %cst_146 = arith.constant dense<0.000000e+00> : vector<14x84xf32>
    %96 = tpu.matmul %93, %95, %cst_146 {dimension_numbers = #tpu.dot_dimension_numbers<[1], [0], [0], [1], [0, 0, 1, 1], [], []>} : vector<14x96xf32>, vector<96x84xf32>, vector<14x84xf32> -> vector<14x84xf32>
    %97 = arith.addf %91, %96 : vector<14x84xf32>
    %c0_147 = arith.constant 0 : index
    %c1_148 = arith.constant 1 : index
    %c1_149 = arith.constant 1 : index
    %c0_150 = arith.constant 0 : index
    %98 = vector.load %arg1[%c0_147, %c1_148, %c1_149, %c0_150] : memref<1x2x16x96xf32, #tpu.memory_space<vmem>>, vector<1x1x14x96xf32>
    %99 = vector.shape_cast %98 : vector<1x1x14x96xf32> to vector<14x96xf32>
    %c1_151 = arith.constant 1 : index
    %c2_152 = arith.constant 2 : index
    %c0_153 = arith.constant 0 : index
    %c0_154 = arith.constant 0 : index
    %100 = vector.load %arg2[%c1_151, %c2_152, %c0_153, %c0_154] : memref<2x5x96x84xf32, #tpu.memory_space<vmem>>, vector<1x1x96x84xf32>
    %101 = vector.shape_cast %100 : vector<1x1x96x84xf32> to vector<96x84xf32>
    %cst_155 = arith.constant dense<0.000000e+00> : vector<14x84xf32>
    %102 = tpu.matmul %99, %101, %cst_155 {dimension_numbers = #tpu.dot_dimension_numbers<[1], [0], [0], [1], [0, 0, 1, 1], [], []>} : vector<14x96xf32>, vector<96x84xf32>, vector<14x84xf32> -> vector<14x84xf32>
    %103 = arith.addf %97, %102 : vector<14x84xf32>
    %c0_156 = arith.constant 0 : index
    %c0_157 = arith.constant 0 : index
    %c2_158 = arith.constant 2 : index
    %c0_159 = arith.constant 0 : index
    %104 = vector.load %arg1[%c0_156, %c0_157, %c2_158, %c0_159] : memref<1x2x16x96xf32, #tpu.memory_space<vmem>>, vector<1x1x14x96xf32>
    %105 = vector.shape_cast %104 : vector<1x1x14x96xf32> to vector<14x96xf32>
    %c1_160 = arith.constant 1 : index
    %c3_161 = arith.constant 3 : index
    %c0_162 = arith.constant 0 : index
    %c0_163 = arith.constant 0 : index
    %106 = vector.load %arg2[%c1_160, %c3_161, %c0_162, %c0_163] : memref<2x5x96x84xf32, #tpu.memory_space<vmem>>, vector<1x1x96x84xf32>
    %107 = vector.shape_cast %106 : vector<1x1x96x84xf32> to vector<96x84xf32>
    %cst_164 = arith.constant dense<0.000000e+00> : vector<14x84xf32>
    %108 = tpu.matmul %105, %107, %cst_164 {dimension_numbers = #tpu.dot_dimension_numbers<[1], [0], [0], [1], [0, 0, 1, 1], [], []>} : vector<14x96xf32>, vector<96x84xf32>, vector<14x84xf32> -> vector<14x84xf32>
    %109 = arith.addf %103, %108 : vector<14x84xf32>
    %c0_165 = arith.constant 0 : index
    %c1_166 = arith.constant 1 : index
    %c2_167 = arith.constant 2 : index
    %c0_168 = arith.constant 0 : index
    %110 = vector.load %arg1[%c0_165, %c1_166, %c2_167, %c0_168] : memref<1x2x16x96xf32, #tpu.memory_space<vmem>>, vector<1x1x14x96xf32>
    %111 = vector.shape_cast %110 : vector<1x1x14x96xf32> to vector<14x96xf32>
    %c1_169 = arith.constant 1 : index
    %c4_170 = arith.constant 4 : index
    %c0_171 = arith.constant 0 : index
    %c0_172 = arith.constant 0 : index
    %112 = vector.load %arg2[%c1_169, %c4_170, %c0_171, %c0_172] : memref<2x5x96x84xf32, #tpu.memory_space<vmem>>, vector<1x1x96x84xf32>
    %113 = vector.shape_cast %112 : vector<1x1x96x84xf32> to vector<96x84xf32>
    %cst_173 = arith.constant dense<0.000000e+00> : vector<14x84xf32>
    %114 = tpu.matmul %111, %113, %cst_173 {dimension_numbers = #tpu.dot_dimension_numbers<[1], [0], [0], [1], [0, 0, 1, 1], [], []>} : vector<14x96xf32>, vector<96x84xf32>, vector<14x84xf32> -> vector<14x84xf32>
    %115 = arith.addf %109, %114 : vector<14x84xf32>
    %116 = arith.maximumf %28, %57 : vector<14x84xf32>
    %117 = arith.maximumf %86, %115 : vector<14x84xf32>
    %118 = arith.maximumf %116, %117 : vector<14x84xf32>
    %c0_174 = arith.constant 0 : index
    %c0_175 = arith.constant 0 : index
    %119 = vector.load %arg3[%c0_174, %c0_175] : memref<1x84xf32, #tpu.memory_space<vmem>>, vector<1x84xf32>
    %120 = vector.broadcast %119 : vector<1x84xf32> to vector<14x84xf32>
    %121 = arith.addf %118, %120 : vector<14x84xf32>
    %cst_176 = arith.constant 0.000000e+00 : f32
    %122 = vector.broadcast %cst_176 : f32 to vector<14x84xf32>
    %123 = arith.maximumf %121, %122 : vector<14x84xf32>
    %124 = vector.extract_strided_slice %123 {offsets = [0, 0], sizes = [1, 84], strides = [1, 1]} : vector<14x84xf32> to vector<1x84xf32>
    %c0_177 = arith.constant 0 : index
    %c0_178 = arith.constant 0 : index
    %c0_179 = arith.constant 0 : index
    %125 = vector.load %arg13[%c0_177, %c0_178, %c0_179] : memref<2x7x84xf32, #tpu.memory_space<vmem>>, vector<1x1x84xf32>
    %126 = vector.shape_cast %125 : vector<1x1x84xf32> to vector<1x84xf32>
    %127 = vector.shape_cast %124 : vector<1x84xf32> to vector<1x1x84xf32>
    tpu.vector_store %arg13[%c0_177, %c0_178, %c0_179], %127 {strides = array<i32>} : memref<2x7x84xf32, #tpu.memory_space<vmem>>, vector<1x1x84xf32>,
    %128 = vector.extract_strided_slice %123 {offsets = [1, 0], sizes = [1, 84], strides = [1, 1]} : vector<14x84xf32> to vector<1x84xf32>
    %c1_180 = arith.constant 1 : index
    %c0_181 = arith.constant 0 : index
    %c0_182 = arith.constant 0 : index
    %129 = vector.load %arg13[%c1_180, %c0_181, %c0_182] : memref<2x7x84xf32, #tpu.memory_space<vmem>>, vector<1x1x84xf32>
    %130 = vector.shape_cast %129 : vector<1x1x84xf32> to vector<1x84xf32>
    %131 = vector.shape_cast %128 : vector<1x84xf32> to vector<1x1x84xf32>
    tpu.vector_store %arg13[%c1_180, %c0_181, %c0_182], %131 {strides = array<i32>} : memref<2x7x84xf32, #tpu.memory_space<vmem>>, vector<1x1x84xf32>,
    %132 = vector.extract_strided_slice %123 {offsets = [2, 0], sizes = [1, 84], strides = [1, 1]} : vector<14x84xf32> to vector<1x84xf32>
    %c0_183 = arith.constant 0 : index
    %c1_184 = arith.constant 1 : index
    %c0_185 = arith.constant 0 : index
    %133 = vector.load %arg13[%c0_183, %c1_184, %c0_185] : memref<2x7x84xf32, #tpu.memory_space<vmem>>, vector<1x1x84xf32>
    %134 = vector.shape_cast %133 : vector<1x1x84xf32> to vector<1x84xf32>
    %135 = vector.shape_cast %132 : vector<1x84xf32> to vector<1x1x84xf32>
    tpu.vector_store %arg13[%c0_183, %c1_184, %c0_185], %135 {strides = array<i32>} : memref<2x7x84xf32, #tpu.memory_space<vmem>>, vector<1x1x84xf32>,
    %136 = vector.extract_strided_slice %123 {offsets = [3, 0], sizes = [1, 84], strides = [1, 1]} : vector<14x84xf32> to vector<1x84xf32>
    %c1_186 = arith.constant 1 : index
    %c1_187 = arith.constant 1 : index
    %c0_188 = arith.constant 0 : index
    %137 = vector.load %arg13[%c1_186, %c1_187, %c0_188] : memref<2x7x84xf32, #tpu.memory_space<vmem>>, vector<1x1x84xf32>
    %138 = vector.shape_cast %137 : vector<1x1x84xf32> to vector<1x84xf32>
    %139 = vector.shape_cast %136 : vector<1x84xf32> to vector<1x1x84xf32>
    tpu.vector_store %arg13[%c1_186, %c1_187, %c0_188], %139 {strides = array<i32>} : memref<2x7x84xf32, #tpu.memory_space<vmem>>, vector<1x1x84xf32>,
    %140 = vector.extract_strided_slice %123 {offsets = [4, 0], sizes = [1, 84], strides = [1, 1]} : vector<14x84xf32> to vector<1x84xf32>
    %c0_189 = arith.constant 0 : index
    %c2_190 = arith.constant 2 : index
    %c0_191 = arith.constant 0 : index
    %141 = vector.load %arg13[%c0_189, %c2_190, %c0_191] : memref<2x7x84xf32, #tpu.memory_space<vmem>>, vector<1x1x84xf32>
    %142 = vector.shape_cast %141 : vector<1x1x84xf32> to vector<1x84xf32>
    %143 = vector.shape_cast %140 : vector<1x84xf32> to vector<1x1x84xf32>
    tpu.vector_store %arg13[%c0_189, %c2_190, %c0_191], %143 {strides = array<i32>} : memref<2x7x84xf32, #tpu.memory_space<vmem>>, vector<1x1x84xf32>,
    %144 = vector.extract_strided_slice %123 {offsets = [5, 0], sizes = [1, 84], strides = [1, 1]} : vector<14x84xf32> to vector<1x84xf32>
    %c1_192 = arith.constant 1 : index
    %c2_193 = arith.constant 2 : index
    %c0_194 = arith.constant 0 : index
    %145 = vector.load %arg13[%c1_192, %c2_193, %c0_194] : memref<2x7x84xf32, #tpu.memory_space<vmem>>, vector<1x1x84xf32>
    %146 = vector.shape_cast %145 : vector<1x1x84xf32> to vector<1x84xf32>
    %147 = vector.shape_cast %144 : vector<1x84xf32> to vector<1x1x84xf32>
    tpu.vector_store %arg13[%c1_192, %c2_193, %c0_194], %147 {strides = array<i32>} : memref<2x7x84xf32, #tpu.memory_space<vmem>>, vector<1x1x84xf32>,
    %148 = vector.extract_strided_slice %123 {offsets = [6, 0], sizes = [1, 84], strides = [1, 1]} : vector<14x84xf32> to vector<1x84xf32>
    %c0_195 = arith.constant 0 : index
    %c3_196 = arith.constant 3 : index
    %c0_197 = arith.constant 0 : index
    %149 = vector.load %arg13[%c0_195, %c3_196, %c0_197] : memref<2x7x84xf32, #tpu.memory_space<vmem>>, vector<1x1x84xf32>
    %150 = vector.shape_cast %149 : vector<1x1x84xf32> to vector<1x84xf32>
    %151 = vector.shape_cast %148 : vector<1x84xf32> to vector<1x1x84xf32>
    tpu.vector_store %arg13[%c0_195, %c3_196, %c0_197], %151 {strides = array<i32>} : memref<2x7x84xf32, #tpu.memory_space<vmem>>, vector<1x1x84xf32>,
    %152 = vector.extract_strided_slice %123 {offsets = [7, 0], sizes = [1, 84], strides = [1, 1]} : vector<14x84xf32> to vector<1x84xf32>
    %c1_198 = arith.constant 1 : index
    %c3_199 = arith.constant 3 : index
    %c0_200 = arith.constant 0 : index
    %153 = vector.load %arg13[%c1_198, %c3_199, %c0_200] : memref<2x7x84xf32, #tpu.memory_space<vmem>>, vector<1x1x84xf32>
    %154 = vector.shape_cast %153 : vector<1x1x84xf32> to vector<1x84xf32>
    %155 = vector.shape_cast %152 : vector<1x84xf32> to vector<1x1x84xf32>
    tpu.vector_store %arg13[%c1_198, %c3_199, %c0_200], %155 {strides = array<i32>} : memref<2x7x84xf32, #tpu.memory_space<vmem>>, vector<1x1x84xf32>,
    %156 = vector.extract_strided_slice %123 {offsets = [8, 0], sizes = [1, 84], strides = [1, 1]} : vector<14x84xf32> to vector<1x84xf32>
    %c0_201 = arith.constant 0 : index
    %c4_202 = arith.constant 4 : index
    %c0_203 = arith.constant 0 : index
    %157 = vector.load %arg13[%c0_201, %c4_202, %c0_203] : memref<2x7x84xf32, #tpu.memory_space<vmem>>, vector<1x1x84xf32>
    %158 = vector.shape_cast %157 : vector<1x1x84xf32> to vector<1x84xf32>
    %159 = vector.shape_cast %156 : vector<1x84xf32> to vector<1x1x84xf32>
    tpu.vector_store %arg13[%c0_201, %c4_202, %c0_203], %159 {strides = array<i32>} : memref<2x7x84xf32, #tpu.memory_space<vmem>>, vector<1x1x84xf32>,
    %160 = vector.extract_strided_slice %123 {offsets = [9, 0], sizes = [1, 84], strides = [1, 1]} : vector<14x84xf32> to vector<1x84xf32>
    %c1_204 = arith.constant 1 : index
    %c4_205 = arith.constant 4 : index
    %c0_206 = arith.constant 0 : index
    %161 = vector.load %arg13[%c1_204, %c4_205, %c0_206] : memref<2x7x84xf32, #tpu.memory_space<vmem>>, vector<1x1x84xf32>
    %162 = vector.shape_cast %161 : vector<1x1x84xf32> to vector<1x84xf32>
    %163 = vector.shape_cast %160 : vector<1x84xf32> to vector<1x1x84xf32>
    tpu.vector_store %arg13[%c1_204, %c4_205, %c0_206], %163 {strides = array<i32>} : memref<2x7x84xf32, #tpu.memory_space<vmem>>, vector<1x1x84xf32>,
    %164 = vector.extract_strided_slice %123 {offsets = [10, 0], sizes = [1, 84], strides = [1, 1]} : vector<14x84xf32> to vector<1x84xf32>
    %c0_207 = arith.constant 0 : index
    %c5 = arith.constant 5 : index
    %c0_208 = arith.constant 0 : index
    %165 = vector.load %arg13[%c0_207, %c5, %c0_208] : memref<2x7x84xf32, #tpu.memory_space<vmem>>, vector<1x1x84xf32>
    %166 = vector.shape_cast %165 : vector<1x1x84xf32> to vector<1x84xf32>
    %167 = vector.shape_cast %164 : vector<1x84xf32> to vector<1x1x84xf32>
    tpu.vector_store %arg13[%c0_207, %c5, %c0_208], %167 {strides = array<i32>} : memref<2x7x84xf32, #tpu.memory_space<vmem>>, vector<1x1x84xf32>,
    %168 = vector.extract_strided_slice %123 {offsets = [11, 0], sizes = [1, 84], strides = [1, 1]} : vector<14x84xf32> to vector<1x84xf32>
    %c1_209 = arith.constant 1 : index
    %c5_210 = arith.constant 5 : index
    %c0_211 = arith.constant 0 : index
    %169 = vector.load %arg13[%c1_209, %c5_210, %c0_211] : memref<2x7x84xf32, #tpu.memory_space<vmem>>, vector<1x1x84xf32>
    %170 = vector.shape_cast %169 : vector<1x1x84xf32> to vector<1x84xf32>
    %171 = vector.shape_cast %168 : vector<1x84xf32> to vector<1x1x84xf32>
    tpu.vector_store %arg13[%c1_209, %c5_210, %c0_211], %171 {strides = array<i32>} : memref<2x7x84xf32, #tpu.memory_space<vmem>>, vector<1x1x84xf32>,
    %172 = vector.extract_strided_slice %123 {offsets = [12, 0], sizes = [1, 84], strides = [1, 1]} : vector<14x84xf32> to vector<1x84xf32>
    %c0_212 = arith.constant 0 : index
    %c6 = arith.constant 6 : index
    %c0_213 = arith.constant 0 : index
    %173 = vector.load %arg13[%c0_212, %c6, %c0_213] : memref<2x7x84xf32, #tpu.memory_space<vmem>>, vector<1x1x84xf32>
    %174 = vector.shape_cast %173 : vector<1x1x84xf32> to vector<1x84xf32>
    %175 = vector.shape_cast %172 : vector<1x84xf32> to vector<1x1x84xf32>
    tpu.vector_store %arg13[%c0_212, %c6, %c0_213], %175 {strides = array<i32>} : memref<2x7x84xf32, #tpu.memory_space<vmem>>, vector<1x1x84xf32>,
    %176 = vector.extract_strided_slice %123 {offsets = [13, 0], sizes = [1, 84], strides = [1, 1]} : vector<14x84xf32> to vector<1x84xf32>
    %c1_214 = arith.constant 1 : index
    %c6_215 = arith.constant 6 : index
    %c0_216 = arith.constant 0 : index
    %177 = vector.load %arg13[%c1_214, %c6_215, %c0_216] : memref<2x7x84xf32, #tpu.memory_space<vmem>>, vector<1x1x84xf32>
    %178 = vector.shape_cast %177 : vector<1x1x84xf32> to vector<1x84xf32>
    %179 = vector.shape_cast %176 : vector<1x84xf32> to vector<1x1x84xf32>
    tpu.vector_store %arg13[%c1_214, %c6_215, %c0_216], %179 {strides = array<i32>} : memref<2x7x84xf32, #tpu.memory_space<vmem>>, vector<1x1x84xf32>,
    %c0_217 = arith.constant 0 : index
    %c0_218 = arith.constant 0 : index
    %c0_219 = arith.constant 0 : index
    %180 = vector.load %arg13[%c0_217, %c0_218, %c0_219] : memref<2x7x84xf32, #tpu.memory_space<vmem>>, vector<1x5x84xf32>
    %181 = vector.shape_cast %180 : vector<1x5x84xf32> to vector<5x84xf32>
    %c0_220 = arith.constant 0 : index
    %c0_221 = arith.constant 0 : index
    %c0_222 = arith.constant 0 : index
    %c0_223 = arith.constant 0 : index
    %182 = vector.load %arg4[%c0_220, %c0_221, %c0_222, %c0_223] : memref<2x5x84x80xf32, #tpu.memory_space<vmem>>, vector<1x1x84x80xf32>
    %183 = vector.shape_cast %182 : vector<1x1x84x80xf32> to vector<84x80xf32>
    %cst_224 = arith.constant dense<0.000000e+00> : vector<5x80xf32>
    %184 = tpu.matmul %181, %183, %cst_224 {dimension_numbers = #tpu.dot_dimension_numbers<[1], [0], [0], [1], [0, 0, 1, 1], [], []>} : vector<5x84xf32>, vector<84x80xf32>, vector<5x80xf32> -> vector<5x80xf32>
    %c1_225 = arith.constant 1 : index
    %c0_226 = arith.constant 0 : index
    %c0_227 = arith.constant 0 : index
    %185 = vector.load %arg13[%c1_225, %c0_226, %c0_227] : memref<2x7x84xf32, #tpu.memory_space<vmem>>, vector<1x5x84xf32>
    %186 = vector.shape_cast %185 : vector<1x5x84xf32> to vector<5x84xf32>
    %c0_228 = arith.constant 0 : index
    %c1_229 = arith.constant 1 : index
    %c0_230 = arith.constant 0 : index
    %c0_231 = arith.constant 0 : index
    %187 = vector.load %arg4[%c0_228, %c1_229, %c0_230, %c0_231] : memref<2x5x84x80xf32, #tpu.memory_space<vmem>>, vector<1x1x84x80xf32>
    %188 = vector.shape_cast %187 : vector<1x1x84x80xf32> to vector<84x80xf32>
    %cst_232 = arith.constant dense<0.000000e+00> : vector<5x80xf32>
    %189 = tpu.matmul %186, %188, %cst_232 {dimension_numbers = #tpu.dot_dimension_numbers<[1], [0], [0], [1], [0, 0, 1, 1], [], []>} : vector<5x84xf32>, vector<84x80xf32>, vector<5x80xf32> -> vector<5x80xf32>
    %190 = arith.addf %184, %189 : vector<5x80xf32>
    %c0_233 = arith.constant 0 : index
    %c1_234 = arith.constant 1 : index
    %c0_235 = arith.constant 0 : index
    %191 = vector.load %arg13[%c0_233, %c1_234, %c0_235] : memref<2x7x84xf32, #tpu.memory_space<vmem>>, vector<1x5x84xf32>
    %192 = vector.shape_cast %191 : vector<1x5x84xf32> to vector<5x84xf32>
    %c0_236 = arith.constant 0 : index
    %c2_237 = arith.constant 2 : index
    %c0_238 = arith.constant 0 : index
    %c0_239 = arith.constant 0 : index
    %193 = vector.load %arg4[%c0_236, %c2_237, %c0_238, %c0_239] : memref<2x5x84x80xf32, #tpu.memory_space<vmem>>, vector<1x1x84x80xf32>
    %194 = vector.shape_cast %193 : vector<1x1x84x80xf32> to vector<84x80xf32>
    %cst_240 = arith.constant dense<0.000000e+00> : vector<5x80xf32>
    %195 = tpu.matmul %192, %194, %cst_240 {dimension_numbers = #tpu.dot_dimension_numbers<[1], [0], [0], [1], [0, 0, 1, 1], [], []>} : vector<5x84xf32>, vector<84x80xf32>, vector<5x80xf32> -> vector<5x80xf32>
    %196 = arith.addf %190, %195 : vector<5x80xf32>
    %c1_241 = arith.constant 1 : index
    %c1_242 = arith.constant 1 : index
    %c0_243 = arith.constant 0 : index
    %197 = vector.load %arg13[%c1_241, %c1_242, %c0_243] : memref<2x7x84xf32, #tpu.memory_space<vmem>>, vector<1x5x84xf32>
    %198 = vector.shape_cast %197 : vector<1x5x84xf32> to vector<5x84xf32>
    %c0_244 = arith.constant 0 : index
    %c3_245 = arith.constant 3 : index
    %c0_246 = arith.constant 0 : index
    %c0_247 = arith.constant 0 : index
    %199 = vector.load %arg4[%c0_244, %c3_245, %c0_246, %c0_247] : memref<2x5x84x80xf32, #tpu.memory_space<vmem>>, vector<1x1x84x80xf32>
    %200 = vector.shape_cast %199 : vector<1x1x84x80xf32> to vector<84x80xf32>
    %cst_248 = arith.constant dense<0.000000e+00> : vector<5x80xf32>
    %201 = tpu.matmul %198, %200, %cst_248 {dimension_numbers = #tpu.dot_dimension_numbers<[1], [0], [0], [1], [0, 0, 1, 1], [], []>} : vector<5x84xf32>, vector<84x80xf32>, vector<5x80xf32> -> vector<5x80xf32>
    %202 = arith.addf %196, %201 : vector<5x80xf32>
    %c0_249 = arith.constant 0 : index
    %c2_250 = arith.constant 2 : index
    %c0_251 = arith.constant 0 : index
    %203 = vector.load %arg13[%c0_249, %c2_250, %c0_251] : memref<2x7x84xf32, #tpu.memory_space<vmem>>, vector<1x5x84xf32>
    %204 = vector.shape_cast %203 : vector<1x5x84xf32> to vector<5x84xf32>
    %c0_252 = arith.constant 0 : index
    %c4_253 = arith.constant 4 : index
    %c0_254 = arith.constant 0 : index
    %c0_255 = arith.constant 0 : index
    %205 = vector.load %arg4[%c0_252, %c4_253, %c0_254, %c0_255] : memref<2x5x84x80xf32, #tpu.memory_space<vmem>>, vector<1x1x84x80xf32>
    %206 = vector.shape_cast %205 : vector<1x1x84x80xf32> to vector<84x80xf32>
    %cst_256 = arith.constant dense<0.000000e+00> : vector<5x80xf32>
    %207 = tpu.matmul %204, %206, %cst_256 {dimension_numbers = #tpu.dot_dimension_numbers<[1], [0], [0], [1], [0, 0, 1, 1], [], []>} : vector<5x84xf32>, vector<84x80xf32>, vector<5x80xf32> -> vector<5x80xf32>
    %208 = arith.addf %202, %207 : vector<5x80xf32>
    %c0_257 = arith.constant 0 : index
    %c0_258 = arith.constant 0 : index
    %c0_259 = arith.constant 0 : index
    %209 = vector.load %arg13[%c0_257, %c0_258, %c0_259] : memref<2x7x84xf32, #tpu.memory_space<vmem>>, vector<1x5x84xf32>
    %210 = vector.shape_cast %209 : vector<1x5x84xf32> to vector<5x84xf32>
    %c1_260 = arith.constant 1 : index
    %c0_261 = arith.constant 0 : index
    %c0_262 = arith.constant 0 : index
    %c0_263 = arith.constant 0 : index
    %211 = vector.load %arg4[%c1_260, %c0_261, %c0_262, %c0_263] : memref<2x5x84x80xf32, #tpu.memory_space<vmem>>, vector<1x1x84x80xf32>
    %212 = vector.shape_cast %211 : vector<1x1x84x80xf32> to vector<84x80xf32>
    %cst_264 = arith.constant dense<0.000000e+00> : vector<5x80xf32>
    %213 = tpu.matmul %210, %212, %cst_264 {dimension_numbers = #tpu.dot_dimension_numbers<[1], [0], [0], [1], [0, 0, 1, 1], [], []>} : vector<5x84xf32>, vector<84x80xf32>, vector<5x80xf32> -> vector<5x80xf32>
    %c1_265 = arith.constant 1 : index
    %c0_266 = arith.constant 0 : index
    %c0_267 = arith.constant 0 : index
    %214 = vector.load %arg13[%c1_265, %c0_266, %c0_267] : memref<2x7x84xf32, #tpu.memory_space<vmem>>, vector<1x5x84xf32>
    %215 = vector.shape_cast %214 : vector<1x5x84xf32> to vector<5x84xf32>
    %c1_268 = arith.constant 1 : index
    %c1_269 = arith.constant 1 : index
    %c0_270 = arith.constant 0 : index
    %c0_271 = arith.constant 0 : index
    %216 = vector.load %arg4[%c1_268, %c1_269, %c0_270, %c0_271] : memref<2x5x84x80xf32, #tpu.memory_space<vmem>>, vector<1x1x84x80xf32>
    %217 = vector.shape_cast %216 : vector<1x1x84x80xf32> to vector<84x80xf32>
    %cst_272 = arith.constant dense<0.000000e+00> : vector<5x80xf32>
    %218 = tpu.matmul %215, %217, %cst_272 {dimension_numbers = #tpu.dot_dimension_numbers<[1], [0], [0], [1], [0, 0, 1, 1], [], []>} : vector<5x84xf32>, vector<84x80xf32>, vector<5x80xf32> -> vector<5x80xf32>
    %219 = arith.addf %213, %218 : vector<5x80xf32>
    %c0_273 = arith.constant 0 : index
    %c1_274 = arith.constant 1 : index
    %c0_275 = arith.constant 0 : index
    %220 = vector.load %arg13[%c0_273, %c1_274, %c0_275] : memref<2x7x84xf32, #tpu.memory_space<vmem>>, vector<1x5x84xf32>
    %221 = vector.shape_cast %220 : vector<1x5x84xf32> to vector<5x84xf32>
    %c1_276 = arith.constant 1 : index
    %c2_277 = arith.constant 2 : index
    %c0_278 = arith.constant 0 : index
    %c0_279 = arith.constant 0 : index
    %222 = vector.load %arg4[%c1_276, %c2_277, %c0_278, %c0_279] : memref<2x5x84x80xf32, #tpu.memory_space<vmem>>, vector<1x1x84x80xf32>
    %223 = vector.shape_cast %222 : vector<1x1x84x80xf32> to vector<84x80xf32>
    %cst_280 = arith.constant dense<0.000000e+00> : vector<5x80xf32>
    %224 = tpu.matmul %221, %223, %cst_280 {dimension_numbers = #tpu.dot_dimension_numbers<[1], [0], [0], [1], [0, 0, 1, 1], [], []>} : vector<5x84xf32>, vector<84x80xf32>, vector<5x80xf32> -> vector<5x80xf32>
    %225 = arith.addf %219, %224 : vector<5x80xf32>
    %c1_281 = arith.constant 1 : index
    %c1_282 = arith.constant 1 : index
    %c0_283 = arith.constant 0 : index
    %226 = vector.load %arg13[%c1_281, %c1_282, %c0_283] : memref<2x7x84xf32, #tpu.memory_space<vmem>>, vector<1x5x84xf32>
    %227 = vector.shape_cast %226 : vector<1x5x84xf32> to vector<5x84xf32>
    %c1_284 = arith.constant 1 : index
    %c3_285 = arith.constant 3 : index
    %c0_286 = arith.constant 0 : index
    %c0_287 = arith.constant 0 : index
    %228 = vector.load %arg4[%c1_284, %c3_285, %c0_286, %c0_287] : memref<2x5x84x80xf32, #tpu.memory_space<vmem>>, vector<1x1x84x80xf32>
    %229 = vector.shape_cast %228 : vector<1x1x84x80xf32> to vector<84x80xf32>
    %cst_288 = arith.constant dense<0.000000e+00> : vector<5x80xf32>
    %230 = tpu.matmul %227, %229, %cst_288 {dimension_numbers = #tpu.dot_dimension_numbers<[1], [0], [0], [1], [0, 0, 1, 1], [], []>} : vector<5x84xf32>, vector<84x80xf32>, vector<5x80xf32> -> vector<5x80xf32>
    %231 = arith.addf %225, %230 : vector<5x80xf32>
    %c0_289 = arith.constant 0 : index
    %c2_290 = arith.constant 2 : index
    %c0_291 = arith.constant 0 : index
    %232 = vector.load %arg13[%c0_289, %c2_290, %c0_291] : memref<2x7x84xf32, #tpu.memory_space<vmem>>, vector<1x5x84xf32>
    %233 = vector.shape_cast %232 : vector<1x5x84xf32> to vector<5x84xf32>
    %c1_292 = arith.constant 1 : index
    %c4_293 = arith.constant 4 : index
    %c0_294 = arith.constant 0 : index
    %c0_295 = arith.constant 0 : index
    %234 = vector.load %arg4[%c1_292, %c4_293, %c0_294, %c0_295] : memref<2x5x84x80xf32, #tpu.memory_space<vmem>>, vector<1x1x84x80xf32>
    %235 = vector.shape_cast %234 : vector<1x1x84x80xf32> to vector<84x80xf32>
    %cst_296 = arith.constant dense<0.000000e+00> : vector<5x80xf32>
    %236 = tpu.matmul %233, %235, %cst_296 {dimension_numbers = #tpu.dot_dimension_numbers<[1], [0], [0], [1], [0, 0, 1, 1], [], []>} : vector<5x84xf32>, vector<84x80xf32>, vector<5x80xf32> -> vector<5x80xf32>
    %237 = arith.addf %231, %236 : vector<5x80xf32>
    %c1_297 = arith.constant 1 : index
    %c0_298 = arith.constant 0 : index
    %c0_299 = arith.constant 0 : index
    %238 = vector.load %arg13[%c1_297, %c0_298, %c0_299] : memref<2x7x84xf32, #tpu.memory_space<vmem>>, vector<1x5x84xf32>
    %239 = vector.shape_cast %238 : vector<1x5x84xf32> to vector<5x84xf32>
    %c0_300 = arith.constant 0 : index
    %c0_301 = arith.constant 0 : index
    %c0_302 = arith.constant 0 : index
    %c0_303 = arith.constant 0 : index
    %240 = vector.load %arg4[%c0_300, %c0_301, %c0_302, %c0_303] : memref<2x5x84x80xf32, #tpu.memory_space<vmem>>, vector<1x1x84x80xf32>
    %241 = vector.shape_cast %240 : vector<1x1x84x80xf32> to vector<84x80xf32>
    %cst_304 = arith.constant dense<0.000000e+00> : vector<5x80xf32>
    %242 = tpu.matmul %239, %241, %cst_304 {dimension_numbers = #tpu.dot_dimension_numbers<[1], [0], [0], [1], [0, 0, 1, 1], [], []>} : vector<5x84xf32>, vector<84x80xf32>, vector<5x80xf32> -> vector<5x80xf32>
    %c0_305 = arith.constant 0 : index
    %c1_306 = arith.constant 1 : index
    %c0_307 = arith.constant 0 : index
    %243 = vector.load %arg13[%c0_305, %c1_306, %c0_307] : memref<2x7x84xf32, #tpu.memory_space<vmem>>, vector<1x5x84xf32>
    %244 = vector.shape_cast %243 : vector<1x5x84xf32> to vector<5x84xf32>
    %c0_308 = arith.constant 0 : index
    %c1_309 = arith.constant 1 : index
    %c0_310 = arith.constant 0 : index
    %c0_311 = arith.constant 0 : index
    %245 = vector.load %arg4[%c0_308, %c1_309, %c0_310, %c0_311] : memref<2x5x84x80xf32, #tpu.memory_space<vmem>>, vector<1x1x84x80xf32>
    %246 = vector.shape_cast %245 : vector<1x1x84x80xf32> to vector<84x80xf32>
    %cst_312 = arith.constant dense<0.000000e+00> : vector<5x80xf32>
    %247 = tpu.matmul %244, %246, %cst_312 {dimension_numbers = #tpu.dot_dimension_numbers<[1], [0], [0], [1], [0, 0, 1, 1], [], []>} : vector<5x84xf32>, vector<84x80xf32>, vector<5x80xf32> -> vector<5x80xf32>
    %248 = arith.addf %242, %247 : vector<5x80xf32>
    %c1_313 = arith.constant 1 : index
    %c1_314 = arith.constant 1 : index
    %c0_315 = arith.constant 0 : index
    %249 = vector.load %arg13[%c1_313, %c1_314, %c0_315] : memref<2x7x84xf32, #tpu.memory_space<vmem>>, vector<1x5x84xf32>
    %250 = vector.shape_cast %249 : vector<1x5x84xf32> to vector<5x84xf32>
    %c0_316 = arith.constant 0 : index
    %c2_317 = arith.constant 2 : index
    %c0_318 = arith.constant 0 : index
    %c0_319 = arith.constant 0 : index
    %251 = vector.load %arg4[%c0_316, %c2_317, %c0_318, %c0_319] : memref<2x5x84x80xf32, #tpu.memory_space<vmem>>, vector<1x1x84x80xf32>
    %252 = vector.shape_cast %251 : vector<1x1x84x80xf32> to vector<84x80xf32>
    %cst_320 = arith.constant dense<0.000000e+00> : vector<5x80xf32>
    %253 = tpu.matmul %250, %252, %cst_320 {dimension_numbers = #tpu.dot_dimension_numbers<[1], [0], [0], [1], [0, 0, 1, 1], [], []>} : vector<5x84xf32>, vector<84x80xf32>, vector<5x80xf32> -> vector<5x80xf32>
    %254 = arith.addf %248, %253 : vector<5x80xf32>
    %c0_321 = arith.constant 0 : index
    %c2_322 = arith.constant 2 : index
    %c0_323 = arith.constant 0 : index
    %255 = vector.load %arg13[%c0_321, %c2_322, %c0_323] : memref<2x7x84xf32, #tpu.memory_space<vmem>>, vector<1x5x84xf32>
    %256 = vector.shape_cast %255 : vector<1x5x84xf32> to vector<5x84xf32>
    %c0_324 = arith.constant 0 : index
    %c3_325 = arith.constant 3 : index
    %c0_326 = arith.constant 0 : index
    %c0_327 = arith.constant 0 : index
    %257 = vector.load %arg4[%c0_324, %c3_325, %c0_326, %c0_327] : memref<2x5x84x80xf32, #tpu.memory_space<vmem>>, vector<1x1x84x80xf32>
    %258 = vector.shape_cast %257 : vector<1x1x84x80xf32> to vector<84x80xf32>
    %cst_328 = arith.constant dense<0.000000e+00> : vector<5x80xf32>
    %259 = tpu.matmul %256, %258, %cst_328 {dimension_numbers = #tpu.dot_dimension_numbers<[1], [0], [0], [1], [0, 0, 1, 1], [], []>} : vector<5x84xf32>, vector<84x80xf32>, vector<5x80xf32> -> vector<5x80xf32>
    %260 = arith.addf %254, %259 : vector<5x80xf32>
    %c1_329 = arith.constant 1 : index
    %c2_330 = arith.constant 2 : index
    %c0_331 = arith.constant 0 : index
    %261 = vector.load %arg13[%c1_329, %c2_330, %c0_331] : memref<2x7x84xf32, #tpu.memory_space<vmem>>, vector<1x5x84xf32>
    %262 = vector.shape_cast %261 : vector<1x5x84xf32> to vector<5x84xf32>
    %c0_332 = arith.constant 0 : index
    %c4_333 = arith.constant 4 : index
    %c0_334 = arith.constant 0 : index
    %c0_335 = arith.constant 0 : index
    %263 = vector.load %arg4[%c0_332, %c4_333, %c0_334, %c0_335] : memref<2x5x84x80xf32, #tpu.memory_space<vmem>>, vector<1x1x84x80xf32>
    %264 = vector.shape_cast %263 : vector<1x1x84x80xf32> to vector<84x80xf32>
    %cst_336 = arith.constant dense<0.000000e+00> : vector<5x80xf32>
    %265 = tpu.matmul %262, %264, %cst_336 {dimension_numbers = #tpu.dot_dimension_numbers<[1], [0], [0], [1], [0, 0, 1, 1], [], []>} : vector<5x84xf32>, vector<84x80xf32>, vector<5x80xf32> -> vector<5x80xf32>
    %266 = arith.addf %260, %265 : vector<5x80xf32>
    %c1_337 = arith.constant 1 : index
    %c0_338 = arith.constant 0 : index
    %c0_339 = arith.constant 0 : index
    %267 = vector.load %arg13[%c1_337, %c0_338, %c0_339] : memref<2x7x84xf32, #tpu.memory_space<vmem>>, vector<1x5x84xf32>
    %268 = vector.shape_cast %267 : vector<1x5x84xf32> to vector<5x84xf32>
    %c1_340 = arith.constant 1 : index
    %c0_341 = arith.constant 0 : index
    %c0_342 = arith.constant 0 : index
    %c0_343 = arith.constant 0 : index
    %269 = vector.load %arg4[%c1_340, %c0_341, %c0_342, %c0_343] : memref<2x5x84x80xf32, #tpu.memory_space<vmem>>, vector<1x1x84x80xf32>
    %270 = vector.shape_cast %269 : vector<1x1x84x80xf32> to vector<84x80xf32>
    %cst_344 = arith.constant dense<0.000000e+00> : vector<5x80xf32>
    %271 = tpu.matmul %268, %270, %cst_344 {dimension_numbers = #tpu.dot_dimension_numbers<[1], [0], [0], [1], [0, 0, 1, 1], [], []>} : vector<5x84xf32>, vector<84x80xf32>, vector<5x80xf32> -> vector<5x80xf32>
    %c0_345 = arith.constant 0 : index
    %c1_346 = arith.constant 1 : index
    %c0_347 = arith.constant 0 : index
    %272 = vector.load %arg13[%c0_345, %c1_346, %c0_347] : memref<2x7x84xf32, #tpu.memory_space<vmem>>, vector<1x5x84xf32>
    %273 = vector.shape_cast %272 : vector<1x5x84xf32> to vector<5x84xf32>
    %c1_348 = arith.constant 1 : index
    %c1_349 = arith.constant 1 : index
    %c0_350 = arith.constant 0 : index
    %c0_351 = arith.constant 0 : index
    %274 = vector.load %arg4[%c1_348, %c1_349, %c0_350, %c0_351] : memref<2x5x84x80xf32, #tpu.memory_space<vmem>>, vector<1x1x84x80xf32>
    %275 = vector.shape_cast %274 : vector<1x1x84x80xf32> to vector<84x80xf32>
    %cst_352 = arith.constant dense<0.000000e+00> : vector<5x80xf32>
    %276 = tpu.matmul %273, %275, %cst_352 {dimension_numbers = #tpu.dot_dimension_numbers<[1], [0], [0], [1], [0, 0, 1, 1], [], []>} : vector<5x84xf32>, vector<84x80xf32>, vector<5x80xf32> -> vector<5x80xf32>
    %277 = arith.addf %271, %276 : vector<5x80xf32>
    %c1_353 = arith.constant 1 : index
    %c1_354 = arith.constant 1 : index
    %c0_355 = arith.constant 0 : index
    %278 = vector.load %arg13[%c1_353, %c1_354, %c0_355] : memref<2x7x84xf32, #tpu.memory_space<vmem>>, vector<1x5x84xf32>
    %279 = vector.shape_cast %278 : vector<1x5x84xf32> to vector<5x84xf32>
    %c1_356 = arith.constant 1 : index
    %c2_357 = arith.constant 2 : index
    %c0_358 = arith.constant 0 : index
    %c0_359 = arith.constant 0 : index
    %280 = vector.load %arg4[%c1_356, %c2_357, %c0_358, %c0_359] : memref<2x5x84x80xf32, #tpu.memory_space<vmem>>, vector<1x1x84x80xf32>
    %281 = vector.shape_cast %280 : vector<1x1x84x80xf32> to vector<84x80xf32>
    %cst_360 = arith.constant dense<0.000000e+00> : vector<5x80xf32>
    %282 = tpu.matmul %279, %281, %cst_360 {dimension_numbers = #tpu.dot_dimension_numbers<[1], [0], [0], [1], [0, 0, 1, 1], [], []>} : vector<5x84xf32>, vector<84x80xf32>, vector<5x80xf32> -> vector<5x80xf32>
    %283 = arith.addf %277, %282 : vector<5x80xf32>
    %c0_361 = arith.constant 0 : index
    %c2_362 = arith.constant 2 : index
    %c0_363 = arith.constant 0 : index
    %284 = vector.load %arg13[%c0_361, %c2_362, %c0_363] : memref<2x7x84xf32, #tpu.memory_space<vmem>>, vector<1x5x84xf32>
    %285 = vector.shape_cast %284 : vector<1x5x84xf32> to vector<5x84xf32>
    %c1_364 = arith.constant 1 : index
    %c3_365 = arith.constant 3 : index
    %c0_366 = arith.constant 0 : index
    %c0_367 = arith.constant 0 : index
    %286 = vector.load %arg4[%c1_364, %c3_365, %c0_366, %c0_367] : memref<2x5x84x80xf32, #tpu.memory_space<vmem>>, vector<1x1x84x80xf32>
    %287 = vector.shape_cast %286 : vector<1x1x84x80xf32> to vector<84x80xf32>
    %cst_368 = arith.constant dense<0.000000e+00> : vector<5x80xf32>
    %288 = tpu.matmul %285, %287, %cst_368 {dimension_numbers = #tpu.dot_dimension_numbers<[1], [0], [0], [1], [0, 0, 1, 1], [], []>} : vector<5x84xf32>, vector<84x80xf32>, vector<5x80xf32> -> vector<5x80xf32>
    %289 = arith.addf %283, %288 : vector<5x80xf32>
    %c1_369 = arith.constant 1 : index
    %c2_370 = arith.constant 2 : index
    %c0_371 = arith.constant 0 : index
    %290 = vector.load %arg13[%c1_369, %c2_370, %c0_371] : memref<2x7x84xf32, #tpu.memory_space<vmem>>, vector<1x5x84xf32>
    %291 = vector.shape_cast %290 : vector<1x5x84xf32> to vector<5x84xf32>
    %c1_372 = arith.constant 1 : index
    %c4_373 = arith.constant 4 : index
    %c0_374 = arith.constant 0 : index
    %c0_375 = arith.constant 0 : index
    %292 = vector.load %arg4[%c1_372, %c4_373, %c0_374, %c0_375] : memref<2x5x84x80xf32, #tpu.memory_space<vmem>>, vector<1x1x84x80xf32>
    %293 = vector.shape_cast %292 : vector<1x1x84x80xf32> to vector<84x80xf32>
    %cst_376 = arith.constant dense<0.000000e+00> : vector<5x80xf32>
    %294 = tpu.matmul %291, %293, %cst_376 {dimension_numbers = #tpu.dot_dimension_numbers<[1], [0], [0], [1], [0, 0, 1, 1], [], []>} : vector<5x84xf32>, vector<84x80xf32>, vector<5x80xf32> -> vector<5x80xf32>
    %295 = arith.addf %289, %294 : vector<5x80xf32>
    %296 = arith.maximumf %208, %237 : vector<5x80xf32>
    %297 = arith.maximumf %266, %295 : vector<5x80xf32>
    %298 = arith.maximumf %296, %297 : vector<5x80xf32>
    %c0_377 = arith.constant 0 : index
    %c0_378 = arith.constant 0 : index
    %299 = vector.load %arg5[%c0_377, %c0_378] : memref<1x80xf32, #tpu.memory_space<vmem>>, vector<1x80xf32>
    %300 = vector.broadcast %299 : vector<1x80xf32> to vector<5x80xf32>
    %301 = arith.addf %298, %300 : vector<5x80xf32>
    %cst_379 = arith.constant 0.000000e+00 : f32
    %302 = vector.broadcast %cst_379 : f32 to vector<5x80xf32>
    %303 = arith.maximumf %301, %302 : vector<5x80xf32>
    %c0_380 = arith.constant 0 : index
    %c0_381 = arith.constant 0 : index
    %304 = vector.load %arg7[%c0_380, %c0_381] : memref<1x128xf32, #tpu.memory_space<vmem>>, vector<1x128xf32>
    %305 = vector.extract_strided_slice %303 {offsets = [0, 0], sizes = [1, 80], strides = [1, 1]} : vector<5x80xf32> to vector<1x80xf32>
    %c0_382 = arith.constant 0 : index
    %c0_383 = arith.constant 0 : index
    %c0_384 = arith.constant 0 : index
    %306 = vector.load %arg6[%c0_382, %c0_383, %c0_384] : memref<5x80x128xf32, #tpu.memory_space<vmem>>, vector<1x80x128xf32>
    %307 = vector.shape_cast %306 : vector<1x80x128xf32> to vector<80x128xf32>
    %cst_385 = arith.constant dense<0.000000e+00> : vector<1x128xf32>
    %308 = tpu.matmul %305, %307, %cst_385 {dimension_numbers = #tpu.dot_dimension_numbers<[1], [0], [0], [1], [0, 0, 1, 1], [], []>} : vector<1x80xf32>, vector<80x128xf32>, vector<1x128xf32> -> vector<1x128xf32>
    %309 = arith.addf %304, %308 : vector<1x128xf32>
    %310 = vector.extract_strided_slice %303 {offsets = [1, 0], sizes = [1, 80], strides = [1, 1]} : vector<5x80xf32> to vector<1x80xf32>
    %c1_386 = arith.constant 1 : index
    %c0_387 = arith.constant 0 : index
    %c0_388 = arith.constant 0 : index
    %311 = vector.load %arg6[%c1_386, %c0_387, %c0_388] : memref<5x80x128xf32, #tpu.memory_space<vmem>>, vector<1x80x128xf32>
    %312 = vector.shape_cast %311 : vector<1x80x128xf32> to vector<80x128xf32>
    %cst_389 = arith.constant dense<0.000000e+00> : vector<1x128xf32>
    %313 = tpu.matmul %310, %312, %cst_389 {dimension_numbers = #tpu.dot_dimension_numbers<[1], [0], [0], [1], [0, 0, 1, 1], [], []>} : vector<1x80xf32>, vector<80x128xf32>, vector<1x128xf32> -> vector<1x128xf32>
    %314 = arith.addf %309, %313 : vector<1x128xf32>
    %315 = vector.extract_strided_slice %303 {offsets = [2, 0], sizes = [1, 80], strides = [1, 1]} : vector<5x80xf32> to vector<1x80xf32>
    %c2_390 = arith.constant 2 : index
    %c0_391 = arith.constant 0 : index
    %c0_392 = arith.constant 0 : index
    %316 = vector.load %arg6[%c2_390, %c0_391, %c0_392] : memref<5x80x128xf32, #tpu.memory_space<vmem>>, vector<1x80x128xf32>
    %317 = vector.shape_cast %316 : vector<1x80x128xf32> to vector<80x128xf32>
    %cst_393 = arith.constant dense<0.000000e+00> : vector<1x128xf32>
    %318 = tpu.matmul %315, %317, %cst_393 {dimension_numbers = #tpu.dot_dimension_numbers<[1], [0], [0], [1], [0, 0, 1, 1], [], []>} : vector<1x80xf32>, vector<80x128xf32>, vector<1x128xf32> -> vector<1x128xf32>
    %319 = arith.addf %314, %318 : vector<1x128xf32>
    %320 = vector.extract_strided_slice %303 {offsets = [3, 0], sizes = [1, 80], strides = [1, 1]} : vector<5x80xf32> to vector<1x80xf32>
    %c3_394 = arith.constant 3 : index
    %c0_395 = arith.constant 0 : index
    %c0_396 = arith.constant 0 : index
    %321 = vector.load %arg6[%c3_394, %c0_395, %c0_396] : memref<5x80x128xf32, #tpu.memory_space<vmem>>, vector<1x80x128xf32>
    %322 = vector.shape_cast %321 : vector<1x80x128xf32> to vector<80x128xf32>
    %cst_397 = arith.constant dense<0.000000e+00> : vector<1x128xf32>
    %323 = tpu.matmul %320, %322, %cst_397 {dimension_numbers = #tpu.dot_dimension_numbers<[1], [0], [0], [1], [0, 0, 1, 1], [], []>} : vector<1x80xf32>, vector<80x128xf32>, vector<1x128xf32> -> vector<1x128xf32>
    %324 = arith.addf %319, %323 : vector<1x128xf32>
    %325 = vector.extract_strided_slice %303 {offsets = [4, 0], sizes = [1, 80], strides = [1, 1]} : vector<5x80xf32> to vector<1x80xf32>
    %c4_398 = arith.constant 4 : index
    %c0_399 = arith.constant 0 : index
    %c0_400 = arith.constant 0 : index
    %326 = vector.load %arg6[%c4_398, %c0_399, %c0_400] : memref<5x80x128xf32, #tpu.memory_space<vmem>>, vector<1x80x128xf32>
    %327 = vector.shape_cast %326 : vector<1x80x128xf32> to vector<80x128xf32>
    %cst_401 = arith.constant dense<0.000000e+00> : vector<1x128xf32>
    %328 = tpu.matmul %325, %327, %cst_401 {dimension_numbers = #tpu.dot_dimension_numbers<[1], [0], [0], [1], [0, 0, 1, 1], [], []>} : vector<1x80xf32>, vector<80x128xf32>, vector<1x128xf32> -> vector<1x128xf32>
    %329 = arith.addf %324, %328 : vector<1x128xf32>
    %cst_402 = arith.constant 0.000000e+00 : f32
    %330 = vector.broadcast %cst_402 : f32 to vector<1x128xf32>
    %331 = arith.maximumf %329, %330 : vector<1x128xf32>
    %c0_403 = arith.constant 0 : index
    %c0_404 = arith.constant 0 : index
    %332 = vector.load %arg8[%c0_403, %c0_404] : memref<128x128xf32, #tpu.memory_space<vmem>>, vector<128x128xf32>
    %cst_405 = arith.constant dense<0.000000e+00> : vector<1x128xf32>
    %333 = tpu.matmul %331, %332, %cst_405 {dimension_numbers = #tpu.dot_dimension_numbers<[1], [0], [0], [1], [0, 0, 1, 1], [], []>} : vector<1x128xf32>, vector<128x128xf32>, vector<1x128xf32> -> vector<1x128xf32>
    %c0_406 = arith.constant 0 : index
    %c0_407 = arith.constant 0 : index
    %334 = vector.load %arg9[%c0_406, %c0_407] : memref<1x128xf32, #tpu.memory_space<vmem>>, vector<1x128xf32>
    %335 = arith.addf %333, %334 : vector<1x128xf32>
    %cst_408 = arith.constant 0.000000e+00 : f32
    %336 = vector.broadcast %cst_408 : f32 to vector<1x128xf32>
    %337 = arith.maximumf %335, %336 : vector<1x128xf32>
    %c0_409 = arith.constant 0 : index
    %c0_410 = arith.constant 0 : index
    %338 = vector.load %arg10[%c0_409, %c0_410] : memref<128x128xf32, #tpu.memory_space<vmem>>, vector<128x128xf32>
    %cst_411 = arith.constant dense<0.000000e+00> : vector<1x128xf32>
    %339 = tpu.matmul %337, %338, %cst_411 {dimension_numbers = #tpu.dot_dimension_numbers<[1], [0], [0], [1], [0, 0, 1, 1], [], []>} : vector<1x128xf32>, vector<128x128xf32>, vector<1x128xf32> -> vector<1x128xf32>
    %c0_412 = arith.constant 0 : index
    %c0_413 = arith.constant 0 : index
    %340 = vector.load %arg11[%c0_412, %c0_413] : memref<1x128xf32, #tpu.memory_space<vmem>>, vector<1x128xf32>
    %341 = arith.addf %339, %340 : vector<1x128xf32>
    %342 = vector.shape_cast %341 : vector<1x128xf32> to vector<1x128xf32>
    %343 = vector.broadcast %342 : vector<1x128xf32> to vector<8x128xf32>
    %c0_414 = arith.constant 0 : index
    %c0_415 = arith.constant 0 : index
    %c0_416 = arith.constant 0 : index
    %344 = vector.load %arg12[%c0_414, %c0_415, %c0_416] : memref<1x8x128xf32, #tpu.memory_space<vmem>>, vector<1x8x128xf32>
    %345 = vector.shape_cast %344 : vector<1x8x128xf32> to vector<8x128xf32>
    %346 = vector.shape_cast %343 : vector<8x128xf32> to vector<1x8x128xf32>
    tpu.vector_store %arg12[%c0_414, %c0_415, %c0_416], %346 {strides = array<i32>} : memref<1x8x128xf32, #tpu.memory_space<vmem>>, vector<1x8x128xf32>,
    return
  }
  func.func @transform_0(%arg0: i32) -> (i32, i32, i32, i32) {
    %c0_i32 = arith.constant 0 : i32
    %c0_i32_0 = arith.constant 0 : i32
    %c0_i32_1 = arith.constant 0 : i32
    %c0_i32_2 = arith.constant 0 : i32
    return %arg0, %c0_i32, %c0_i32_0, %c0_i32_1 : i32, i32, i32, i32
  }
  func.func @transform_1(%arg0: i32) -> (i32, i32, i32, i32) {
    %c0_i32 = arith.constant 0 : i32
    %c0_i32_0 = arith.constant 0 : i32
    %c0_i32_1 = arith.constant 0 : i32
    %c0_i32_2 = arith.constant 0 : i32
    %c0_i32_3 = arith.constant 0 : i32
    return %c0_i32, %c0_i32_0, %c0_i32_1, %c0_i32_2 : i32, i32, i32, i32
  }
  func.func @transform_2(%arg0: i32) -> (i32, i32) {
    %c0_i32 = arith.constant 0 : i32
    %c0_i32_0 = arith.constant 0 : i32
    %c0_i32_1 = arith.constant 0 : i32
    return %c0_i32, %c0_i32_0 : i32, i32
  }
  func.func @transform_3(%arg0: i32) -> (i32, i32, i32, i32) {
    %c0_i32 = arith.constant 0 : i32
    %c0_i32_0 = arith.constant 0 : i32
    %c0_i32_1 = arith.constant 0 : i32
    %c0_i32_2 = arith.constant 0 : i32
    %c0_i32_3 = arith.constant 0 : i32
    return %c0_i32, %c0_i32_0, %c0_i32_1, %c0_i32_2 : i32, i32, i32, i32
  }
  func.func @transform_4(%arg0: i32) -> (i32, i32) {
    %c0_i32 = arith.constant 0 : i32
    %c0_i32_0 = arith.constant 0 : i32
    %c0_i32_1 = arith.constant 0 : i32
    return %c0_i32, %c0_i32_0 : i32, i32
  }
  func.func @transform_5(%arg0: i32) -> (i32, i32, i32) {
    %c0_i32 = arith.constant 0 : i32
    %c0_i32_0 = arith.constant 0 : i32
    %c0_i32_1 = arith.constant 0 : i32
    %c0_i32_2 = arith.constant 0 : i32
    return %c0_i32, %c0_i32_0, %c0_i32_1 : i32, i32, i32
  }
  func.func @transform_6(%arg0: i32) -> (i32, i32) {
    %c0_i32 = arith.constant 0 : i32
    %c0_i32_0 = arith.constant 0 : i32
    %c0_i32_1 = arith.constant 0 : i32
    return %c0_i32, %c0_i32_0 : i32, i32
  }
  func.func @transform_7(%arg0: i32) -> (i32, i32) {
    %c0_i32 = arith.constant 0 : i32
    %c0_i32_0 = arith.constant 0 : i32
    %c0_i32_1 = arith.constant 0 : i32
    return %c0_i32, %c0_i32_0 : i32, i32
  }
  func.func @transform_8(%arg0: i32) -> (i32, i32) {
    %c0_i32 = arith.constant 0 : i32
    %c0_i32_0 = arith.constant 0 : i32
    %c0_i32_1 = arith.constant 0 : i32
    return %c0_i32, %c0_i32_0 : i32, i32
  }
  func.func @transform_9(%arg0: i32) -> (i32, i32) {
    %c0_i32 = arith.constant 0 : i32
    %c0_i32_0 = arith.constant 0 : i32
    %c0_i32_1 = arith.constant 0 : i32
    return %c0_i32, %c0_i32_0 : i32, i32
  }
  func.func @transform_10(%arg0: i32) -> (i32, i32) {
    %c0_i32 = arith.constant 0 : i32
    %c0_i32_0 = arith.constant 0 : i32
    %c0_i32_1 = arith.constant 0 : i32
    return %c0_i32, %c0_i32_0 : i32, i32
  }
  func.func @transform_11(%arg0: i32) -> (i32, i32, i32) {
    %c0_i32 = arith.constant 0 : i32
    %c0_i32_0 = arith.constant 0 : i32
    %c0_i32_1 = arith.constant 0 : i32
    return %arg0, %c0_i32, %c0_i32_0 : i32, i32, i32
  }
}

</mosaic_0001>

<bundles_post_ra>
// kernel: net_forward.1
= control target key start
LH: loop header
LB: loop body
LE: loop exit
PB: predicated region body
PF: predicated region fallthrough
CT: control target
= control target key end

     0   :  { %s2415_s17 = smov 0   ;;  %s4610_s0 = inlined_call_operand.vmem [shape: f32[2,2,16,96], index: 0, kind: input, shape index: {}]   ;;  %s4611_s1 = inlined_call_operand.vmem [shape: f32[2,5,96,84], index: 1, kind: input, shape index: {}]   ;;  %s4612_s2 = inlined_call_operand.vmem [shape: f32[1,84], index: 2, kind: input, shape index: {}]   ;;  %s4613_s3 = inlined_call_operand.vmem [shape: f32[2,5,84,80], index: 3, kind: input, shape index: {}]   ;;  %s4614_s4 = inlined_call_operand.vmem [shape: f32[1,80], index: 4, kind: input, shape index: {}]   ;;  %s4615_s5 = inlined_call_operand.vmem [shape: f32[5,80,128], index: 5, kind: input, shape index: {}]   ;;  %s4616_s6 = inlined_call_operand.vmem [shape: f32[1,128], index: 6, kind: input, shape index: {}]   ;;  %s4617_s7 = inlined_call_operand.vmem [shape: f32[128,128], index: 7, kind: input, shape index: {}]   ;;  %s4618_s8 = inlined_call_operand.vmem [shape: f32[1,128], index: 8, kind: input, shape index: {}]   ;;  %s4619_s9 = inlined_call_operand.vmem [shape: f32[128,128], index: 9, kind: input, shape index: {}]   ;;  %s4620_s10 = inlined_call_operand.vmem [shape: f32[1,128], index: 10, kind: input, shape index: {}]   ;;  %s4621_s11 = inlined_call_operand.vmem [shape: f32[2,8,128], index: 11, kind: output, shape index: {}]  }
   0x1 LB: > { %s1988_s18 = sadd.s32 4294967295, %s2353_s17   ;;  %p1992_p0 = scmp.ge.s32.totalorder %s2353_s17, 1  ;;  %s2353_s17 = sphi %s2415_s17, %s21_s17  }
   0x2   : > { %p337_p1 = scmp.lt.s32.totalorder %s2353_s17, 3 }
   0x4   : > { %p338_p2 = pnand %p1992_p0, %p337_p1 }
   0x6   : > { %341 = sbr.rel (%p338_p2) target bundleno = 942 (0x3ae), region = 64 }
   0xb   : > { %v2426_v0 = vld [vmem:[%s4611_s1 + $0xb8] sm:$0xff]  ;;  %v2436_v2 = vld [vmem:[%s4611_s1 + $0xb0] sm:$0xff]  ;;  %v2460_v6 = vld [vmem:[%s4611_s1 + $0xa8] sm:$0xff]  ;;  %p2707_p3 = scmp.lt.s32.totalorder %s1988_s18, 1  ;;  %vm415_vm0 = vcmask 785408   ;;  %vm1114_vm1 = vcmask 1043456  }
   0xc   : > { %v2431_v1 = vld [vmem:[%s4611_s1 + $0x118] sm:$0xff]  ;;  %426 = vmatpush.msra.mxu0 %v2426_v0  ;;  %v2448_v4 = vld [vmem:[%s4611_s1 + $0x110] sm:$0xff]  ;;  %v2470_v8 = vld [vmem:[%s4611_s1 + $0x108] sm:$0xff]  ;;  %vm1062_vm2 = vcmask 679936   ;;  %vm1065_vm3 = vcmask 680961   ;;  %vm1067_vm4 = vcmask 681986  }
   0xd   : > { %499 = vmatpush.msra.mxu2 %v2431_v1  ;;  %v2443_v3 = vld [vmem:[%s4611_s1 + $0x58] sm:$0xff]  ;;  %v2465_v7 = vld [vmem:[%s4611_s1 + $0x50] sm:$0xff]  ;;  %v2482_v10 = vld [vmem:[%s4611_s1 + $0x48] sm:$0xff]  ;;  %s4933_s18 = smov (!%p2707_p3, %s1988_s18), 1  ;;  %vm1069_vm5 = vcmask 683011   ;;  %vm1071_vm6 = vcmask 684036  }
   0xe   : > { %v2453_v5 = vld [vmem:[%s4611_s1 + $0x178] sm:$0xff]  ;;  %455 = vmatpush.msra.mxu1 %v2443_v3  ;;  %427 = vmatpush.msra.mxu0 %v2436_v2  ;;  %v2477_v9 = vld [vmem:[%s4611_s1 + $0x170] sm:$0xff]  ;;  %v2489_v11 = vld [vmem:[%s4611_s1 + $0xa0] sm:$0xff]  ;;  %s2336_s29 = sshll.u32 %s4933_s18, 5  ;;  %vm1073_vm7 = vcmask 685061   ;;  %vm1077_vm8 = vcmask 687111  }
   0xf   : > { %545 = vmatpush.msra.mxu3 %v2453_v5  ;;  %500 = vmatpush.msra.mxu2 %v2448_v4  ;;  %v2494_v12 = vld [vmem:[%s4611_s1 + $0x100] sm:$0xff]  ;;  %v2499_v13 = vld [vmem:[%s4611_s1 + $0x168] sm:$0xff]  ;;  %v2518_v16 = vld [vmem:[%s4611_s1 + $0x98] sm:$0xff]  ;;  %s2853_s27 = scalar_lea.vmem %s4610_s0, %s2336_s29  ;;  %vm1075_vm9 = vcmask 686086   ;;  %vm1110_vm10 = vcmask 687104   ;;  %vm1692_vm11 = vcmask 654336  }
  0x10   : > { %456 = vmatpush.msra.mxu1 %v2465_v7  ;;  %428 = vmatpush.msra.mxu0 %v2460_v6  ;;  %v2506_v14 = vld [vmem:[%s4611_s1 + $0x40] sm:$0xff]  ;;  %v2523_v17 = vld [vmem:[%s4611_s1 + $0xf8] sm:$0xff]  ;;  %v2542_v20 = vld [vmem:[%s4611_s1 + $0x90] sm:$0xff]  ;;  %s1995_s30 = sshll.u32 %s4933_s18, 3 }
  0x11   : > { %546 = vmatpush.msra.mxu3 %v2477_v9  ;;  %501 = vmatpush.msra.mxu2 %v2470_v8  ;;  %v2511_v15 = vld [vmem:[%s4611_s1 + $0x160] sm:$0xff]  ;;  %v2530_v18 = vld [vmem:[%s4611_s1 + $0x38] sm:$0xff]  ;;  %v2547_v21 = vld [vmem:[%s4611_s1 + $0xf0] sm:$0xff]  ;;  %s384_s20 = scalar_lea.vmem %s4621_s11, %s1995_s30 }
  0x12   : > { %457 = vmatpush.msra.mxu1 %v2482_v10  ;;  %429 = vmatpush.msra.mxu0 %v2489_v11  ;;  %v2535_v19 = vld [vmem:[%s4611_s1 + $0x158] sm:$0xff]  ;;  %v2554_v22 = vld [vmem:[%s4611_s1 + $0x30] sm:$0xff]  ;;  %v2566_v24 = vld [vmem:[%s4611_s1 + $0x88] sm:$0xff] }
  0x13   : > { %547 = vmatpush.msra.mxu3 %v2499_v13  ;;  %502 = vmatpush.msra.mxu2 %v2494_v12  ;;  %v2559_v23 = vld [vmem:[%s4611_s1 + $0x150] sm:$0xff]  ;;  %v2571_v25 = vld [vmem:[%s4611_s1 + $0xe8] sm:$0xff]  ;;  %v2590_v28 = vld [vmem:[%s4611_s1 + $0x80] sm:$0xff] }
  0x14   : > { %458 = vmatpush.msra.mxu1 %v2506_v14  ;;  %430 = vmatpush.msra.mxu0 %v2518_v16  ;;  %v2578_v26 = vld [vmem:[%s4611_s1 + $0x28] sm:$0xff]  ;;  %v2595_v29 = vld [vmem:[%s4611_s1 + $0xe0] sm:$0xff]  ;;  %v2614_v32 = vld [vmem:[%s4611_s1 + $0x78] sm:$0xff] }
  0x15   : > { %548 = vmatpush.msra.mxu3 %v2511_v15  ;;  %503 = vmatpush.msra.mxu2 %v2523_v17  ;;  %v2583_v27 = vld [vmem:[%s4611_s1 + $0x148] sm:$0xff]  ;;  %v2602_v30 = vld [vmem:[%s4611_s1 + $0x20] sm:$0xff]  ;;  %v2619_v33 = vld [vmem:[%s4611_s1 + $0xd8] sm:$0xff] }
  0x16   : > { %459 = vmatpush.msra.mxu1 %v2530_v18  ;;  %431 = vmatpush.msra.mxu0 %v2542_v20  ;;  %4725 = vst [vmem:[#allocation3_spill] sm:$0xff] %v2583_v27  ;;  %v2607_v31 = vld [vmem:[%s4611_s1 + $0x140] sm:$0xff]  ;;  %v2626_v34 = vld [vmem:[%s4611_s1 + $0x18] sm:$0xff]  ;;  %v2638_v36 = vld [vmem:[%s4611_s1 + $0x70] sm:$0xff] }
  0x17   : > { %549 = vmatpush.msra.mxu3 %v2535_v19  ;;  %504 = vmatpush.msra.mxu2 %v2547_v21  ;;  %4726 = vst [vmem:[#allocation4_spill] sm:$0xff] %v2607_v31  ;;  %v2631_v35 = vld [vmem:[%s4611_s1 + $0x138] sm:$0xff]  ;;  %v2643_v37 = vld [vmem:[%s4611_s1 + $0xd0] sm:$0xff]  ;;  %v2662_v40 = vld [vmem:[%s4611_s1 + $0x68] sm:$0xff] }
  0x18   : > { %460 = vmatpush.msra.mxu1 %v2554_v22  ;;  %432 = vmatpush.msra.mxu0 %v2566_v24  ;;  %4727 = vst [vmem:[#allocation5_spill] sm:$0xff] %v2619_v33  ;;  %v2650_v38 = vld [vmem:[%s4611_s1 + $0x10] sm:$0xff]  ;;  %v2667_v41 = vld [vmem:[%s4611_s1 + $0xc8] sm:$0xff]  ;;  %v2686_v44 = vld [vmem:[%s4611_s1 + $0x60] sm:$0xff] }
  0x19   : > { %550 = vmatpush.msra.mxu3 %v2559_v23  ;;  %505 = vmatpush.msra.mxu2 %v2571_v25  ;;  %4728 = vst [vmem:[#allocation6_spill] sm:$0xff] %v2631_v35  ;;  %v2655_v39 = vld [vmem:[%s4611_s1 + $0x130] sm:$0xff]  ;;  %v2674_v42 = vld [vmem:[%s4611_s1 + $0x8] sm:$0xff]  ;;  %v2691_v45 = vld [vmem:[%s4611_s1 + $0xc0] sm:$0xff] }
  0x1a   : > { %461 = vmatpush.msra.mxu1 %v2578_v26  ;;  %433 = vmatpush.msra.mxu0 %v2590_v28  ;;  %4729 = vst [vmem:[#allocation7_spill] sm:$0xff] %v2643_v37  ;;  %v2679_v43 = vld [vmem:[%s4611_s1 + $0x128] sm:$0xff]  ;;  %v2698_v46 = vld [vmem:[%s4611_s1 + $0x1d8] sm:$0xff]  ;;  %v2716_v48 = vld [vmem:[%s4611_s1] sm:$0xff] }
  0x1b   : > { %551 = vmatpush.msra.mxu3 %v2583_v27  ;;  %506 = vmatpush.msra.mxu2 %v2595_v29  ;;  %4730 = vst [vmem:[#allocation8_spill] sm:$0xff] %v2655_v39  ;;  %v2703_v47 = vld [vmem:[%s4611_s1 + $0x238] sm:$0xff]  ;;  %v2721_v49 = vld [vmem:[%s4611_s1 + $0x120] sm:$0xff]  ;;  %v2728_v50 = vld [vmem:[%s4611_s1 + $0x1d0] sm:$0xff] }
  0x1c   : > { %462 = vmatpush.msra.mxu1 %v2602_v30  ;;  %434 = vmatpush.msra.mxu0 %v2614_v32  ;;  %4731 = vst [vmem:[#allocation9_spill] sm:$0xff] %v2667_v41  ;;  %v2733_v51 = vld [vmem:[%s4611_s1 + $0x298] sm:$0xff]  ;;  %v2740_v52 = vld [vmem:[%s4611_s1 + $0x230] sm:$0xff]  ;;  %v2752_v54 = vld [vmem:[%s4611_s1 + $0x1c8] sm:$0xff] }
  0x1d   : > { %552 = vmatpush.msra.mxu3 %v2607_v31  ;;  %507 = vmatpush.msra.mxu2 %v2619_v33  ;;  %4732 = vst [vmem:[#allocation10_spill] sm:$0xff] %v2679_v43  ;;  %v2745_v53 = vld [vmem:[%s4611_s1 + $0x2f8] sm:$0xff]  ;;  %v2757_v55 = vld [vmem:[%s4611_s1 + $0x290] sm:$0xff]  ;;  %v2770_v56 = vld [vmem:[%s4611_s1 + $0x228] sm:$0xff] }
  0x1e   : > { %463 = vmatpush.msra.mxu1 %v2626_v34  ;;  %435 = vmatpush.msra.mxu0 %v2638_v36  ;;  %4733 = vst [vmem:[#allocation11_spill] sm:$0xff] %v2691_v45  ;;  %v2775_v57 = vld [vmem:[%s4611_s1 + $0x2f0] sm:$0xff]  ;;  %v2782_v58 = vld [vmem:[%s4611_s1 + $0x1c0] sm:$0xff]  ;;  %v2787_v59 = vld [vmem:[%s4611_s1 + $0x288] sm:$0xff] }
  0x1f   : > { %553 = vmatpush.msra.mxu3 %v2631_v35  ;;  %508 = vmatpush.msra.mxu2 %v2643_v37  ;;  %4734 = vst [vmem:[#allocation12_spill] sm:$0xff] %v2703_v47  ;;  %v2794_v60 = vld [vmem:[%s4611_s1 + $0x220] sm:$0xff]  ;;  %v2799_v61 = vld [vmem:[%s4611_s1 + $0x2e8] sm:$0xff]  ;;  %v2806_v62 = vld [vmem:[%s4611_s1 + $0x1b8] sm:$0xff] }
  0x20   : > { %464 = vmatpush.msra.mxu1 %v2650_v38  ;;  %436 = vmatpush.msra.mxu0 %v2662_v40  ;;  %4736 = vst [vmem:[#allocation13_spill] sm:$0xff] %v2721_v49  ;;  %v2811_v63 = vld [vmem:[%s4611_s1 + $0x280] sm:$0xff]  ;;  %v2917_v35 = vld [vmem:[%s4611_s1 + $0x198] sm:$0xff]  ;;  %v2942_v31 = vld [vmem:[%s4611_s1 + $0x190] sm:$0xff] }
  0x21   : > { %554 = vmatpush.msra.mxu3 %v2655_v39  ;;  %509 = vmatpush.msra.mxu2 %v2667_v41  ;;  %4737 = vst [vmem:[#allocation14_spill] sm:$0xff] %v2740_v52  ;;  %v2894_v39 = vld [vmem:[%s4611_s1 + $0x1a0] sm:$0xff]  ;;  %v2959_v33 = vld [vmem:[%s4611_s1 + $0x2b8] sm:$0xff] }
  0x22   : > { %465 = vmatpush.msra.mxu1 %v2674_v42  ;;  %437 = vmatpush.msra.mxu0 %v2686_v44  ;;  %4738 = vst [vmem:[#allocation15_spill] sm:$0xff] %v2745_v53  ;;  %v2909_v41 = vld [vmem:[%s2853_s27] sm:$0xff] }
  0x23   : > { %555 = vmatpush.msra.mxu3 %v2679_v43  ;;  %510 = vmatpush.msra.mxu2 %v2691_v45  ;;  %4739 = vst [vmem:[#allocation16_spill] sm:$0xff] %v2770_v56  ;;  %v2882_v43 = vld [vmem:[%s2853_s27 + $0x10] sm:$0xff]  ;;  %v2887_v45 = vld [vmem:[%s4611_s1 + $0x268] sm:$0xff]  ;;  %v2934_v37 = vld [vmem:[%s4611_s1 + $0x2c0] sm:$0xff] }
  0x24   : > { %591 = vmatpush.msrb.mxu0 %v2698_v46  ;;  %466 = vmatpush.msra.mxu1 %v2716_v48  ;;  %4740 = vst [vmem:[#allocation17_spill] sm:$0xff] %v2775_v57  ;;  %v3045_v27 = vld [vmem:[%s4611_s1 + $0x2a0] sm:$0xff] }
  0x25   : > { %665 = vmatpush.msrb.mxu2 %v2703_v47  ;;  %556 = vmatpush.msra.mxu3 %v2721_v49  ;;  %4741 = vst [vmem:[#allocation18_spill] sm:$0xff] %v2794_v60  ;;  %v2860_v49 = vld [vmem:[%s4611_s1 + $0x1a8] sm:$0xff]  ;;  %v2865_v47 = vld [vmem:[%s4611_s1 + $0x270] sm:$0xff] }
  0x26   : > { %592 = vmatpush.msrb.mxu0 %v2728_v50  ;;  %642 = vmatpush.msrb.mxu1 %v2733_v51  ;;  %4742 = vst [vmem:[#allocation19_spill] sm:$0xff] %v2799_v61 }
  0x27   : > { %666 = vmatpush.msrb.mxu2 %v2740_v52  ;;  %701 = vmatpush.msrb.mxu3 %v2745_v53  ;;  %v2831_v53 = vld [vmem:[%s4611_s1 + $0x1b0] sm:$0xff]  ;;  %v2836_v52 = vld [vmem:[%s4611_s1 + $0x278] sm:$0xff]  ;;  %4749 = vst [vmem:[#allocation26_spill] sm:$0xff] %v2887_v45 }
  0x28   : > { %593 = vmatpush.msrb.mxu0 %v2752_v54  ;;  %643 = vmatpush.msrb.mxu1 %v2757_v55  ;;  %4750 = vst [vmem:[#allocation27_spill] sm:$0xff] %v2894_v39 }
  0x29   : > { %667 = vmatpush.msrb.mxu2 %v2770_v56  ;;  %702 = vmatpush.msrb.mxu3 %v2775_v57  ;;  %v2819_v56 = vld [vmem:[%s4611_s1 + $0x218] sm:$0xff]  ;;  %v2824_v57 = vld [vmem:[%s4611_s1 + $0x2e0] sm:$0xff]  ;;  %4753 = vst [vmem:[#allocation30_spill] sm:$0xff] %v2917_v35 }
  0x2a   : > { %594 = vmatpush.msrb.mxu0 %v2782_v58  ;;  %644 = vmatpush.msrb.mxu1 %v2787_v59  ;;  %4743 = vst [vmem:[#allocation20_spill] sm:$0xff] %v2819_v56 }
  0x2b   : > { %4744 = vst [vmem:[#allocation21_spill] sm:$0xff] %v2824_v57  ;;  %668 = vmatpush.msrb.mxu2 %v2794_v60  ;;  %703 = vmatpush.msrb.mxu3 %v2799_v61  ;;  %v2843_v60 = vld [vmem:[%s4611_s1 + $0x210] sm:$0xff]  ;;  %v2848_v61 = vld [vmem:[%s4611_s1 + $0x2d8] sm:$0xff] }
  0x2c   : > { %595 = vmatpush.msrb.mxu0 %v2806_v62  ;;  %645 = vmatpush.msrb.mxu1 %v2811_v63  ;;  %4745 = vst [vmem:[#allocation22_spill] sm:$0xff] %v2843_v60 }
  0x2d   : > { %4746 = vst [vmem:[#allocation23_spill] sm:$0xff] %v2848_v61  ;;  %669 = vmatpush.msrb.mxu2 %v2819_v56  ;;  %704 = vmatpush.msrb.mxu3 %v2824_v57  ;;  %v2872_v56 = vld [vmem:[%s4611_s1 + $0x208] sm:$0xff]  ;;  %v2877_v57 = vld [vmem:[%s4611_s1 + $0x2d0] sm:$0xff] }
  0x2e   : > { %596 = vmatpush.msrb.mxu0 %v2831_v53  ;;  %646 = vmatpush.msrb.mxu1 %v2836_v52  ;;  %4747 = vst [vmem:[#allocation24_spill] sm:$0xff] %v2872_v56 }
  0x2f   : > { %4748 = vst [vmem:[#allocation25_spill] sm:$0xff] %v2877_v57  ;;  %670 = vmatpush.msrb.mxu2 %v2843_v60  ;;  %705 = vmatpush.msrb.mxu3 %v2848_v61  ;;  %v2899_v61 = vld [vmem:[%s4611_s1 + $0x200] sm:$0xff]  ;;  %v2906_v60 = vld [vmem:[%s4611_s1 + $0x2c8] sm:$0xff] }
  0x30   : > { %597 = vmatpush.msrb.mxu0 %v2860_v49  ;;  %647 = vmatpush.msrb.mxu1 %v2865_v47  ;;  %4751 = vst [vmem:[#allocation28_spill] sm:$0xff] %v2899_v61 }
  0x31   : > { %671 = vmatpush.msrb.mxu2 %v2872_v56  ;;  %706 = vmatpush.msrb.mxu3 %v2877_v57  ;;  %4752 = vst [vmem:[#allocation29_spill] sm:$0xff] %v2906_v60  ;;  %v2922_v57 = vld [vmem:[%s4611_s1 + $0x260] sm:$0xff]  ;;  %v2929_v56 = vld [vmem:[%s4611_s1 + $0x1f8] sm:$0xff] }
  0x32   : > { %2010 = vmatmul.msk.f32.vlgmr.msra.gmra.mxu0 %vm415_vm0, %v2882_v43  ;;  %648 = vmatpush.msrb.mxu1 %v2887_v45  ;;  %4754 = vst [vmem:[#allocation31_spill] sm:$0xff] %v2922_v57  ;;  %v2964_v45 = vld [vmem:[%s2853_s27 + $0x1] sm:$0xff] }
  0x33   : > { %598 = vmatpush.msrb.mxu0 %v2894_v39  ;;  %672 = vmatpush.msrb.mxu2 %v2899_v61  ;;  %4755 = vst [vmem:[#allocation32_spill] sm:$0xff] %v2929_v56  ;;  %v2947_v61 = vld [vmem:[%s4611_s1 + $0x258] sm:$0xff]  ;;  %v3033_v39 = vld [vmem:[%s2853_s27 + $0x8] sm:$0x3f] }
  0x34   : > { %4756 = vst [vmem:[#allocation33_spill] sm:$0xff] %v2934_v37  ;;  %707 = vmatpush.msrb.mxu3 %v2906_v60  ;;  %2012 = vmatmul.msk.f32.vlgmr.msra.gmra.mxu1 %vm415_vm0, %v2909_v41  ;;  %v2954_v60 = vld [vmem:[%s4611_s1 + $0x1f0] sm:$0xff] }
  0x35   : > { %4757 = vst [vmem:[#allocation34_spill] sm:$0xff] %v2942_v31  ;;  %599 = vmatpush.msrb.mxu0 %v2917_v35  ;;  %649 = vmatpush.msrb.mxu1 %v2922_v57  ;;  %v2969_v57 = vld [vmem:[%s4611_s1 + $0x188] sm:$0xff]  ;;  %v2976_v35 = vld [vmem:[%s4611_s1 + $0x250] sm:$0xff] }
  0x36   : > { %4758 = vst [vmem:[#allocation35_spill] sm:$0xff] %v2947_v61  ;;  %673 = vmatpush.msrb.mxu2 %v2929_v56  ;;  %708 = vmatpush.msrb.mxu3 %v2934_v37  ;;  %v2981_v37 = vld [vmem:[%s4611_s1 + $0x1e8] sm:$0xff]  ;;  %v2988_v56 = vld [vmem:[%s4611_s1 + $0x2b0] sm:$0xff] }
  0x37   : > { %4759 = vst [vmem:[#allocation36_spill] sm:$0xff] %v2954_v60  ;;  %600 = vmatpush.msrb.mxu0 %v2942_v31  ;;  %650 = vmatpush.msrb.mxu1 %v2947_v61  ;;  %v2991_v61 = vld [vmem:[%s2853_s27 + $0x18] sm:$0x3f] }
  0x38   : > { %4760 = vst [vmem:[#allocation37_spill] sm:$0xff] %v2959_v33  ;;  %674 = vmatpush.msrb.mxu2 %v2954_v60  ;;  %709 = vmatpush.msrb.mxu3 %v2959_v33  ;;  %v2997_v31 = vld [vmem:[%s2853_s27 + $0x11] sm:$0xff]  ;;  %v3002_v60 = vld [vmem:[%s4611_s1 + $0x180] sm:$0xff]  ;;  %v3009_v33 = vld [vmem:[%s4611_s1 + $0x248] sm:$0xff] }
  0x39   : > { %4761 = vst [vmem:[#allocation38_spill] sm:$0xff] %v2969_v57  ;;  %2026 = vmatmul.msk.f32.vlgmr.msra.gmra.mxu2 %vm415_vm0, %v2964_v45  ;;  %601 = vmatpush.msrb.mxu0 %v2969_v57  ;;  %v3014_v57 = vld [vmem:[%s4611_s1 + $0x1e0] sm:$0xff] }
  0x3a   : > { %4762 = vst [vmem:[#allocation39_spill] sm:$0xff] %v2976_v35  ;;  %651 = vmatpush.msrb.mxu1 %v2976_v35  ;;  %675 = vmatpush.msrb.mxu2 %v2981_v37  ;;  %v3022_v35 = vld [vmem:[%s4611_s1 + $0x2a8] sm:$0xff] }
  0x3b   : > { %4763 = vst [vmem:[#allocation40_spill] sm:$0xff] %v2981_v37  ;;  %710 = vmatpush.msrb.mxu3 %v2988_v56  ;;  %2011 = vmatmul.msk.f32.gmra.mxu0 %vm415_vm0, %v2991_v61  ;;  %v3027_v37 = vld [vmem:[%s4611_s1 + $0x358] sm:$0xff] }
  0x3c   : > { %4764 = vst [vmem:[#allocation41_spill] sm:$0xff] %v2988_v56  ;;  %2042 = vmatmul.msk.f32.vlgmr.msra.gmra.mxu3 %vm415_vm0, %v2997_v31  ;;  %602 = vmatpush.msrb.mxu0 %v3002_v60  ;;  %v3040_v56 = vld [vmem:[%s4611_s1 + $0x240] sm:$0xff] }
  0x3d   : > { %4765 = vst [vmem:[#allocation42_spill] sm:$0xff] %v3009_v33  ;;  %652 = vmatpush.msrb.mxu1 %v3009_v33  ;;  %676 = vmatpush.msrb.mxu2 %v3014_v57  ;;  %v3052_v33 = vld [vmem:[%s4611_s1 + $0x350] sm:$0xff] }
  0x3e   : > { %4766 = vst [vmem:[#allocation43_spill] sm:$0xff] %v3014_v57  ;;  %711 = vmatpush.msrb.mxu3 %v3022_v35  ;;  %739 = vmatpush.msra.mxu0 %v3027_v37  ;;  %v3057_v57 = vld [vmem:[%s4611_s1 + $0x3b8] sm:$0xff] }
  0x3f   : > { %4767 = vst [vmem:[#allocation44_spill] sm:$0xff] %v3022_v35  ;;  %802 = vmatpush.msra.mxu2 %v2426_v0  ;;  %2013 = vmatmul.msk.f32.gmra.mxu1 %vm415_vm0, %v3033_v39  ;;  %v3067_v35 = vld [vmem:[%s4611_s1 + $0x348] sm:$0xff] }
  0x40   : > { %4768 = vst [vmem:[#allocation45_spill] sm:$0xff] %v3027_v37  ;;  %653 = vmatpush.msrb.mxu1 %v3040_v56  ;;  %712 = vmatpush.msrb.mxu3 %v3045_v27  ;;  %v3072_v37 = vld [vmem:[%s4611_s1 + $0x3b0] sm:$0xff]  ;;  %v3079_v0 = vld [vmem:[%s2853_s27 + $0x9] sm:$0x3f] }
  0x41   : > { %4769 = vst [vmem:[#allocation46_spill] sm:$0xff] %v3045_v27  ;;  %740 = vmatpush.msra.mxu0 %v3052_v33  ;;  %803 = vmatpush.msra.mxu2 %v2436_v2  ;;  %v3084_v27 = vld [vmem:[%s4611_s1 + $0x340] sm:$0xff] }
  0x42   : > { %4770 = vst [vmem:[#allocation47_spill] sm:$0xff] %v3052_v33  ;;  %777 = vmatpush.msra.mxu1 %v3057_v57  ;;  %825 = vmatpush.msra.mxu3 %v2443_v3  ;;  %v3091_v33 = vld [vmem:[%s4611_s1 + $0x3a8] sm:$0xff]  ;;  %v3102_v3 = vld [vmem:[%s2853_s27 + $0x19] sm:$0x3f] }
  0x43   : > { %4771 = vst [vmem:[#allocation48_spill] sm:$0xff] %v3072_v37  ;;  %741 = vmatpush.msra.mxu0 %v3067_v35  ;;  %804 = vmatpush.msra.mxu2 %v2460_v6  ;;  %v3096_v2 = vld [vmem:[%s2853_s27 + $0x2] sm:$0xff] }
  0x44   : > { %778 = vmatpush.msra.mxu1 %v3072_v37  ;;  %826 = vmatpush.msra.mxu3 %v2465_v7  ;;  %v3107_v37 = vld [vmem:[%s4611_s1 + $0x338] sm:$0xff]  ;;  %v3114_v6 = vld [vmem:[%s4611_s1 + $0x3a0] sm:$0xff]  ;;  %v3125_v7 = vld [vmem:[%s4611_s1 + $0x330] sm:$0xff] }
  0x45   : > { %2027 = vmatmul.msk.f32.gmra.mxu2 %vm415_vm0, %v3079_v0  ;;  %742 = vmatpush.msra.mxu0 %v3084_v27  ;;  %4772 = vst [vmem:[#allocation49_spill] sm:$0xff] %v3107_v37 }
  0x46   : > { %779 = vmatpush.msra.mxu1 %v3091_v33  ;;  %805 = vmatpush.msra.mxu2 %v2489_v11  ;;  %v3130_v11 = vld [vmem:[%s4611_s1 + $0x398] sm:$0xff] }
  0x47   : > { %827 = vmatpush.msra.mxu3 %v2482_v10  ;;  %2056 = vmatmul.msk.f32.vlgmr.msrb.gmra.mxu0 %vm415_vm0, %v3096_v2  ;;  %v3140_v10 = vld [vmem:[%s4611_s1 + $0x328] sm:$0xff] }
  0x48   : > { %2043 = vmatmul.msk.f32.gmra.mxu3 %vm415_vm0, %v3102_v3  ;;  %743 = vmatpush.msra.mxu0 %v3107_v37  ;;  %v3145_v37 = vld [vmem:[%s4611_s1 + $0x390] sm:$0xff] }
  0x49   : > { %780 = vmatpush.msra.mxu1 %v3114_v6  ;;  %806 = vmatpush.msra.mxu2 %v2518_v16  ;;  %v3161_v16 = vld [vmem:[%s4611_s1 + $0x388] sm:$0xff] }
  0x4a   : > { %828 = vmatpush.msra.mxu3 %v2506_v14  ;;  %2082 = vmatmul.msk.f32.vlgmr.msrb.gmra.mxu1 %vm415_vm0, %v2882_v43  ;;  %v3154_v14 = vld [vmem:[%s4611_s1 + $0x320] sm:$0xff] }
  0x4b   : > { %744 = vmatpush.msra.mxu0 %v3125_v7  ;;  %781 = vmatpush.msra.mxu1 %v3130_v11 }
  0x4c   : > { %807 = vmatpush.msra.mxu2 %v2542_v20  ;;  %829 = vmatpush.msra.mxu3 %v2530_v18  ;;  %v3166_v20 = vld [vmem:[%s2853_s27 + $0xa] sm:$0x3f]  ;;  %v3174_v18 = vld [vmem:[%s4611_s1 + $0x318] sm:$0xff] }
  0x4d   : > { %745 = vmatpush.msra.mxu0 %v3140_v10  ;;  %782 = vmatpush.msra.mxu1 %v3145_v37 }
  0x4e   : > { %808 = vmatpush.msra.mxu2 %v2566_v24  ;;  %830 = vmatpush.msra.mxu3 %v2554_v22  ;;  %v3181_v22 = vld [vmem:[%s4611_s1 + $0x380] sm:$0xff]  ;;  %v3192_v24 = vld [vmem:[%s4611_s1 + $0x310] sm:$0xff] }
  0x4f   : > { %2084 = vmatmul.msk.f32.vlgmr.msrb.gmra.mxu2 %vm415_vm0, %v2909_v41  ;;  %746 = vmatpush.msra.mxu0 %v3154_v14  ;;  %v3212_v41 = vld [vmem:[%s4611_s1 + $0x370] sm:$0xff] }
  0x50   : > { %783 = vmatpush.msra.mxu1 %v3161_v16  ;;  %809 = vmatpush.msra.mxu2 %v2590_v28  ;;  %v3197_v28 = vld [vmem:[%s4611_s1 + $0x378] sm:$0xff] }
  0x51   : > { %831 = vmatpush.msra.mxu3 %v2578_v26  ;;  %2057 = vmatmul.msk.f32.gmra.mxu0 %vm415_vm0, %v3166_v20  ;;  %v3207_v26 = vld [vmem:[%s4611_s1 + $0x308] sm:$0xff] }
  0x52   : > { %2098 = vmatmul.msk.f32.vlgmr.msrb.gmra.mxu3 %vm415_vm0, %v2964_v45  ;;  %747 = vmatpush.msra.mxu0 %v3174_v18 }
  0x53   : > { %784 = vmatpush.msra.mxu1 %v3181_v22  ;;  %810 = vmatpush.msra.mxu2 %v2614_v32  ;;  %v3228_v32 = vld [vmem:[%s4611_s1 + $0x368] sm:$0xff] }
  0x54   : > { %832 = vmatpush.msra.mxu3 %v2602_v30  ;;  %2083 = vmatmul.msk.f32.gmra.mxu1 %vm415_vm0, %v2991_v61  ;;  %v3221_v30 = vld [vmem:[%s4611_s1 + $0x300] sm:$0xff] }
  0x55   : > { %748 = vmatpush.msra.mxu0 %v3192_v24  ;;  %785 = vmatpush.msra.mxu1 %v3197_v28 }
  0x56   : > { %811 = vmatpush.msra.mxu2 %v2638_v36  ;;  %833 = vmatpush.msra.mxu3 %v2626_v34  ;;  %v3240_v34 = vld [vmem:[%s4611_s1 + $0x360] sm:$0xff]  ;;  %v4787_v36 = vld [vmem:[#allocation39_spill] sm:$0xff] }
  0x57   : > { %749 = vmatpush.msra.mxu0 %v3207_v26  ;;  %786 = vmatpush.msra.mxu1 %v3212_v41 }
  0x58   : > { %812 = vmatpush.msra.mxu2 %v2662_v40  ;;  %834 = vmatpush.msra.mxu3 %v2650_v38  ;;  %v4788_v38 = vld [vmem:[#allocation11_spill] sm:$0xff]  ;;  %v4789_v40 = vld [vmem:[#allocation10_spill] sm:$0xff] }
  0x59   : > { %2085 = vmatmul.msk.f32.gmra.mxu2 %vm415_vm0, %v3033_v39  ;;  %750 = vmatpush.msra.mxu0 %v3221_v30  ;;  %v3305_v39 = vld [vmem:[%s2853_s27 + $0x12] sm:$0xff] }
  0x5a   : > { %787 = vmatpush.msra.mxu1 %v3228_v32  ;;  %813 = vmatpush.msra.mxu2 %v2686_v44  ;;  %v4791_v44 = vld [vmem:[#allocation12_spill] sm:$0xff] }
  0x5b   : > { %835 = vmatpush.msra.mxu3 %v2674_v42  ;;  %2112 = vmatmul.msk.f32.vlgmr.msra.gmra.mxu0 %vm415_vm0, %v2997_v31  ;;  %v4790_v42 = vld [vmem:[#allocation42_spill] sm:$0xff] }
  0x5c   : > { %2099 = vmatmul.msk.f32.gmra.mxu3 %vm415_vm0, %v3079_v0  ;;  %848 = vmatpush.msrb.mxu0 %v2431_v1  ;;  %v4773_v1 = vld [vmem:[#allocation3_spill] sm:$0xff] }
  0x5d   : > { %906 = vmatpush.msrb.mxu2 %v2698_v46  ;;  %788 = vmatpush.msra.mxu1 %v3240_v34  ;;  %v4792_v46 = vld [vmem:[#allocation45_spill] sm:$0xff] }
  0x5e   : > { %836 = vmatpush.msra.mxu3 %v2716_v48  ;;  %2126 = vmatmul.msk.f32.vlgmr.msra.gmra.mxu1 %vm415_vm0, %v3096_v2  ;;  %v4794_v48 = vld [vmem:[#allocation14_spill] sm:$0xff] }
  0x5f   : > { %849 = vmatpush.msrb.mxu0 %v2448_v4  ;;  %873 = vmatpush.msrb.mxu1 %v2453_v5  ;;  %v4774_v4 = vld [vmem:[#allocation27_spill] sm:$0xff]  ;;  %v4775_v5 = vld [vmem:[#allocation26_spill] sm:$0xff] }
  0x60   : > { %907 = vmatpush.msrb.mxu2 %v2728_v50  ;;  %931 = vmatpush.msrb.mxu3 %v2733_v51  ;;  %v4796_v50 = vld [vmem:[#allocation47_spill] sm:$0xff]  ;;  %v4797_v51 = vld [vmem:[#allocation16_spill] sm:$0xff] }
  0x61   : > { %850 = vmatpush.msrb.mxu0 %v2470_v8  ;;  %874 = vmatpush.msrb.mxu1 %v2477_v9  ;;  %v4776_v8 = vld [vmem:[#allocation5_spill] sm:$0xff]  ;;  %v4777_v9 = vld [vmem:[#allocation4_spill] sm:$0xff] }
  0x62   : > { %908 = vmatpush.msrb.mxu2 %v2752_v54  ;;  %932 = vmatpush.msrb.mxu3 %v2757_v55  ;;  %v4800_v54 = vld [vmem:[#allocation18_spill] sm:$0xff]  ;;  %v2137_v55 = vld [vmem:[%s2853_s27 + $0x1a] sm:$0x3f] }
  0x63   : > { %851 = vmatpush.msrb.mxu0 %v2494_v12  ;;  %875 = vmatpush.msrb.mxu1 %v2499_v13  ;;  %v4778_v12 = vld [vmem:[#allocation30_spill] sm:$0xff]  ;;  %v4779_v13 = vld [vmem:[#allocation31_spill] sm:$0xff] }
  0x64   : > { %909 = vmatpush.msrb.mxu2 %v2782_v58  ;;  %933 = vmatpush.msrb.mxu3 %v2787_v59  ;;  %v4803_v58 = vld [vmem:[#allocation21_spill] sm:$0xff]  ;;  %v4807_v59 = vld [vmem:[#allocation24_spill] sm:$0xff] }
  0x65   : > { %2128 = vmatmul.msk.f32.vlgmr.msra.gmra.mxu2 %vm415_vm0, %v2964_v45  ;;  %2113 = vmatmul.msk.f32.gmra.mxu0 %vm415_vm0, %v3102_v3 }
  0x66   : > { %852 = vmatpush.msrb.mxu0 %v2523_v17  ;;  %876 = vmatpush.msrb.mxu1 %v2511_v15  ;;  %v4780_v15 = vld [vmem:[#allocation7_spill] sm:$0xff]  ;;  %v4781_v17 = vld [vmem:[#allocation6_spill] sm:$0xff] }
  0x67   : > { %910 = vmatpush.msrb.mxu2 %v2806_v62  ;;  %934 = vmatpush.msrb.mxu3 %v2811_v63  ;;  %v4809_v62 = vld [vmem:[#allocation28_spill] sm:$0xff]  ;;  %v4810_v63 = vld [vmem:[#allocation29_spill] sm:$0xff] }
  0x68   : > { %2127 = vmatmul.msk.f32.gmra.mxu1 %vm415_vm0, %v3166_v20  ;;  %853 = vmatpush.msrb.mxu0 %v2547_v21  ;;  %v4783_v21 = vld [vmem:[#allocation35_spill] sm:$0xff] }
  0x69   : > { %877 = vmatpush.msrb.mxu1 %v2535_v19  ;;  %911 = vmatpush.msrb.mxu2 %v2831_v53  ;;  %v4782_v19 = vld [vmem:[#allocation34_spill] sm:$0xff]  ;;  %v4799_v53 = vld [vmem:[#allocation48_spill] sm:$0xff] }
  0x6a   : > { %935 = vmatpush.msrb.mxu3 %v2836_v52  ;;  %854 = vmatpush.msrb.mxu0 %v2571_v25  ;;  %v4785_v25 = vld [vmem:[#allocation8_spill] sm:$0xff]  ;;  %v4798_v52 = vld [vmem:[#allocation17_spill] sm:$0xff] }
  0x6b   : > { %878 = vmatpush.msrb.mxu1 %v2559_v23  ;;  %912 = vmatpush.msrb.mxu2 %v2860_v49  ;;  %v4784_v23 = vld [vmem:[#allocation9_spill] sm:$0xff]  ;;  %v4795_v49 = vld [vmem:[#allocation15_spill] sm:$0xff] }
  0x6c   : > { %936 = vmatpush.msrb.mxu3 %v2865_v47  ;;  %855 = vmatpush.msrb.mxu0 %v2595_v29  ;;  %v4786_v29 = vld [vmem:[#allocation38_spill] sm:$0xff]  ;;  %v4793_v47 = vld [vmem:[#allocation13_spill] sm:$0xff] }
  0x6d   : > { %2130 = vmatmul.msk.f32.vlgmr.msra.gmra.mxu3 %vm415_vm0, %v2882_v43  ;;  %879 = vmatpush.msrb.mxu1 %v4773_v1  ;;  %v3426_v1 = vld [vmem:[%s4613_s3 + $0xa8] sm:$0xf] }
  0x6e   : > { %913 = vmatpush.msrb.mxu2 %v4774_v4  ;;  %937 = vmatpush.msrb.mxu3 %v4775_v5  ;;  %v3431_v4 = vld [vmem:[%s4613_s3 + $0x50] sm:$0xf]  ;;  %v3436_v5 = vld [vmem:[%s4613_s3 + $0xa0] sm:$0xff] }
  0x6f   : > { %2129 = vmatmul.msk.f32.gmra.mxu2 %vm415_vm0, %v3079_v0  ;;  %856 = vmatpush.msrb.mxu0 %v4776_v8  ;;  %v3445_v8 = vld [vmem:[%s4613_s3 + $0x100] sm:$0xf] }
  0x70   : > { %880 = vmatpush.msrb.mxu1 %v4777_v9  ;;  %914 = vmatpush.msrb.mxu2 %v4778_v12  ;;  %v3450_v9 = vld [vmem:[%s4613_s3 + $0x158] sm:$0xf]  ;;  %v3455_v12 = vld [vmem:[%s4613_s3 + $0x48] sm:$0xff] }
  0x71   : > { %938 = vmatpush.msrb.mxu3 %v4779_v13  ;;  %857 = vmatpush.msrb.mxu0 %v4780_v15  ;;  %v3464_v13 = vld [vmem:[%s4613_s3 + $0xf8] sm:$0xff]  ;;  %v3469_v15 = vld [vmem:[%s4613_s3 + $0x150] sm:$0xff] }
  0x72   : > { %881 = vmatpush.msrb.mxu1 %v4781_v17  ;;  %915 = vmatpush.msrb.mxu2 %v4782_v19  ;;  %4820 = vst [vmem:[#allocation3_spill] sm:$0xff] %v3469_v15  ;;  %v3474_v17 = vld [vmem:[%s4613_s3 + $0x98] sm:$0xff]  ;;  %v3481_v19 = vld [vmem:[%s4613_s3 + $0x40] sm:$0xff] }
  0x73   : > { %939 = vmatpush.msrb.mxu3 %v4783_v21  ;;  %858 = vmatpush.msrb.mxu0 %v4784_v23  ;;  %v3486_v21 = vld [vmem:[%s4613_s3 + $0xf0] sm:$0xff]  ;;  %v3491_v23 = vld [vmem:[%s4613_s3 + $0x148] sm:$0xff] }
  0x74   : > { %882 = vmatpush.msrb.mxu1 %v4785_v25  ;;  %916 = vmatpush.msrb.mxu2 %v4786_v29  ;;  %4821 = vst [vmem:[#allocation27_spill] sm:$0xff] %v3486_v21  ;;  %v3498_v25 = vld [vmem:[%s4613_s3 + $0x90] sm:$0xff]  ;;  %v3503_v29 = vld [vmem:[%s4613_s3 + $0x38] sm:$0xff] }
  0x75   : > { %940 = vmatpush.msrb.mxu3 %v4787_v36  ;;  %859 = vmatpush.msrb.mxu0 %v4788_v38  ;;  %4822 = vst [vmem:[#allocation26_spill] sm:$0xff] %v3491_v23  ;;  %v3512_v38 = vld [vmem:[%s4613_s3 + $0xe8] sm:$0xff] }
  0x76   : > { %2131 = vmatmul.msk.f32.gmra.mxu3 %vm415_vm0, %v2991_v61  ;;  %883 = vmatpush.msrb.mxu1 %v4789_v40  ;;  %4823 = vst [vmem:[#allocation5_spill] sm:$0xff] %v3512_v38 }
  0x77   : > { %917 = vmatpush.msrb.mxu2 %v3002_v60  ;;  %941 = vmatpush.msrb.mxu3 %v4790_v42  ;;  %v4808_v60 = vld [vmem:[#allocation25_spill] sm:$0xff] }
  0x78   : > { %2132 = vmatmul.msk.f32.vlgmr.msrb.gmra.mxu0 %vm415_vm0, %v2997_v31  ;;  %2138 = vmatmul.msk.f32.vlgmr.msrb.gmra.mxu2 %vm415_vm0, %v3305_v39 }
  0x79   : > { %954 = vmatpush.msra.mxu0 %v4791_v44  ;;  %1002 = vmatpush.msra.mxu2 %v4792_v46  ;;  %v3534_v46 = vld [vmem:[%s4613_s3 + $0x88] sm:$0xff] }
  0x7a   : > { %884 = vmatpush.msrb.mxu1 %v4793_v47  ;;  %942 = vmatpush.msrb.mxu3 %v3040_v56  ;;  %v4801_v56 = vld [vmem:[#allocation19_spill] sm:$0xff] }
  0x7b   : > { %2134 = vmatmul.msk.f32.vlgmr.msrb.gmra.mxu1 %vm415_vm0, %v3096_v2  ;;  %955 = vmatpush.msra.mxu0 %v4794_v48  ;;  %v3539_v47 = vld [vmem:[%s4613_s3 + $0x30] sm:$0xff]  ;;  %v3544_v48 = vld [vmem:[%s4613_s3 + $0xe0] sm:$0xff] }
  0x7c   : > { %977 = vmatpush.msra.mxu1 %v4795_v49  ;;  %1003 = vmatpush.msra.mxu2 %v4796_v50  ;;  %4825 = vst [vmem:[#allocation30_spill] sm:$0xff] %v3544_v48  ;;  %v3551_v49 = vld [vmem:[%s4613_s3 + $0x138] sm:$0xff]  ;;  %v3558_v50 = vld [vmem:[%s4613_s3 + $0x80] sm:$0xff] }
  0x7d   : > { %1027 = vmatpush.msra.mxu3 %v3057_v57  ;;  %956 = vmatpush.msra.mxu0 %v4797_v51  ;;  %v4802_v57 = vld [vmem:[#allocation20_spill] sm:$0xff]  ;;  %4826 = vst [vmem:[#allocation31_spill] sm:$0xff] %v3551_v49  ;;  %v3563_v51 = vld [vmem:[%s4613_s3 + $0x28] sm:$0xff] }
  0x7e   : > { %978 = vmatpush.msra.mxu1 %v4798_v52  ;;  %1004 = vmatpush.msra.mxu2 %v3067_v35  ;;  %v4804_v35 = vld [vmem:[#allocation49_spill] sm:$0xff]  ;;  %v3568_v52 = vld [vmem:[%s4613_s3 + $0xd8] sm:$0xff] }
  0x7f   : > { %1028 = vmatpush.msra.mxu3 %v4799_v53  ;;  %957 = vmatpush.msra.mxu0 %v4800_v54  ;;  %4827 = vst [vmem:[#allocation7_spill] sm:$0xff] %v3568_v52  ;;  %v3575_v53 = vld [vmem:[%s4613_s3 + $0x130] sm:$0xff]  ;;  %v3580_v54 = vld [vmem:[%s4613_s3 + $0x78] sm:$0xff] }
  0x80   : > { %979 = vmatpush.msra.mxu1 %v4801_v56  ;;  %1005 = vmatpush.msra.mxu2 %v3084_v27  ;;  %v4805_v27 = vld [vmem:[#allocation22_spill] sm:$0xff]  ;;  %4828 = vst [vmem:[#allocation6_spill] sm:$0xff] %v3575_v53  ;;  %v3592_v56 = vld [vmem:[%s4613_s3 + $0xd0] sm:$0xff] }
  0x81   : > { %1029 = vmatpush.msra.mxu3 %v3091_v33  ;;  %2133 = vmatmul.msk.f32.gmra.mxu0 %vm415_vm0, %v3102_v3  ;;  %v4806_v33 = vld [vmem:[#allocation23_spill] sm:$0xff]  ;;  %4829 = vst [vmem:[#allocation34_spill] sm:$0xff] %v3592_v56 }
  0x82   : > { %2139 = vmatmul.msk.f32.gmra.mxu2 %vm415_vm0, %v2137_v55  ;;  %958 = vmatpush.msra.mxu0 %v4802_v57  ;;  %v3597_v57 = vld [vmem:[%s4613_s3 + $0x128] sm:$0xff] }
  0x83   : > { %980 = vmatpush.msra.mxu1 %v4803_v58  ;;  %1006 = vmatpush.msra.mxu2 %v4804_v35  ;;  %4830 = vst [vmem:[#allocation35_spill] sm:$0xff] %v3597_v57 }
  0x84   : > { %1030 = vmatpush.msra.mxu3 %v3114_v6  ;;  %2135 = vmatmul.msk.f32.gmra.mxu1 %vm415_vm0, %v3166_v20  ;;  %v4812_v6 = vld [vmem:[#allocation33_spill] sm:$0xff] }
  0x85   : > { %2140 = vmatmul.msk.f32.vlgmr.msrb.gmra.mxu3 %vm415_vm0, %v2964_v45  ;;  %959 = vmatpush.msra.mxu0 %v4805_v27  ;;  %v4811_v45 = vld [vmem:[#allocation32_spill] sm:$0xff]  ;;  %v3610_v27 = vld [vmem:[%s4613_s3 + $0x70] sm:$0xff] }
  0x86   : > { %981 = vmatpush.msra.mxu1 %v4806_v33  ;;  %1007 = vmatpush.msra.mxu2 %v3125_v7  ;;  %v4813_v7 = vld [vmem:[#allocation36_spill] sm:$0xff] }
  0x87   : > { %1031 = vmatpush.msra.mxu3 %v3130_v11  ;;  %960 = vmatpush.msra.mxu0 %v4807_v59  ;;  %v4815_v11 = vld [vmem:[#allocation40_spill] sm:$0xff]  ;;  %v3620_v59 = vld [vmem:[%s4613_s3 + $0xc8] sm:$0xff] }
  0x88   : > { %982 = vmatpush.msra.mxu1 %v4808_v60  ;;  %1008 = vmatpush.msra.mxu2 %v3140_v10  ;;  %v4816_v10 = vld [vmem:[#allocation41_spill] sm:$0xff]  ;;  %v3615_v33 = vld [vmem:[%s4613_s3 + $0x18] sm:$0xff]  ;;  %4831 = vst [vmem:[#allocation9_spill] sm:$0xff] %v3620_v59 }
  0x89   : > { %1032 = vmatpush.msra.mxu3 %v3145_v37  ;;  %961 = vmatpush.msra.mxu0 %v4809_v62  ;;  %v4814_v37 = vld [vmem:[#allocation37_spill] sm:$0xff] }
  0x8a   : > { %983 = vmatpush.msra.mxu1 %v4810_v63  ;;  %1009 = vmatpush.msra.mxu2 %v3154_v14  ;;  %v4817_v14 = vld [vmem:[#allocation43_spill] sm:$0xff]  ;;  %v3627_v60 = vld [vmem:[%s4613_s3 + $0x120] sm:$0xff]  ;;  %v3636_v63 = vld [vmem:[%s4613_s3 + $0x68] sm:$0xff] }
  0x8b   : > { %1033 = vmatpush.msra.mxu3 %v3161_v16  ;;  %962 = vmatpush.msra.mxu0 %v4811_v45  ;;  %v4818_v16 = vld [vmem:[#allocation44_spill] sm:$0xff]  ;;  %4832 = vst [vmem:[#allocation8_spill] sm:$0xff] %v3627_v60  ;;  %v3641_v45 = vld [vmem:[%s4613_s3 + $0x10] sm:$0xff] }
  0x8c   : > { %984 = vmatpush.msra.mxu1 %v4812_v6  ;;  %1010 = vmatpush.msra.mxu2 %v3174_v18  ;;  %v3646_v6 = vld [vmem:[%s4613_s3 + $0xc0] sm:$0xff] }
  0x8d   : > { %1034 = vmatpush.msra.mxu3 %v3181_v22  ;;  %963 = vmatpush.msra.mxu0 %v4813_v7  ;;  %4833 = vst [vmem:[#allocation38_spill] sm:$0xff] %v3646_v6  ;;  %v3653_v7 = vld [vmem:[%s4613_s3 + $0x118] sm:$0xff] }
  0x8e   : > { %2141 = vmatmul.msk.f32.gmra.mxu3 %vm415_vm0, %v3079_v0  ;;  %985 = vmatpush.msra.mxu1 %v4814_v37  ;;  %v4819_v0 = vld [vmem:[#allocation46_spill] sm:$0xff]  ;;  %4834 = vst [vmem:[#allocation39_spill] sm:$0xff] %v3653_v7 }
  0x8f   : > { %1011 = vmatpush.msra.mxu2 %v3192_v24  ;;  %1035 = vmatpush.msra.mxu3 %v3197_v28 }
  0x90   : > { %964 = vmatpush.msra.mxu0 %v4815_v11  ;;  %986 = vmatpush.msra.mxu1 %v4816_v10  ;;  %v3662_v11 = vld [vmem:[%s4613_s3 + $0x60] sm:$0xff]  ;;  %v3667_v10 = vld [vmem:[%s4613_s3 + $0x8] sm:$0xff] }
  0x91   : > { %1012 = vmatpush.msra.mxu2 %v3207_v26  ;;  %1036 = vmatpush.msra.mxu3 %v3212_v41 }
  0x92   : > { %965 = vmatpush.msra.mxu0 %v4817_v14  ;;  %987 = vmatpush.msra.mxu1 %v4818_v16  ;;  %v3672_v14 = vld [vmem:[%s4613_s3 + $0xb8] sm:$0xff]  ;;  %v3679_v16 = vld [vmem:[%s4613_s3 + $0x110] sm:$0xff] }
  0x93   : > { %1013 = vmatpush.msra.mxu2 %v3221_v30  ;;  %1037 = vmatpush.msra.mxu3 %v3228_v32  ;;  %4835 = vst [vmem:[#allocation11_spill] sm:$0xff] %v3672_v14 }
  0x94   : > { %2142 = vmatmul.msk.f32.vlgmr.msra.gmra.mxu0 %vm415_vm0, %v2882_v43  ;;  %2146 = vmatmul.msk.f32.vlgmr.msra.gmra.mxu2 %vm415_vm0, %v3096_v2  ;;  %4836 = vst [vmem:[#allocation10_spill] sm:$0xff] %v3679_v16 }
  0x95   : > { %988 = vmatpush.msra.mxu1 %v4819_v0  ;;  %1038 = vmatpush.msra.mxu3 %v3240_v34  ;;  %v3686_v0 = vld [vmem:[%s4613_s3 + $0x58] sm:$0xff] }
  0x96   : > { %2144 = vmatmul.msk.f32.vlgmr.msra.gmra.mxu1 %vm415_vm0, %v2997_v31  ;;  %2148 = vmatmul.msk.f32.vlgmr.msra.gmra.mxu3 %vm415_vm0, %v3305_v39  ;;  %v3517_v39 = vld [vmem:[%s4613_s3 + $0x140] sm:$0xff] }
  0x97   : > { %2161 = vmatpush.msk.msrb.mxu0 %vm1114_vm1, %v3426_v1  ;;  %2163 = vmatpush.msk.msrb.mxu1 %vm1114_vm1, %v3431_v4  ;;  %4824 = vst [vmem:[#allocation4_spill] sm:$0xff] %v3517_v39 }
  0x98   : > { %2176 = vmatpush.msk.msrb.mxu2 %vm1114_vm1, %v3445_v8  ;;  %2189 = vmatpush.msk.msrb.mxu3 %vm1114_vm1, %v3450_v9 }
  0x99   : > { %1124 = vmatpush.msrb.mxu0 %v3436_v5  ;;  %1150 = vmatpush.msrb.mxu1 %v3455_v12 }
  0x9a   : > { %1189 = vmatpush.msrb.mxu2 %v3464_v13  ;;  %1229 = vmatpush.msrb.mxu3 %v3469_v15  ;;  %v3931_v15 = vld [vmem:[%s4613_s3 + $0x220] sm:$0xff] }
  0x9b   : > { %1125 = vmatpush.msrb.mxu0 %v3474_v17  ;;  %1151 = vmatpush.msrb.mxu1 %v3481_v19  ;;  %4869 = vst [vmem:[#allocation52_spill] sm:$0xff] %v3931_v15 }
  0x9c   : > { %2143 = vmatmul.msk.f32.gmra.mxu0 %vm415_vm0, %v2991_v61  ;;  %2147 = vmatmul.msk.f32.gmra.mxu2 %vm415_vm0, %v3166_v20 }
  0x9d   : > { %1190 = vmatpush.msrb.mxu2 %v3486_v21  ;;  %1230 = vmatpush.msrb.mxu3 %v3491_v23  ;;  %v3796_v21 = vld [vmem:[%s4613_s3 + $0x198] sm:$0xff] }
  0x9e   : > { %2145 = vmatmul.msk.f32.gmra.mxu1 %vm415_vm0, %v3102_v3  ;;  %2149 = vmatmul.msk.f32.gmra.mxu3 %vm415_vm0, %v2137_v55  ;;  %v3585_v55 = vld [vmem:[%s4613_s3 + $0x20] sm:$0xff]  ;;  %4849 = vst [vmem:[#allocation20_spill] sm:$0xff] %v3796_v21 }
  0x9f   : > { %1126 = vmatpush.msrb.mxu0 %v3498_v25  ;;  %1152 = vmatpush.msrb.mxu1 %v3503_v29 }
  0xa0   : > { %1191 = vmatpush.msrb.mxu2 %v3512_v38  ;;  %1231 = vmatpush.msrb.mxu3 %v3517_v39  ;;  %v3775_v39 = vld [vmem:[%s4613_s3 + $0x250] sm:$0xff]  ;;  %v3780_v38 = vld [vmem:[%s4613_s3 + $0x1f8] sm:$0xff] }
  0xa1   : > { %1127 = vmatpush.msrb.mxu0 %v3534_v46  ;;  %1153 = vmatpush.msrb.mxu1 %v3539_v47  ;;  %4846 = vst [vmem:[#allocation48_spill] sm:$0xff] %v3775_v39 }
  0xa2   : > { %1192 = vmatpush.msrb.mxu2 %v3544_v48  ;;  %1232 = vmatpush.msrb.mxu3 %v3551_v49  ;;  %v3751_v49 = vld [vmem:[%s4613_s3 + $0x258] sm:$0xff]  ;;  %v3756_v48 = vld [vmem:[%s4613_s3 + $0x200] sm:$0xff]  ;;  %4847 = vst [vmem:[#allocation18_spill] sm:$0xff] %v3780_v38 }
  0xa3   : > { %1128 = vmatpush.msrb.mxu0 %v3558_v50  ;;  %1154 = vmatpush.msrb.mxu1 %v3563_v51  ;;  %4842 = vst [vmem:[#allocation15_spill] sm:$0xff] %v3751_v49 }
  0xa4   : > { %1193 = vmatpush.msrb.mxu2 %v3568_v52  ;;  %1233 = vmatpush.msrb.mxu3 %v3575_v53  ;;  %v3746_v52 = vld [vmem:[%s4613_s3 + $0x1a8] sm:$0xff]  ;;  %4843 = vst [vmem:[#allocation47_spill] sm:$0xff] %v3756_v48 }
  0xa5   : > { %1129 = vmatpush.msrb.mxu0 %v3580_v54  ;;  %1155 = vmatpush.msrb.mxu1 %v3585_v55  ;;  %4841 = vst [vmem:[#allocation14_spill] sm:$0xff] %v3746_v52 }
  0xa6   : > { %1194 = vmatpush.msrb.mxu2 %v3592_v56  ;;  %1234 = vmatpush.msrb.mxu3 %v3597_v57  ;;  %v3722_v57 = vld [vmem:[%s4613_s3 + $0x208] sm:$0xf]  ;;  %v3727_v56 = vld [vmem:[%s4613_s3 + $0x2b8] sm:$0xf] }
  0xa7   : > { %1130 = vmatpush.msrb.mxu0 %v3610_v27  ;;  %1156 = vmatpush.msrb.mxu1 %v3615_v33  ;;  %4839 = vst [vmem:[#allocation45_spill] sm:$0xff] %v3722_v57 }
  0xa8   : > { %1195 = vmatpush.msrb.mxu2 %v3620_v59  ;;  %1235 = vmatpush.msrb.mxu3 %v3627_v60  ;;  %v3717_v59 = vld [vmem:[%s4613_s3 + $0x260] sm:$0xf]  ;;  %4840 = vst [vmem:[#allocation13_spill] sm:$0xff] %v3727_v56 }
  0xa9   : > { %1131 = vmatpush.msrb.mxu0 %v3636_v63  ;;  %1157 = vmatpush.msrb.mxu1 %v3641_v45 }
  0xaa   : > { %1196 = vmatpush.msrb.mxu2 %v3646_v6  ;;  %1236 = vmatpush.msrb.mxu3 %v3653_v7  ;;  %v3691_v7 = vld [vmem:[%s4613_s3] sm:$0xff]  ;;  %v3696_v6 = vld [vmem:[%s4613_s3 + $0xb0] sm:$0xff] }
  0xab   : > { %1132 = vmatpush.msrb.mxu0 %v3662_v11  ;;  %1158 = vmatpush.msrb.mxu1 %v3667_v10  ;;  %4837 = vst [vmem:[#allocation42_spill] sm:$0xff] %v3696_v6 }
  0xac   : > { %1197 = vmatpush.msrb.mxu2 %v3672_v14  ;;  %1237 = vmatpush.msrb.mxu3 %v3679_v16  ;;  %v3703_v16 = vld [vmem:[%s4613_s3 + $0x108] sm:$0xff]  ;;  %v3708_v14 = vld [vmem:[%s4613_s3 + $0x1b0] sm:$0xf] }
  0xad   : > { %1133 = vmatpush.msrb.mxu0 %v3686_v0  ;;  %1159 = vmatpush.msrb.mxu1 %v3691_v7  ;;  %4838 = vst [vmem:[#allocation12_spill] sm:$0xff] %v3703_v16 }
  0xae   : > { %1198 = vmatpush.msrb.mxu2 %v3696_v6  ;;  %1238 = vmatpush.msrb.mxu3 %v3703_v16 }
  0xaf   : > { %v3393_v43 = vpop.f32.mrf.mxu0  ;;  %2202 = vmatpush.msk.msra.mxu0 %vm1114_vm1, %v3708_v14  ;;  %2226 = vmatpush.msk.msra.mxu1 %vm1114_vm1, %v3717_v59 }
  0xb0   : > { %2228 = vmatpush.msk.msra.mxu2 %vm1114_vm1, %v3722_v57  ;;  %2241 = vmatpush.msk.msra.mxu3 %vm1114_vm1, %v3727_v56  ;;  %v3763_v56 = vld [vmem:[%s4613_s3 + $0x2b0] sm:$0xff]  ;;  %v3770_v57 = vld [vmem:[%s4613_s3 + $0x1a0] sm:$0xff] }
  0xb1   : > { %v3395_v2 = vpop.f32.mrf.mxu1  ;;  %1269 = vmatpush.msra.mxu0 %v3746_v52  ;;  %1317 = vmatpush.msra.mxu1 %v3751_v49  ;;  %4844 = vst [vmem:[#allocation16_spill] sm:$0xff] %v3763_v56 }
  0xb2   : > { %1340 = vmatpush.msra.mxu2 %v3756_v48  ;;  %1375 = vmatpush.msra.mxu3 %v3763_v56  ;;  %4845 = vst [vmem:[#allocation17_spill] sm:$0xff] %v3770_v57  ;;  %v3787_v56 = vld [vmem:[%s4613_s3 + $0x2a8] sm:$0xff] }
  0xb3   : > { %1270 = vmatpush.msra.mxu0 %v3770_v57  ;;  %1318 = vmatpush.msra.mxu1 %v3775_v39  ;;  %4848 = vst [vmem:[#allocation19_spill] sm:$0xff] %v3787_v56  ;;  %v3801_v39 = vld [vmem:[%s4613_s3 + $0x248] sm:$0xff]  ;;  %v3806_v57 = vld [vmem:[%s4613_s3 + $0x1f0] sm:$0xff] }
  0xb4   : > { %1341 = vmatpush.msra.mxu2 %v3780_v38  ;;  %1376 = vmatpush.msra.mxu3 %v3787_v56  ;;  %4850 = vst [vmem:[#allocation21_spill] sm:$0xff] %v3801_v39  ;;  %v3813_v56 = vld [vmem:[%s4613_s3 + $0x2a0] sm:$0xff] }
  0xb5   : > { %4851 = vst [vmem:[#allocation49_spill] sm:$0xff] %v3806_v57  ;;  %1271 = vmatpush.msra.mxu0 %v3796_v21  ;;  %1319 = vmatpush.msra.mxu1 %v3801_v39  ;;  %v3824_v21 = vld [vmem:[%s4613_s3 + $0x190] sm:$0xff]  ;;  %v3829_v39 = vld [vmem:[%s4613_s3 + $0x240] sm:$0xff] }
  0xb6   : > { %4852 = vst [vmem:[#allocation22_spill] sm:$0xff] %v3813_v56  ;;  %1342 = vmatpush.msra.mxu2 %v3806_v57  ;;  %1377 = vmatpush.msra.mxu3 %v3813_v56  ;;  %v3848_v56 = vld [vmem:[%s4613_s3 + $0x188] sm:$0xff]  ;;  %v3853_v57 = vld [vmem:[%s4613_s3 + $0x238] sm:$0xff] }
  0xb7   : > { %4853 = vst [vmem:[#allocation23_spill] sm:$0xff] %v3824_v21  ;;  %1272 = vmatpush.msra.mxu0 %v3824_v21  ;;  %1320 = vmatpush.msra.mxu1 %v3829_v39 }
  0xb8   : > { %v3399_v31 = vpop.f32.mrf.mxu0  ;;  %4854 = vst [vmem:[#allocation24_spill] sm:$0xff] %v3829_v39  ;;  %v3858_v39 = vld [vmem:[%s4613_s3 + $0x1e0] sm:$0xff] }
  0xb9   : > { %4857 = vst [vmem:[#allocation29_spill] sm:$0xff] %v3848_v56  ;;  %1273 = vmatpush.msra.mxu0 %v3848_v56  ;;  %1321 = vmatpush.msra.mxu1 %v3853_v57  ;;  %v3903_v56 = vld [vmem:[%s4613_s3 + $0x178] sm:$0xff] }
  0xba   : > { %4858 = vst [vmem:[#allocation32_spill] sm:$0xff] %v3853_v57 }
  0xbb   : > { %4859 = vst [vmem:[#allocation33_spill] sm:$0xff] %v3858_v39 }
  0xbc   : > { %v3397_v18 = vpop.f32.mrf.mxu2  ;;  %v3403_v24 = vpop.f32.mrf.mxu1 }
  0xbf   : > { %v3401_v22 = vpop.f32.mrf.mxu3 }
  0xc4   : > { %v3407_v20 = vpop.f32.mrf.mxu0 }
  0xc7   : > { %v3411_v3 = vpop.f32.mrf.mxu1 }
  0xc8   : > { %v3405_v61 = vpop.f32.mrf.mxu2 }
  0xcb   : > { %v3409_v28 = vpop.f32.mrf.mxu3 }
  0xce   : > { %v3415_v41 = vpop.f32.mrf.mxu0 }
  0xd1   : > { %v3419_v32 = vpop.f32.mrf.mxu1 }
  0xd2   : > { %v3413_v26 = vpop.f32.mrf.mxu2 }
  0xd3   : > { %v679_v38 = vadd.f32 %v3413_v26, %v3411_v3  ;;  %v3834_v3 = vld [vmem:[%s4613_s3 + $0x1e8] sm:$0xff]  ;;  %v3841_v26 = vld [vmem:[%s4613_s3 + $0x298] sm:$0xff] }
  0xd4   : > { %4855 = vst [vmem:[#allocation25_spill] sm:$0xff] %v3834_v3  ;;  %1343 = vmatpush.msra.mxu2 %v3834_v3  ;;  %1378 = vmatpush.msra.mxu3 %v3841_v26  ;;  %v469_v3 = vadd.f32 %v3395_v2, %v3393_v43  ;;  %v3877_v43 = vld [vmem:[%s4613_s3 + $0x180] sm:$0xff]  ;;  %v3882_v2 = vld [vmem:[%s4613_s3 + $0x230] sm:$0xff] }
  0xd5   : > { %v3417_v30 = vpop.f32.mrf.mxu3  ;;  %4856 = vst [vmem:[#allocation28_spill] sm:$0xff] %v3841_v26  ;;  %v3867_v26 = vld [vmem:[%s4613_s3 + $0x290] sm:$0xff]  ;;  %1274 = vmatpush.msra.mxu0 %v3877_v43  ;;  %1322 = vmatpush.msra.mxu1 %v3882_v2 }
  0xd6   : > { %4860 = vst [vmem:[#allocation36_spill] sm:$0xff] %v3867_v26  ;;  %v720_v21 = vadd.f32 %v3417_v30, %v679_v38  ;;  %1344 = vmatpush.msra.mxu2 %v3858_v39  ;;  %1379 = vmatpush.msra.mxu3 %v3867_v26  ;;  %v3887_v30 = vld [vmem:[%s4613_s3 + $0x1d8] sm:$0xff]  ;;  %v3896_v26 = vld [vmem:[%s4613_s3 + $0x288] sm:$0xff] }
  0xd7   : > { %4861 = vst [vmem:[#allocation37_spill] sm:$0xff] %v3877_v43  ;;  %1275 = vmatpush.msra.mxu0 %v3903_v56  ;;  %v3926_v43 = vld [vmem:[%s4613_s3 + $0x170] sm:$0xff] }
  0xd8   : > { %v3505_v36 = vpop.f32.mrf.mxu0  ;;  %4862 = vst [vmem:[#allocation40_spill] sm:$0xff] %v3882_v2  ;;  %1345 = vmatpush.msra.mxu2 %v3887_v30  ;;  %1380 = vmatpush.msra.mxu3 %v3896_v26  ;;  %v518_v2 = vadd.f32 %v3397_v18, %v469_v3  ;;  %v3941_v3 = vld [vmem:[%s4613_s3 + $0x1c8] sm:$0xff] }
  0xd9   : > { %4863 = vst [vmem:[#allocation41_spill] sm:$0xff] %v3887_v30  ;;  %v758_v18 = vadd.f32 %v3505_v36, %v720_v21  ;;  %v3951_v21 = vld [vmem:[%s4613_s3 + $0x168] sm:$0xff]  ;;  %1276 = vmatpush.msra.mxu0 %v3926_v43  ;;  %v3964_v36 = vld [vmem:[%s4613_s3 + $0x1c0] sm:$0xff] }
  0xda   : > { %4864 = vst [vmem:[#allocation43_spill] sm:$0xff] %v3896_v26  ;;  %v3921_v26 = vld [vmem:[%s4613_s3 + $0x280] sm:$0xff] }
  0xdb   : > { %v3523_v42 = vpop.f32.mrf.mxu1  ;;  %4867 = vst [vmem:[#allocation50_spill] sm:$0xff] %v3921_v26  ;;  %1381 = vmatpush.msra.mxu3 %v3921_v26  ;;  %v3969_v26 = vld [vmem:[%s4613_s3 + $0x270] sm:$0xff]  ;;  %1277 = vmatpush.msra.mxu0 %v3951_v21 }
  0xdc   : > { %v3421_v34 = vpop.f32.mrf.mxu2  ;;  %4868 = vst [vmem:[#allocation51_spill] sm:$0xff] %v3926_v43 }
  0xdd   : > { %4870 = vst [vmem:[#allocation53_spill] sm:$0xff] %v3941_v3 }
  0xde   : > { %4873 = vst [vmem:[#allocation56_spill] sm:$0xff] %v3969_v26 }
  0xdf   : > { %v3519_v40 = vpop.f32.mrf.mxu3 }
  0xe2   : > { %v3603_v35 = vpop.f32.mrf.mxu0 }
  0xe5   : > { %v3629_v62 = vpop.f32.mrf.mxu1 }
  0xe8   : > { %v3529_v44 = vpop.f32.mrf.mxu2 }
  0xf0   : > { %v3599_v58 = vpop.f32.mrf.mxu3 }
  0xf1   : > { %v839_v38 = vadd.f32 %v3599_v58, %v3529_v44  ;;  %v3908_v44 = vld [vmem:[%s4613_s3 + $0x228] sm:$0xff]  ;;  %v3913_v58 = vld [vmem:[%s4613_s3 + $0x1d0] sm:$0xff] }
  0xf2   : > { %v3655_v37 = vpop.f32.mrf.mxu2  ;;  %4865 = vst [vmem:[#allocation44_spill] sm:$0xff] %v3908_v44  ;;  %1323 = vmatpush.msra.mxu1 %v3908_v44  ;;  %1346 = vmatpush.msra.mxu2 %v3913_v58  ;;  %v3946_v44 = vld [vmem:[%s4613_s3 + $0x278] sm:$0xff] }
  0xf3   : > { %4866 = vst [vmem:[#allocation46_spill] sm:$0xff] %v3913_v58  ;;  %1382 = vmatpush.msra.mxu3 %v3946_v44  ;;  %v3983_v58 = vld [vmem:[%s4613_s3 + $0x210] sm:$0xff] }
  0xf4   : > { %4871 = vst [vmem:[#allocation54_spill] sm:$0xff] %v3946_v44  ;;  %1324 = vmatpush.msra.mxu1 %v3931_v15  ;;  %1347 = vmatpush.msra.mxu2 %v3941_v3  ;;  %v564_v15 = vadd.f32 %v3401_v22, %v518_v2  ;;  %v796_v44 = vadd.f32 %v3523_v42, %v758_v18 }
  0xf5   : > { %v3710_v60 = vpop.f32.mrf.mxu0  ;;  %1383 = vmatpush.msra.mxu3 %v3969_v26 }
  0xf6   : > { %1348 = vmatpush.msra.mxu2 %v3964_v36 }
  0xf8   : > { %v3735_v16 = vpop.f32.mrf.mxu1 }
  0xf9   : > { %v3729_v53 = vpop.f32.mrf.mxu3 }
  0xfb   : > { %v3741_v6 = vpop.f32.mrf.mxu2 }
  0xfe   : > { %v3789_v48 = vpop.f32.mrf.mxu0 }
 0x101   : > { %v3817_v49 = vpop.f32.mrf.mxu1 }
 0x105   : > { %v3870_v52 = vpop.f32.mrf.mxu2 }
 0x108   : > { %v944_v23 = vpop.f32.mrf.mxu3 }
 0x111   : > { %v947_v39 = vpop.f32.mrf.mxu3  ;;  %v967_v57 = vpop.f32.mrf.mxu0 }
 0x112   : > { %v968_v30 = vadd.f32 %v967_v57, %v944_v23  ;;  %v682_v23 = vadd.f32 %v3421_v34, %v3419_v32  ;;  %v867_v32 = vadd.f32 %v3710_v60, %v839_v38  ;;  %v3959_v34 = vld [vmem:[%s4613_s3 + $0x218] sm:$0xff]  ;;  %v472_v60 = vadd.f32 %v3403_v24, %v3399_v31  ;;  %v3978_v38 = vld [vmem:[%s4613_s3 + $0x160] sm:$0xff]  ;;  %v3996_v24 = vld [vmem:[%s4613_s3 + $0x268] sm:$0xff] }
 0x113   : > { %v990_v57 = vpop.f32.mrf.mxu1  ;;  %4872 = vst [vmem:[#allocation55_spill] sm:$0xff] %v3959_v34  ;;  %1325 = vmatpush.msra.mxu1 %v3959_v34  ;;  %v3991_v31 = vld [vmem:[%s4613_s3 + $0x1b8] sm:$0xff]  ;;  %1278 = vmatpush.msra.mxu0 %v3978_v38 }
 0x114   : > { %v996_v43 = vadd.f32 %v990_v57, %v968_v30  ;;  %4874 = vst [vmem:[#allocation57_spill] sm:$0xff] %v3991_v31  ;;  %v721_v3 = vadd.f32 %v3519_v40, %v682_v23  ;;  %v892_v2 = vadd.f32 %v3735_v16, %v867_v32  ;;  %v842_v30 = vadd.f32 %v3729_v53, %v3655_v37 }
 0x115   : > { %4875 = vst [vmem:[#allocation58_spill] sm:$0xff] %v3996_v24  ;;  %1326 = vmatpush.msra.mxu1 %v3983_v58  ;;  %v519_v34 = vadd.f32 %v3405_v61, %v472_v60  ;;  %1349 = vmatpush.msra.mxu2 %v3991_v31  ;;  %v610_v40 = vadd.f32 %v3407_v20, %v564_v15  ;;  %v2345_v61 = vld [vmem:[%s4612_s2] ss:$0 sm:$0xff] }
 0x116   : > { %1384 = vmatpush.msra.mxu3 %v3996_v24  ;;  %v925_v16 = vadd.f32 %v3741_v6, %v892_v2 }
 0x117   : > { %v1015_v22 = vpop.f32.mrf.mxu2  ;;  %v1048_v37 = vmax.f32 %v610_v40, %v796_v44  ;;  %v565_v60 = vadd.f32 %v3409_v28, %v519_v34  ;;  %v4065_v40 = vld [vmem:[%s4613_s3 + $0x360] sm:$0xff] }
 0x118   : > { %v1021_v57 = vadd.f32 %v1015_v22, %v996_v43  ;;  %v759_v43 = vadd.f32 %v3603_v35, %v721_v3  ;;  %v868_v22 = vadd.f32 %v3789_v48, %v842_v30 }
 0x119   : > { %v970_v42 = vpop.f32.mrf.mxu0  ;;  %v1040_v18 = vpop.f32.mrf.mxu3  ;;  %v611_v35 = vadd.f32 %v3415_v41, %v565_v60  ;;  %v4892_v60 = vld [vmem:[#allocation6_spill] sm:$0xff] }
 0x11a   : > { %v971_v23 = vadd.f32 %v970_v42, %v947_v39  ;;  %v1046_v32 = vadd.f32 %v1040_v18, %v1021_v57  ;;  %v797_v15 = vadd.f32 %v3629_v62, %v759_v43  ;;  %v893_v39 = vadd.f32 %v3817_v49, %v868_v22  ;;  %v4035_v62 = vld [vmem:[%s4613_s3 + $0x368] sm:$0xf]  ;;  %v4889_v43 = vld [vmem:[#allocation23_spill] sm:$0xff]  ;;  %v4890_v22 = vld [vmem:[#allocation24_spill] sm:$0xff] }
 0x11b   : > { %v993_v53 = vpop.f32.mrf.mxu1  ;;  %v4054_v42 = vld [vmem:[%s4613_s3 + $0x308] sm:$0xff] }
 0x11c   : > { %v1050_v26 = vmax.f32 %v925_v16, %v1046_v32  ;;  %v997_v31 = vadd.f32 %v993_v53, %v971_v23  ;;  %v926_v48 = vadd.f32 %v3870_v52, %v893_v39  ;;  %v1049_v28 = vmax.f32 %v611_v35, %v797_v15  ;;  %v4074_v16 = vld [vmem:[%s4613_s3 + $0x300] sm:$0xff]  ;;  %v4082_v23 = vld [vmem:[%s4613_s3 + $0x358] sm:$0xff]  ;;  %v4887_v53 = vld [vmem:[#allocation30_spill] sm:$0xff] }
 0x11d   : > { %v4147_v32 = vld [vmem:[%s4613_s3 + $0x338] sm:$0xff]  ;;  %v4895_v39 = vld [vmem:[#allocation34_spill] sm:$0xff] }
 0x11e   : > { %v1052_v24 = vmax.f32 %v1048_v37, %v1050_v26  ;;  %v4888_v37 = vld [vmem:[#allocation31_spill] sm:$0xff]  ;;  %v4894_v15 = vld [vmem:[#allocation32_spill] sm:$0xff] }
 0x11f   : > { %v1018_v20 = vpop.f32.mrf.mxu2  ;;  %v4898_v35 = vld [vmem:[#allocation40_spill] sm:$0xff] }
 0x120   : > { %v1058_v6 = vadd.f32 %v2345_v61, %v1052_v24  ;;  %v1022_v44 = vadd.f32 %v1018_v20, %v997_v31  ;;  %v4040_v31 = vld [vmem:[%s4613_s3 + $0x310] sm:$0xf]  ;;  %v4893_v20 = vld [vmem:[#allocation29_spill] sm:$0xff] }
 0x121   : > { %v1043_v3 = vpop.f32.mrf.mxu3 }
 0x122   : > { %v1060_v2 = vmax.f32 %v1058_v6, 0.0  ;;  %v1047_v30 = vadd.f32 %v1043_v3, %v1022_v44  ;;  %v4896_v6 = vld [vmem:[#allocation35_spill] sm:$0xff]  ;;  %v4897_v44 = vld [vmem:[#allocation37_spill] sm:$0xff] }
 0x123   : > { %v4899_v3 = vld [vmem:[#allocation9_spill] sm:$0xff] }
 0x124   : > { %v1051_v26 = vmax.f32 %v926_v48, %v1047_v30  ;;  %1063 = vst.msk [vmem:[#allocation2] sm:$0x1] %vm1062_vm2, %v1060_v2  ;;  %v4900_v48 = vld [vmem:[#allocation8_spill] sm:$0xff]  ;;  %v4902_v30 = vld [vmem:[#allocation38_spill] sm:$0xff] }
 0x125   : > { %1066 = vst.msk [vmem:[#allocation2 + $0x7] sm:$0x2] %vm1065_vm3, %v1060_v2 }
 0x126   : > { %v1053_v49 = vmax.f32 %v1049_v28, %v1051_v26  ;;  %1068 = vst.msk [vmem:[#allocation2 - $0x1] sm:$0x4] %vm1067_vm4, %v1060_v2  ;;  %v4903_v28 = vld [vmem:[#allocation39_spill] sm:$0xff] }
 0x127   : > { %1070 = vst.msk [vmem:[#allocation2 + $0x6] sm:$0x8] %vm1069_vm5, %v1060_v2  ;;  %v4904_v26 = vld [vmem:[#allocation51_spill] sm:$0xff] }
 0x128   : > { %v1059_v41 = vadd.f32 %v2345_v61, %v1053_v49  ;;  %1072 = vst.msk [vmem:[#allocation2 - $0x2] sm:$0x10] %vm1071_vm6, %v1060_v2  ;;  %v4891_v61 = vld [vmem:[#allocation7_spill] sm:$0xff]  ;;  %v4905_v49 = vld [vmem:[#allocation52_spill] sm:$0xff] }
 0x129   : > { %1074 = vst.msk [vmem:[#allocation2 + $0x5] sm:$0x20] %vm1073_vm7, %v1060_v2 }
 0x12a   : > { %v1061_v52 = vmax.f32 %v1059_v41, 0.0  ;;  %1078 = vst.msk [vmem:[#allocation2 + $0x4] sm:$0x80] %vm1077_vm8, %v1060_v2  ;;  %v4906_v41 = vld [vmem:[#allocation11_spill] sm:$0xff] }
 0x12b   : > { %1076 = vst.msk [vmem:[#allocation2 - $0x3] sm:$0x40] %vm1075_vm9, %v1060_v2  ;;  %v4901_v2 = vld [vmem:[#allocation44_spill] sm:$0xff] }
 0x12c   : > { %1079 = vst.msk [vmem:[#allocation2 + $0x4] sm:$0x1] %vm1062_vm2, %v1061_v52 }
 0x12d   : > { %1080 = vst.msk [vmem:[#allocation2 + $0xb] sm:$0x2] %vm1065_vm3, %v1061_v52 }
 0x12e   : > { %1081 = vst.msk [vmem:[#allocation2 + $0x3] sm:$0x4] %vm1067_vm4, %v1061_v52 }
 0x12f   : > { %1082 = vst.msk [vmem:[#allocation2 + $0xa] sm:$0x8] %vm1069_vm5, %v1061_v52 }
 0x130   : > { %1083 = vst.msk [vmem:[#allocation2 + $0x2] sm:$0x10] %vm1071_vm6, %v1061_v52 }
 0x131   : > { %1084 = vst.msk [vmem:[#allocation2 + $0x9] sm:$0x20] %vm1073_vm7, %v1061_v52  ;;  %v4907_v52 = vld [vmem:[#allocation10_spill] sm:$0xff] }
 0x133   : > { %v1085_v34 = vld [vmem:[#allocation2] sm:$0x1f] }
 0x134   : > { %v4042_v24 = vld [vmem:[#allocation2 + $0x8] sm:$0x1f]  ;;  %2164 = vmatmul.msk.f32.vlgmr.msrb.gmra.mxu1 %vm1110_vm10, %v1085_v34 }
 0x135   : > { %2162 = vmatmul.msk.f32.vlgmr.msrb.gmra.mxu0 %vm1110_vm10, %v4042_v24  ;;  %v4047_v57 = vld [vmem:[#allocation2 + $0x1] sm:$0x1f]  ;;  %2267 = vmatpush.msk.msrb.mxu1 %vm1114_vm1, %v4035_v62 }
 0x136   : > { %2177 = vmatmul.msk.f32.vlgmr.msrb.gmra.mxu2 %vm1110_vm10, %v4047_v57  ;;  %v4058_v18 = vld [vmem:[#allocation2 + $0x9] sm:$0x1f]  ;;  %2254 = vmatpush.msk.msrb.mxu0 %vm1114_vm1, %v4040_v31 }
 0x137   : > { %2190 = vmatmul.msk.f32.vlgmr.msrb.gmra.mxu3 %vm1110_vm10, %v4058_v18  ;;  %2269 = vmatpush.msk.msrb.mxu2 %vm1114_vm1, %v3426_v1  ;;  %v4089_v1 = vld [vmem:[%s4613_s3 + $0x2f8] sm:$0xff] }
 0x138   : > { %2271 = vmatpush.msk.msrb.mxu3 %vm1114_vm1, %v3431_v4  ;;  %1411 = vmatpush.msrb.mxu0 %v4054_v42  ;;  %v4096_v4 = vld [vmem:[%s4613_s3 + $0x350] sm:$0xff] }
 0x139   : > { %1447 = vmatpush.msrb.mxu1 %v4065_v40  ;;  %1468 = vmatpush.msrb.mxu2 %v3436_v5  ;;  %v4104_v5 = vld [vmem:[#allocation2 + $0x2] sm:$0x1f] }
 0x13a   : > { %1488 = vmatpush.msrb.mxu3 %v3455_v12  ;;  %1412 = vmatpush.msrb.mxu0 %v4074_v16  ;;  %v4109_v12 = vld [vmem:[%s4613_s3 + $0x2f0] sm:$0xff] }
 0x13b   : > { %1448 = vmatpush.msrb.mxu1 %v4082_v23  ;;  %1469 = vmatpush.msrb.mxu2 %v3474_v17  ;;  %v4117_v17 = vld [vmem:[%s4613_s3 + $0x348] sm:$0xff] }
 0x13c   : > { %1489 = vmatpush.msrb.mxu3 %v3481_v19  ;;  %1413 = vmatpush.msrb.mxu0 %v4089_v1  ;;  %v4125_v19 = vld [vmem:[%s4613_s3 + $0x2e8] sm:$0xff] }
 0x13d   : > { %1449 = vmatpush.msrb.mxu1 %v4096_v4  ;;  %1470 = vmatpush.msrb.mxu2 %v3498_v25  ;;  %v4133_v25 = vld [vmem:[%s4613_s3 + $0x340] sm:$0xff] }
 0x13e   : > { %1490 = vmatpush.msrb.mxu3 %v3503_v29  ;;  %2203 = vmatmul.msk.f32.vlgmr.msra.gmra.mxu0 %vm1110_vm10, %v4104_v5  ;;  %v4140_v29 = vld [vmem:[%s4613_s3 + $0x2e0] sm:$0xff] }
 0x13f   : > { %2227 = vmatmul.msk.f32.vlgmr.msra.gmra.mxu1 %vm1110_vm10, %v4042_v24  ;;  %2229 = vmatmul.msk.f32.vlgmr.msra.gmra.mxu2 %vm1110_vm10, %v1085_v34  ;;  %v4908_v34 = vld [vmem:[#allocation55_spill] sm:$0xff] }
 0x140   : > { %2242 = vmatmul.msk.f32.vlgmr.msra.gmra.mxu3 %vm1110_vm10, %v4047_v57  ;;  %1414 = vmatpush.msrb.mxu0 %v4109_v12 }
 0x141   : > { %1450 = vmatpush.msrb.mxu1 %v4117_v17  ;;  %1471 = vmatpush.msrb.mxu2 %v3534_v46  ;;  %v4154_v46 = vld [vmem:[%s4613_s3 + $0x2d8] sm:$0xff] }
 0x142   : > { %1491 = vmatpush.msrb.mxu3 %v3539_v47  ;;  %1415 = vmatpush.msrb.mxu0 %v4125_v19  ;;  %v4161_v47 = vld [vmem:[%s4613_s3 + $0x330] sm:$0xff] }
 0x143   : > { %1451 = vmatpush.msrb.mxu1 %v4133_v25  ;;  %1472 = vmatpush.msrb.mxu2 %v3558_v50  ;;  %v4168_v50 = vld [vmem:[%s4613_s3 + $0x2d0] sm:$0xff] }
 0x144   : > { %1492 = vmatpush.msrb.mxu3 %v3563_v51  ;;  %1416 = vmatpush.msrb.mxu0 %v4140_v29  ;;  %v4175_v51 = vld [vmem:[%s4613_s3 + $0x328] sm:$0xff] }
 0x145   : > { %1452 = vmatpush.msrb.mxu1 %v4147_v32  ;;  %1473 = vmatpush.msrb.mxu2 %v3580_v54  ;;  %v4182_v54 = vld [vmem:[%s4613_s3 + $0x2c8] sm:$0xff] }
 0x146   : > { %1493 = vmatpush.msrb.mxu3 %v3585_v55  ;;  %1417 = vmatpush.msrb.mxu0 %v4154_v46  ;;  %v4189_v55 = vld [vmem:[%s4613_s3 + $0x320] sm:$0xff] }
 0x147   : > { %1453 = vmatpush.msrb.mxu1 %v4161_v47  ;;  %1474 = vmatpush.msrb.mxu2 %v3610_v27  ;;  %v4196_v27 = vld [vmem:[%s4613_s3 + $0x2c0] sm:$0xff] }
 0x148   : > { %1494 = vmatpush.msrb.mxu3 %v3615_v33  ;;  %1418 = vmatpush.msrb.mxu0 %v4168_v50  ;;  %v4203_v33 = vld [vmem:[%s4613_s3 + $0x318] sm:$0xff] }
 0x149   : > { %1454 = vmatpush.msrb.mxu1 %v4175_v51  ;;  %1475 = vmatpush.msrb.mxu2 %v3636_v63  ;;  %v4876_v63 = vld [vmem:[#allocation3_spill] sm:$0xff] }
 0x14a   : > { %1495 = vmatpush.msrb.mxu3 %v3641_v45  ;;  %1419 = vmatpush.msrb.mxu0 %v4182_v54  ;;  %v4877_v45 = vld [vmem:[#allocation14_spill] sm:$0xff] }
 0x14b   : > { %1455 = vmatpush.msrb.mxu1 %v4189_v55  ;;  %1476 = vmatpush.msrb.mxu2 %v3662_v11  ;;  %v4879_v11 = vld [vmem:[#allocation27_spill] sm:$0xff] }
 0x14c   : > { %1496 = vmatpush.msrb.mxu3 %v3667_v10  ;;  %1420 = vmatpush.msrb.mxu0 %v4196_v27  ;;  %v4881_v10 = vld [vmem:[#allocation17_spill] sm:$0xff] }
 0x14d   : > { %1456 = vmatpush.msrb.mxu1 %v4203_v33  ;;  %1477 = vmatpush.msrb.mxu2 %v3686_v0  ;;  %v4884_v0 = vld [vmem:[#allocation4_spill] sm:$0xff] }
 0x14e   : > { %1497 = vmatpush.msrb.mxu3 %v3691_v7  ;;  %2255 = vmatmul.msk.f32.vlgmr.msrb.gmra.mxu0 %vm1110_vm10, %v4058_v18  ;;  %v4878_v7 = vld [vmem:[#allocation15_spill] sm:$0xff] }
 0x14f   : > { %2268 = vmatmul.msk.f32.vlgmr.msrb.gmra.mxu1 %vm1110_vm10, %v4104_v5  ;;  %2270 = vmatmul.msk.f32.vlgmr.msrb.gmra.mxu2 %vm1110_vm10, %v4047_v57 }
 0x150   : > { %2272 = vmatmul.msk.f32.vlgmr.msrb.gmra.mxu3 %vm1110_vm10, %v4042_v24  ;;  %2273 = vmatpush.msk.msra.mxu0 %vm1114_vm1, %v3445_v8  ;;  %v4880_v8 = vld [vmem:[#allocation26_spill] sm:$0xff] }
 0x151   : > { %2275 = vmatpush.msk.msra.mxu1 %vm1114_vm1, %v3450_v9  ;;  %2277 = vmatpush.msk.msra.mxu2 %vm1114_vm1, %v3708_v14  ;;  %v4882_v9 = vld [vmem:[#allocation48_spill] sm:$0xff]  ;;  %v4883_v14 = vld [vmem:[#allocation5_spill] sm:$0xff] }
 0x152   : > { %2279 = vmatpush.msk.msra.mxu3 %vm1114_vm1, %v3717_v59  ;;  %1508 = vmatpush.msra.mxu0 %v3464_v13  ;;  %v4885_v59 = vld [vmem:[#allocation20_spill] sm:$0xff]  ;;  %v4886_v13 = vld [vmem:[#allocation21_spill] sm:$0xff] }
 0x153   : > { %1529 = vmatpush.msra.mxu1 %v4876_v63  ;;  %1554 = vmatpush.msra.mxu2 %v4877_v45  ;;  %v4909_v63 = vld [vmem:[#allocation42_spill] sm:$0xff] }
 0x154   : > { %1575 = vmatpush.msra.mxu3 %v4878_v7  ;;  %1509 = vmatpush.msra.mxu0 %v4879_v11  ;;  %v1544_v45 = vld [vmem:[#allocation2 + $0xa] sm:$0x1f]  ;;  %v4912_v7 = vld [vmem:[#allocation13_spill] sm:$0xff]  ;;  %v4916_v11 = vld [vmem:[#allocation19_spill] sm:$0xff] }
 0x155   : > { %1530 = vmatpush.msra.mxu1 %v4880_v8  ;;  %1555 = vmatpush.msra.mxu2 %v4881_v10  ;;  %v4918_v8 = vld [vmem:[#allocation22_spill] sm:$0xff]  ;;  %v1685_v10 = vld [vmem:[%s4615_s5 + $0x18] sm:$0xff] }
 0x156   : > { %1576 = vmatpush.msra.mxu3 %v4882_v9  ;;  %1510 = vmatpush.msra.mxu0 %v4883_v14  ;;  %v2294_v9 = vld [vmem:[%s4615_s5 + $0x70] sm:$0xff] }
 0x157   : > { %1531 = vmatpush.msra.mxu1 %v4884_v0  ;;  %1556 = vmatpush.msra.mxu2 %v4885_v59  ;;  %v2310_v0 = vld [vmem:[%s4615_s5 + $0xe8] sm:$0xff]  ;;  %v1684_v59 = vld [vmem:[%s4615_s5 + $0x10] sm:$0xff] }
 0x158   : > { %1577 = vmatpush.msra.mxu3 %v4886_v13  ;;  %1511 = vmatpush.msra.mxu0 %v4887_v53  ;;  %v2293_v13 = vld [vmem:[%s4615_s5 + $0x68] sm:$0xff]  ;;  %v2309_v53 = vld [vmem:[%s4615_s5 + $0xe0] sm:$0xff] }
 0x159   : > { %1532 = vmatpush.msra.mxu1 %v4888_v37  ;;  %1557 = vmatpush.msra.mxu2 %v4889_v43  ;;  %v1683_v37 = vld [vmem:[%s4615_s5 + $0x8] sm:$0xff]  ;;  %v2292_v43 = vld [vmem:[%s4615_s5 + $0x60] sm:$0xff] }
 0x15a   : > { %1578 = vmatpush.msra.mxu3 %v4890_v22  ;;  %1512 = vmatpush.msra.mxu0 %v4891_v61 }
 0x15b   : > { %1533 = vmatpush.msra.mxu1 %v4892_v60  ;;  %1558 = vmatpush.msra.mxu2 %v4893_v20  ;;  %v2308_v60 = vld [vmem:[%s4615_s5 + $0xd8] sm:$0xff] }
 0x15c   : > { %1579 = vmatpush.msra.mxu3 %v4894_v15  ;;  %1513 = vmatpush.msra.mxu0 %v4895_v39  ;;  %v1682_v15 = vld [vmem:[%s4615_s5] sm:$0xff]  ;;  %v2291_v39 = vld [vmem:[%s4615_s5 + $0x58] sm:$0xff] }
 0x15d   : > { %1534 = vmatpush.msra.mxu1 %v4896_v6  ;;  %1559 = vmatpush.msra.mxu2 %v4897_v44  ;;  %v2307_v6 = vld [vmem:[%s4615_s5 + $0xd0] sm:$0xff]  ;;  %v2332_v44 = vld [vmem:[%s4615_s5 + $0x188] sm:$0xff] }
 0x15e   : > { %1580 = vmatpush.msra.mxu3 %v4898_v35  ;;  %1514 = vmatpush.msra.mxu0 %v4899_v3  ;;  %v2290_v35 = vld [vmem:[%s4615_s5 + $0x50] sm:$0xff]  ;;  %v2306_v3 = vld [vmem:[%s4615_s5 + $0xc8] sm:$0xff] }
 0x15f   : > { %1535 = vmatpush.msra.mxu1 %v4900_v48  ;;  %1560 = vmatpush.msra.mxu2 %v3903_v56  ;;  %v4910_v56 = vld [vmem:[#allocation12_spill] sm:$0xff] }
 0x160   : > { %1581 = vmatpush.msra.mxu3 %v4901_v2  ;;  %1515 = vmatpush.msra.mxu0 %v4902_v30  ;;  %v2321_v48 = vld [vmem:[%s4615_s5 + $0x138] sm:$0xff]  ;;  %v2331_v2 = vld [vmem:[%s4615_s5 + $0x180] sm:$0xff] }
 0x161   : > { %1536 = vmatpush.msra.mxu1 %v4903_v28  ;;  %1561 = vmatpush.msra.mxu2 %v4904_v26  ;;  %v2305_v28 = vld [vmem:[%s4615_s5 + $0xc0] sm:$0xff]  ;;  %v2320_v26 = vld [vmem:[%s4615_s5 + $0x130] sm:$0xff] }
 0x162   : > { %1582 = vmatpush.msra.mxu3 %v4905_v49  ;;  %1516 = vmatpush.msra.mxu0 %v4906_v41  ;;  %v2330_v49 = vld [vmem:[%s4615_s5 + $0x178] sm:$0xff] }
 0x163   : > { %1537 = vmatpush.msra.mxu1 %v4907_v52  ;;  %1562 = vmatpush.msra.mxu2 %v3951_v21  ;;  %v4911_v21 = vld [vmem:[#allocation45_spill] sm:$0xff]  ;;  %v2304_v52 = vld [vmem:[%s4615_s5 + $0xb8] sm:$0xff] }
 0x164   : > { %1583 = vmatpush.msra.mxu3 %v4908_v34  ;;  %1517 = vmatpush.msra.mxu0 %v4909_v63  ;;  %v2319_v34 = vld [vmem:[%s4615_s5 + $0x128] sm:$0xff]  ;;  %v2329_v63 = vld [vmem:[%s4615_s5 + $0x170] sm:$0xff] }
 0x165   : > { %1538 = vmatpush.msra.mxu1 %v4910_v56  ;;  %1563 = vmatpush.msra.mxu2 %v3978_v38  ;;  %v4914_v38 = vld [vmem:[#allocation16_spill] sm:$0xff] }
 0x166   : > { %1584 = vmatpush.msra.mxu3 %v3983_v58  ;;  %2274 = vmatmul.msk.f32.vlgmr.msra.gmra.mxu0 %vm1110_vm10, %v4058_v18  ;;  %v4913_v58 = vld [vmem:[#allocation47_spill] sm:$0xff] }
 0x167   : > { %2276 = vmatmul.msk.f32.vlgmr.msra.gmra.mxu1 %vm1110_vm10, %v4104_v5  ;;  %2278 = vmatmul.msk.f32.vlgmr.msra.gmra.mxu2 %vm1110_vm10, %v1544_v45 }
 0x168   : > { %2280 = vmatmul.msk.f32.vlgmr.msra.gmra.mxu3 %vm1110_vm10, %v4047_v57  ;;  %2281 = vmatpush.msk.msrb.mxu0 %vm1114_vm1, %v4911_v21  ;;  %v4915_v57 = vld [vmem:[#allocation18_spill] sm:$0xff]  ;;  %v2303_v21 = vld [vmem:[%s4615_s5 + $0xb0] sm:$0xff] }
 0x169   : > { %2283 = vmatpush.msk.msrb.mxu1 %vm1114_vm1, %v4912_v7  ;;  %2285 = vmatpush.msk.msrb.mxu2 %vm1114_vm1, %v4040_v31  ;;  %v4917_v31 = vld [vmem:[#allocation49_spill] sm:$0xff] }
 0x16a   : > { %2287 = vmatpush.msk.msrb.mxu3 %vm1114_vm1, %v4035_v62  ;;  %1595 = vmatpush.msrb.mxu0 %v4913_v58  ;;  %v4919_v62 = vld [vmem:[#allocation25_spill] sm:$0xff]  ;;  %v2328_v58 = vld [vmem:[%s4615_s5 + $0x168] sm:$0xff] }
 0x16b   : > { %1615 = vmatpush.msrb.mxu1 %v4914_v38  ;;  %1636 = vmatpush.msrb.mxu2 %v4054_v42  ;;  %v4920_v42 = vld [vmem:[#allocation28_spill] sm:$0xff]  ;;  %v2318_v7 = vld [vmem:[%s4615_s5 + $0x120] sm:$0xff]  ;;  %v2302_v38 = vld [vmem:[%s4615_s5 + $0xa8] sm:$0xff] }
 0x16c   : > { %1657 = vmatpush.msrb.mxu3 %v4065_v40  ;;  %1596 = vmatpush.msrb.mxu0 %v4915_v57  ;;  %v4921_v40 = vld [vmem:[#allocation33_spill] sm:$0xff]  ;;  %v2317_v57 = vld [vmem:[%s4615_s5 + $0x118] sm:$0xff] }
 0x16d   : > { %1616 = vmatpush.msrb.mxu1 %v4916_v11  ;;  %1637 = vmatpush.msrb.mxu2 %v4074_v16  ;;  %v4922_v16 = vld [vmem:[#allocation36_spill] sm:$0xff]  ;;  %v2327_v11 = vld [vmem:[%s4615_s5 + $0x160] sm:$0xff] }
 0x16e   : > { %1658 = vmatpush.msrb.mxu3 %v4082_v23  ;;  %1597 = vmatpush.msrb.mxu0 %v4917_v31  ;;  %v4923_v23 = vld [vmem:[#allocation41_spill] sm:$0xff] }
 0x16f   : > { %1617 = vmatpush.msrb.mxu1 %v4918_v8  ;;  %1638 = vmatpush.msrb.mxu2 %v4089_v1  ;;  %v4924_v1 = vld [vmem:[#allocation43_spill] sm:$0xff]  ;;  %v2301_v31 = vld [vmem:[%s4615_s5 + $0xa0] sm:$0xff] }
 0x170   : > { %1659 = vmatpush.msrb.mxu3 %v4096_v4  ;;  %1598 = vmatpush.msrb.mxu0 %v4919_v62  ;;  %v4925_v4 = vld [vmem:[#allocation46_spill] sm:$0xff]  ;;  %v2316_v8 = vld [vmem:[%s4615_s5 + $0x110] sm:$0xff]  ;;  %v2326_v62 = vld [vmem:[%s4615_s5 + $0x158] sm:$0xff] }
 0x171   : > { %1618 = vmatpush.msrb.mxu1 %v4920_v42  ;;  %1639 = vmatpush.msrb.mxu2 %v4109_v12  ;;  %v4926_v12 = vld [vmem:[#allocation50_spill] sm:$0xff] }
 0x172   : > { %1660 = vmatpush.msrb.mxu3 %v4117_v17  ;;  %1599 = vmatpush.msrb.mxu0 %v4921_v40  ;;  %v4927_v17 = vld [vmem:[#allocation53_spill] sm:$0xff]  ;;  %v2315_v40 = vld [vmem:[%s4615_s5 + $0x108] sm:$0xff] }
 0x173   : > { %1619 = vmatpush.msrb.mxu1 %v4922_v16  ;;  %1640 = vmatpush.msrb.mxu2 %v4125_v19  ;;  %v4928_v19 = vld [vmem:[#allocation54_spill] sm:$0xff]  ;;  %v2325_v16 = vld [vmem:[%s4615_s5 + $0x150] sm:$0xff] }
 0x174   : > { %1661 = vmatpush.msrb.mxu3 %v4133_v25  ;;  %1600 = vmatpush.msrb.mxu0 %v4923_v23  ;;  %v4929_v25 = vld [vmem:[#allocation56_spill] sm:$0xff] }
 0x175   : > { %1620 = vmatpush.msrb.mxu1 %v4924_v1  ;;  %1641 = vmatpush.msrb.mxu2 %v4140_v29  ;;  %v4930_v29 = vld [vmem:[#allocation57_spill] sm:$0xff] }
 0x176   : > { %1662 = vmatpush.msrb.mxu3 %v4147_v32  ;;  %1601 = vmatpush.msrb.mxu0 %v4925_v4  ;;  %v4931_v32 = vld [vmem:[#allocation58_spill] sm:$0xff]  ;;  %v2314_v1 = vld [vmem:[%s4615_s5 + $0x100] sm:$0xff] }
 0x177   : > { %1621 = vmatpush.msrb.mxu1 %v4926_v12  ;;  %1642 = vmatpush.msrb.mxu2 %v4154_v46  ;;  %v1690_v46 = vld [vmem:[%s4615_s5 + $0x40] sm:$0xff]  ;;  %v2324_v12 = vld [vmem:[%s4615_s5 + $0x148] sm:$0xff] }
 0x178   : > { %1663 = vmatpush.msrb.mxu3 %v4161_v47  ;;  %1602 = vmatpush.msrb.mxu0 %v4927_v17  ;;  %v2297_v47 = vld [vmem:[%s4615_s5 + $0x88] sm:$0xff] }
 0x179   : > { %1622 = vmatpush.msrb.mxu1 %v4928_v19  ;;  %1643 = vmatpush.msrb.mxu2 %v4168_v50  ;;  %v1688_v50 = vld [vmem:[%s4615_s5 + $0x30] sm:$0xff]  ;;  %v2313_v19 = vld [vmem:[%s4615_s5 + $0xf8] sm:$0xff] }
 0x17a   : > { %1664 = vmatpush.msrb.mxu3 %v4175_v51  ;;  %1603 = vmatpush.msrb.mxu0 %v3964_v36  ;;  %v1691_v36 = vld [vmem:[%s4615_s5 + $0x48] sm:$0xff]  ;;  %v2296_v51 = vld [vmem:[%s4615_s5 + $0x80] sm:$0xff] }
 0x17b   : > { %1623 = vmatpush.msrb.mxu1 %v4929_v25  ;;  %1644 = vmatpush.msrb.mxu2 %v4182_v54  ;;  %v1687_v54 = vld [vmem:[%s4615_s5 + $0x28] sm:$0xff]  ;;  %v2323_v25 = vld [vmem:[%s4615_s5 + $0x140] sm:$0xff] }
 0x17c   : > { %1665 = vmatpush.msrb.mxu3 %v4189_v55  ;;  %1604 = vmatpush.msrb.mxu0 %v4930_v29  ;;  %v2295_v55 = vld [vmem:[%s4615_s5 + $0x78] sm:$0xff]  ;;  %v2312_v29 = vld [vmem:[%s4615_s5 + $0xf0] sm:$0xff] }
 0x17d   : > { %1624 = vmatpush.msrb.mxu1 %v4931_v32  ;;  %1645 = vmatpush.msrb.mxu2 %v4196_v27  ;;  %v1686_v27 = vld [vmem:[%s4615_s5 + $0x20] sm:$0xff] }
 0x17e   : > { %1666 = vmatpush.msrb.mxu3 %v4203_v33  ;;  %2282 = vmatmul.msk.f32.vlgmr.msrb.gmra.mxu0 %vm1110_vm10, %v4042_v24  ;;  %v2299_v24 = vld [vmem:[%s4615_s5 + $0x98] sm:$0xff] }
 0x17f   : > { %2284 = vmatmul.msk.f32.vlgmr.msrb.gmra.mxu1 %vm1110_vm10, %v4058_v18  ;;  %2286 = vmatmul.msk.f32.vlgmr.msrb.gmra.mxu2 %vm1110_vm10, %v4104_v5  ;;  %v2298_v18 = vld [vmem:[%s4615_s5 + $0x90] sm:$0xff]  ;;  %v1689_v5 = vld [vmem:[%s4615_s5 + $0x38] sm:$0xff] }
 0x180   : > { %2288 = vmatmul.msk.f32.vlgmr.msrb.gmra.mxu3 %vm1110_vm10, %v1544_v45  ;;  %1702 = vmatpush.msra.mxu0 %v1691_v36 }
 0x181   : > { %1737 = vmatpush.msra.mxu3 %v2299_v24  ;;  %1772 = vmatpush.msra.mxu2 %v2310_v0  ;;  %v1872_v24 = vld [vmem:[%s4617_s7 + $0x70] sm:$0xff] }
 0x182   : > { %1703 = vmatpush.msra.mxu0 %v1690_v46  ;;  %v1873_v46 = vld [vmem:[%s4617_s7 + $0x78] sm:$0xff] }
 0x183   : > { %1738 = vmatpush.msra.mxu3 %v2298_v18  ;;  %1773 = vmatpush.msra.mxu2 %v2309_v53 }
 0x184   : > { %1704 = vmatpush.msra.mxu0 %v1689_v5  ;;  %1875 = vmatpush.msra.mxu1 %v1873_v46  ;;  %v1899_v46 = vld [vmem:[%s4619_s9 + $0x18] sm:$0xff] }
 0x185   : > { %1739 = vmatpush.msra.mxu3 %v2297_v47  ;;  %1774 = vmatpush.msra.mxu2 %v2308_v60 }
 0x186   : > { %1705 = vmatpush.msra.mxu0 %v1688_v50  ;;  %v1871_v50 = vld [vmem:[%s4617_s7 + $0x68] sm:$0xff]  ;;  %1876 = vmatpush.msra.mxu1 %v1872_v24 }
 0x187   : > { %1740 = vmatpush.msra.mxu3 %v2296_v51  ;;  %1775 = vmatpush.msra.mxu2 %v2307_v6 }
 0x188   : > { %1706 = vmatpush.msra.mxu0 %v1687_v54  ;;  %1877 = vmatpush.msra.mxu1 %v1871_v50 }
 0x189   : > { %1741 = vmatpush.msra.mxu3 %v2295_v55  ;;  %1776 = vmatpush.msra.mxu2 %v2306_v3  ;;  %v2346_v3 = vld [vmem:[%s4614_s4] ss:$0 sm:$0xff] }
 0x18a   : > { %1707 = vmatpush.msra.mxu0 %v1686_v27 }
 0x18b   : > { %1742 = vmatpush.msra.mxu3 %v2294_v9  ;;  %1777 = vmatpush.msra.mxu2 %v2305_v28  ;;  %v1870_v9 = vld [vmem:[%s4617_s7 + $0x60] sm:$0xff] }
 0x18c   : > { %1708 = vmatpush.msra.mxu0 %v1685_v10  ;;  %1878 = vmatpush.msra.mxu1 %v1870_v9  ;;  %v1874_v9 = vld [vmem:[%s4618_s8] sm:$0x1] }
 0x18d   : > { %1743 = vmatpush.msra.mxu3 %v2293_v13  ;;  %1778 = vmatpush.msra.mxu2 %v2304_v52  ;;  %v1867_v52 = vld [vmem:[%s4617_s7 + $0x48] sm:$0xff] }
 0x18e   : > { %1709 = vmatpush.msra.mxu0 %v1684_v59 }
 0x18f   : > { %1744 = vmatpush.msra.mxu3 %v2292_v43  ;;  %1779 = vmatpush.msra.mxu2 %v2303_v21  ;;  %v1862_v21 = vld [vmem:[%s4617_s7 + $0x20] sm:$0xff] }
 0x190   : > { %1710 = vmatpush.msra.mxu0 %v1683_v37 }
 0x191   : > { %1745 = vmatpush.msra.mxu3 %v2291_v39  ;;  %1780 = vmatpush.msra.mxu2 %v2302_v38  ;;  %v1859_v38 = vld [vmem:[%s4617_s7 + $0x8] sm:$0xff] }
 0x192   : > { %1711 = vmatpush.msra.mxu0 %v1682_v15 }
 0x193   : > { %1746 = vmatpush.msra.mxu3 %v2290_v35  ;;  %1781 = vmatpush.msra.mxu2 %v2301_v31  ;;  %v1910_v31 = vld [vmem:[%s4619_s9 + $0x70] sm:$0xff] }
 0x194   : > { %1842 = vmatpush.msrb.mxu0 %v2332_v44 }
 0x195   : > { %1807 = vmatpush.msrb.mxu3 %v2321_v48 }
 0x196   : > { %1843 = vmatpush.msrb.mxu0 %v2331_v2 }
 0x197   : > { %1808 = vmatpush.msrb.mxu3 %v2320_v26 }
 0x198   : > { %1844 = vmatpush.msrb.mxu0 %v2330_v49  ;;  %v1869_v49 = vld [vmem:[%s4617_s7 + $0x58] sm:$0xff] }
 0x199   : > { %1809 = vmatpush.msrb.mxu3 %v2319_v34  ;;  %1879 = vmatpush.msra.mxu1 %v1869_v49  ;;  %v1866_v34 = vld [vmem:[%s4617_s7 + $0x40] sm:$0xff] }
 0x19a   : > { %1845 = vmatpush.msrb.mxu0 %v2329_v63  ;;  %v1865_v63 = vld [vmem:[%s4617_s7 + $0x38] sm:$0xff] }
 0x19b   : > { %1810 = vmatpush.msrb.mxu3 %v2318_v7  ;;  %v1861_v7 = vld [vmem:[%s4617_s7 + $0x18] sm:$0xff] }
 0x19c   : > { %1846 = vmatpush.msrb.mxu0 %v2328_v58  ;;  %v1860_v58 = vld [vmem:[%s4617_s7 + $0x10] sm:$0xff] }
 0x19d   : > { %1811 = vmatpush.msrb.mxu3 %v2317_v57  ;;  %v1858_v57 = vld [vmem:[%s4617_s7] sm:$0xff] }
 0x19e   : > { %1847 = vmatpush.msrb.mxu0 %v2327_v11  ;;  %v1911_v11 = vld [vmem:[%s4619_s9 + $0x78] sm:$0xff] }
 0x19f   : > { %1812 = vmatpush.msrb.mxu3 %v2316_v8  ;;  %1913 = vmatpush.msrb.mxu2 %v1911_v11  ;;  %v1909_v8 = vld [vmem:[%s4619_s9 + $0x68] sm:$0xff] }
 0x1a0   : > { %1848 = vmatpush.msrb.mxu0 %v2326_v62  ;;  %v1908_v62 = vld [vmem:[%s4619_s9 + $0x60] sm:$0xff] }
 0x1a1   : > { %1813 = vmatpush.msrb.mxu3 %v2315_v40  ;;  %1914 = vmatpush.msrb.mxu2 %v1910_v31  ;;  %v1906_v40 = vld [vmem:[%s4619_s9 + $0x50] sm:$0xff] }
 0x1a2   : > { %1849 = vmatpush.msrb.mxu0 %v2325_v16  ;;  %v1905_v16 = vld [vmem:[%s4619_s9 + $0x48] sm:$0xff] }
 0x1a3   : > { %1814 = vmatpush.msrb.mxu3 %v2314_v1  ;;  %1915 = vmatpush.msrb.mxu2 %v1909_v8  ;;  %v1903_v1 = vld [vmem:[%s4619_s9 + $0x38] sm:$0xff] }
 0x1a4   : > { %1850 = vmatpush.msrb.mxu0 %v2324_v12 }
 0x1a5   : > { %1815 = vmatpush.msrb.mxu3 %v2313_v19  ;;  %1916 = vmatpush.msrb.mxu2 %v1908_v62 }
 0x1a6   : > { %1851 = vmatpush.msrb.mxu0 %v2323_v25 }
 0x1a7   : > { %1816 = vmatpush.msrb.mxu3 %v2312_v29  ;;  %v1901_v29 = vld [vmem:[%s4619_s9 + $0x28] sm:$0xff] }
 0x1b1   : > { %v4371_v14 = vpop.f32.mrf.mxu1 }
 0x1b2   : > { %v4363_v33 = vpop.f32.mrf.mxu0 }
 0x1b3   : > { %v1162_v5 = vadd.f32 %v4371_v14, %v4363_v33 }
 0x1b9   : > { %v4391_v22 = vpop.f32.mrf.mxu2 }
 0x1ba   : > { %v4393_v61 = vpop.f32.mrf.mxu3  ;;  %v1203_v54 = vadd.f32 %v4391_v22, %v1162_v5 }
 0x1bb   : > { %v4398_v20 = vpop.f32.mrf.mxu0 }
 0x1bc   : > { %v1328_v30 = vpop.f32.mrf.mxu1  ;;  %v1243_v14 = vadd.f32 %v4393_v61, %v1203_v54 }
 0x1be   : > { %v1283_v15 = vadd.f32 %v4398_v20, %v1243_v14  ;;  %v1912_v14 = vld [vmem:[%s4620_s10] sm:$0x1] }
 0x1c2   : > { %v1351_v41 = vpop.f32.mrf.mxu2 }
 0x1c3   : > { %v1386_v45 = vpop.f32.mrf.mxu3  ;;  %v1352_v36 = vadd.f32 %v1351_v41, %v1328_v30  ;;  %v1868_v41 = vld [vmem:[%s4617_s7 + $0x50] sm:$0xff] }
 0x1c4   : > { %1880 = vmatpush.msra.mxu1 %v1868_v41 }
 0x1c5   : > { %v1389_v55 = vadd.f32 %v1386_v45, %v1352_v36  ;;  %v1863_v45 = vld [vmem:[%s4617_s7 + $0x28] sm:$0xff]  ;;  %v1900_v36 = vld [vmem:[%s4619_s9 + $0x20] sm:$0xff] }
 0x1c6   : > { %1881 = vmatpush.msra.mxu1 %v1867_v52 }
 0x1c8   : > { %1882 = vmatpush.msra.mxu1 %v1866_v34 }
 0x1ca   : > { %1883 = vmatpush.msra.mxu1 %v1865_v63 }
 0x1cb   : > { %v1422_v56 = vpop.f32.mrf.mxu0 }
 0x1cc   : > { %v1458_v42 = vpop.f32.mrf.mxu1  ;;  %v1425_v0 = vadd.f32 %v1422_v56, %v1389_v55  ;;  %v1864_v56 = vld [vmem:[%s4617_s7 + $0x30] sm:$0xff] }
 0x1cd   : > { %1884 = vmatpush.msra.mxu1 %v1864_v56  ;;  %v1898_v55 = vld [vmem:[%s4619_s9 + $0x10] sm:$0xff] }
 0x1ce   : > { %v1461_v37 = vadd.f32 %v1458_v42, %v1425_v0  ;;  %v1907_v42 = vld [vmem:[%s4619_s9 + $0x58] sm:$0xff] }
 0x1cf   : > { %1885 = vmatpush.msra.mxu1 %v1863_v45  ;;  %1917 = vmatpush.msrb.mxu2 %v1907_v42 }
 0x1d0   : > { %v1672_v44 = vmax.f32 %v1283_v15, %v1461_v37 }
 0x1d1   : > { %1886 = vmatpush.msra.mxu1 %v1862_v21  ;;  %1918 = vmatpush.msrb.mxu2 %v1906_v40 }
 0x1d2   : > { %v1479_v23 = vpop.f32.mrf.mxu2 }
 0x1d3   : > { %v1499_v17 = vpop.f32.mrf.mxu3  ;;  %1887 = vmatpush.msra.mxu1 %v1861_v7  ;;  %1919 = vmatpush.msrb.mxu2 %v1905_v16 }
 0x1d4   : > { %v1500_v27 = vadd.f32 %v1499_v17, %v1479_v23  ;;  %v1904_v23 = vld [vmem:[%s4619_s9 + $0x40] sm:$0xff]  ;;  %v1902_v17 = vld [vmem:[%s4619_s9 + $0x30] sm:$0xff] }
 0x1d5   : > { %1888 = vmatpush.msra.mxu1 %v1860_v58  ;;  %1920 = vmatpush.msrb.mxu2 %v1904_v23 }
 0x1d7   : > { %1889 = vmatpush.msra.mxu1 %v1859_v38  ;;  %1921 = vmatpush.msrb.mxu2 %v1903_v1 }
 0x1d9   : > { %1890 = vmatpush.msra.mxu1 %v1858_v57  ;;  %1922 = vmatpush.msrb.mxu2 %v1902_v17 }
 0x1db   : > { %1923 = vmatpush.msrb.mxu2 %v1901_v29 }
 0x1dd   : > { %1924 = vmatpush.msrb.mxu2 %v1900_v36 }
 0x1df   : > { %1925 = vmatpush.msrb.mxu2 %v1899_v46 }
 0x1e1   : > { %1926 = vmatpush.msrb.mxu2 %v1898_v55 }
 0x1e3   : > { %v1519_v4 = vpop.f32.mrf.mxu0 }
 0x1e4   : > { %v1540_v32 = vpop.f32.mrf.mxu1  ;;  %v1522_v59 = vadd.f32 %v1519_v4, %v1500_v27  ;;  %v1681_v4 = vld [vmem:[%s4616_s6] sm:$0x1]  ;;  %v1897_v27 = vld [vmem:[%s4619_s9 + $0x8] sm:$0xff] }
 0x1e5   : > { %1927 = vmatpush.msrb.mxu2 %v1897_v27 }
 0x1e6   : > { %v1543_v43 = vadd.f32 %v1540_v32, %v1522_v59 }
 0x1ea   : > { %v1565_v18 = vpop.f32.mrf.mxu2 }
 0x1eb   : > { %v1586_v51 = vpop.f32.mrf.mxu3  ;;  %v1568_v39 = vadd.f32 %v1565_v18, %v1543_v43 }
 0x1fb   : > { %v1606_v47 = vpop.f32.mrf.mxu0 }
 0x1fc   : > { %v1607_v10 = vadd.f32 %v1606_v47, %v1586_v51  ;;  %v1626_v33 = vpop.f32.mrf.mxu1 }
 0x1fe   : > { %v1629_v13 = vadd.f32 %v1626_v33, %v1607_v10  ;;  %v1896_v10 = vld [vmem:[%s4619_s9] sm:$0xff] }
 0x1ff   : > { %1928 = vmatpush.msrb.mxu2 %v1896_v10 }
 0x202   : > { %v1647_v53 = vpop.f32.mrf.mxu2 }
 0x203   : > { %v1650_v60 = vadd.f32 %v1647_v53, %v1629_v13  ;;  %v1668_v22 = vpop.f32.mrf.mxu3 }
 0x205   : > { %v1671_v6 = vadd.f32 %v1668_v22, %v1650_v60 }
 0x207   : > { %v1673_v35 = vmax.f32 %v1568_v39, %v1671_v6 }
 0x209   : > { %v1674_v48 = vmax.f32 %v1672_v44, %v1673_v35 }
 0x20b   : > { %v1679_v2 = vadd.f32 %v2346_v3, %v1674_v48 }
 0x20d   : > { %v1680_v61 = vmax.f32 %v1679_v2, 0.0 }
 0x20f   : > { %2289 = vmatmul.msk.f32.vlgmr.msra.gmra.mxu0 %vm1692_vm11, %v1680_v61  ;;  %v1728_v30 = vrot.slane %v1680_v61, 1  ;;  %v1763_v28 = vrot.slane %v1680_v61, 2  ;;  %v1833_v26 = vrot.slane %v1680_v61, 4  ;;  %v1798_v20 = vrot.slane %v1680_v61, 3 }
 0x211   : > { %2300 = vmatmul.msk.f32.vlgmr.msra.gmra.mxu3 %vm1692_vm11, %v1728_v30  ;;  %2311 = vmatmul.msk.f32.vlgmr.msra.gmra.mxu2 %vm1692_vm11, %v1763_v28 }
 0x217   : > { %2333 = vmatmul.msk.f32.vlgmr.msrb.gmra.mxu0 %vm1692_vm11, %v1833_v26 }
 0x219   : > { %2322 = vmatmul.msk.f32.vlgmr.msrb.gmra.mxu3 %vm1692_vm11, %v1798_v20 }
 0x28c   : > { %v1713_v12 = vpop.f32.mrf.mxu0 }
 0x28d   : > { %v1716_v25 = vadd.f32 %v1713_v12, %v1681_v4 }
 0x294   : > { %v1748_v19 = vpop.f32.mrf.mxu3  ;;  %v1783_v24 = vpop.f32.mrf.mxu2 }
 0x295   : > { %v1751_v32 = vadd.f32 %v1748_v19, %v1716_v25  ;;  %v1853_v50 = vpop.f32.mrf.mxu0 }
 0x297   : > { %v1786_v18 = vadd.f32 %v1783_v24, %v1751_v32 }
 0x29c   : > { %v1818_v5 = vpop.f32.mrf.mxu3 }
 0x29d   : > { %v1821_v47 = vadd.f32 %v1818_v5, %v1786_v18 }
 0x29f   : > { %v1856_v51 = vadd.f32 %v1853_v50, %v1821_v47 }
 0x2a1   : > { %v1857_v54 = vmax.f32 %v1856_v51, 0.0 }
 0x2a3   : > { %1891 = vmatmul.f32.vlgmr.msra.gmra.mxu1 %v1857_v54 }
 0x320   : > { %v1892_v0 = vpop.f32.mrf.mxu1 }
 0x321   : > { %v1893_v59 = vadd.f32 %v1892_v0, %v1874_v9 }
 0x323   : > { %v1895_v33 = vmax.f32 %v1893_v59, 0.0 }
 0x325   : > { %1929 = vmatmul.f32.vlgmr.msrb.gmra.mxu2 %v1895_v33 }
 0x3a8   : > { %v1930_v13 = vpop.f32.mrf.mxu2 }
 0x3a9   : > { %v1931_v53 = vadd.f32 %v1930_v13, %v1912_v14 }
 0x3ab   : > { %v1933_v37 = vperm.slane %v1931_v53, 0 }
 0x3ad   : > { %1934 = vst [vmem:[%s384_s20] sm:$0xff] %v1933_v37 }
 0x3ae PF: > { %s21_s17 = sadd.s32 1, %s2353_s17  }
 0x3af   : > { %p18_p4 = scmp.ge.s32.totalorder %s21_s17, 4  }
 0x3b1   :  { %20 = sbr.rel (!%p18_p4) target bundleno = 1 (0x1), region = 118 }

</bundles_post_ra>
